<compile_context>
chip_gen: v7x
topology: tpu7x:2x2x1
jax: 0.10.0
libtpu: 0.0.40
codegen_flags: <defaults>
</compile_context>

<pallas_src>
import functools

import jax
import jax.numpy as jnp
from jax.experimental import pallas as pl
from jax.experimental.pallas import tpu as pltpu

# SELU constants (match torch.nn.SELU)
_SELU_ALPHA = 1.6732632423543772848170429916717
_SELU_SCALE = 1.0507009873554804934193349852946
_BN_EPS = 1e-5


def _selu(x):
    return _SELU_SCALE * jnp.where(x > 0, x, _SELU_ALPHA * (jnp.exp(x) - 1.0))


def deepsurv_kernel(x_ref, w1_ref, b1_ref, w2_ref, b2_ref, o_ref, *, bf16_l2):
    """One (TN, D) row tile of the DeepSurv head.

    x_ref : [TN, D]  f32       (tile of encoder features, cast to bf16 in-register)
    w1_ref: [D, H]   bf16      (Linear1 weight with BN1 folded in, VMEM-resident)
    b1_ref: [1, H]   f32       (Linear1 bias  with BN1 folded in, VMEM-resident)
    w2_ref: [1, H]   bf16/f32  (Linear2 weight row with BN2 folded in, VMEM-resident)
    b2_ref: [1, 1]   f32 SMEM  (Linear2 bias with BN2 folded in)
    o_ref : [TN, 1]  f32       sigmoid(risk)
    """
    # ---- Layer 1: (Linear ∘ BN, folded) -> SELU ; MXU matmul, f32 accumulate --
    x = x_ref[...].astype(jnp.bfloat16)
    h = jnp.dot(x, w1_ref[...], preferred_element_type=jnp.float32)
    h = _selu(h + b1_ref[...])

    # ---- Dropout(0.16): identity in eval mode ---------------------------------

    # ---- Layer 2: (Linear(H,1) ∘ BN, folded) -> SELU ; VPU mul + lane reduce ---
    if bf16_l2:
        # bf16 VALU multiply (v6e/v7x), accumulate the reduction in f32.
        prod = (h.astype(jnp.bfloat16) * w2_ref[...]).astype(jnp.float32)
    else:
        # v5e has no bf16 VALU -> keep f32.
        prod = h * w2_ref[...]
    z = jnp.sum(prod, axis=-1, keepdims=True) + b2_ref[0, 0]
    z = _selu(z)

    # ---- sigmoid(risk_scores) --------------------------------------------------
    o_ref[...] = 1.0 / (1.0 + jnp.exp(-z))


def fold_params(p):
    """Fold eval-mode BatchNorm into the Linear layers (done once, outside the kernel)."""
    s1 = p["g1"] * jax.lax.rsqrt(p["v1"] + _BN_EPS)                   # [1, H]
    w1f = (p["w1"] * s1).astype(jnp.bfloat16)                         # [D, H] bf16
    b1f = (p["b1"] - p["m1"]) * s1 + p["be1"]                         # [1, H] f32

    s2 = p["g2"] * jax.lax.rsqrt(p["v2"] + _BN_EPS)                   # [1, 1]
    w2f = (p["w2"] * s2).reshape(1, -1).astype(jnp.float32)           # [1, H] f32 row
    b2f = ((p["b2"] - p["m2"]) * s2 + p["be2"]).astype(jnp.float32)   # [1, 1]
    return {"w1f": w1f, "b1f": b1f, "w2f": w2f, "b2f": b2f}


def _supports_bf16_vpu():
    """True on chips with bf16 VALUs (v6e / v7x); False on v5e/v5p/older."""
    try:
        kind = jax.devices()[0].device_kind.lower()
    except Exception:  # pragma: no cover - defensive
        return False
    return any(t in kind for t in ("v6", "v7", "7x", "trillium", "ironwood"))


def _pick_tile_n(n, max_tile=2048):
    """Row-tile size: big enough to amortize per-step overhead, but keep >= 2
    grid steps (when N allows) so the parallel row axis shards across v7x's
    two TensorCores.  Rounded to a multiple of 16 (sublane-aligned)."""
    t = min(max_tile, max(1, (n + 1) // 2))
    t = ((t + 15) // 16) * 16
    return max(t, 16)


def gnn_surv_head(x, folded, *, tile_n=None, use_bf16_l2=None):
    """Pallas DeepSurv head.  x: [N, output_dim] float32 -> sigmoid(risk): [N, 1]."""
    N, D = x.shape
    H = folded["w1f"].shape[1]

    if use_bf16_l2 is None:
        use_bf16_l2 = _supports_bf16_vpu()
    if tile_n is None:
        tile_n = _pick_tile_n(N)

    grid = (pl.cdiv(N, tile_n),)   # ragged last block: OOB reads -> garbage rows
                                   # (row-wise math, discarded); OOB writes masked.

    w2 = folded["w2f"].astype(jnp.bfloat16) if use_bf16_l2 else folded["w2f"]
    kernel = functools.partial(deepsurv_kernel, bf16_l2=use_bf16_l2)

    # Advisory scheduling hint (helps XLA when this head is fused after the encoder).
    cost = pl.CostEstimate(
        flops=2 * N * D * H + 4 * N * H,
        transcendentals=N * (H + 2),
        bytes_accessed=N * D * 4 + N * 4 + D * H * 2 + 2 * H * 4 + 4,
    )

    out = pl.pallas_call(
        kernel,
        out_shape=jax.ShapeDtypeStruct((N, 1), jnp.float32),
        grid=grid,
        in_specs=[
            pl.BlockSpec((tile_n, D), lambda i: (i, 0)),                  # x rows (streamed, f32)
            pl.BlockSpec((D, H), lambda i: (0, 0)),                       # w1 (resident)
            pl.BlockSpec((1, H), lambda i: (0, 0)),                       # b1 (resident)
            pl.BlockSpec((1, H), lambda i: (0, 0)),                       # w2 row (resident)
            pl.BlockSpec((1, 1), lambda i: (0, 0),
                         memory_space=pltpu.MemorySpace.SMEM),            # b2 scalar
        ],
        out_specs=pl.BlockSpec((tile_n, 1), lambda i: (i, 0)),
        compiler_params=pltpu.CompilerParams(
            dimension_semantics=("parallel",),    # shard row tiles across TCs (v7x)
        ),
        cost_estimate=cost,
    )(x, folded["w1f"], folded["b1f"], w2, folded["b2f"])

    return out


def init_params(key, output_dim, hidden=256):
    """Deterministic init matching DeepSurv(dims=[output_dim, 256, 1]) in eval mode."""
    k1, k2, k3, k4 = jax.random.split(key, 4)
    lim1 = 1.0 / jnp.sqrt(output_dim)
    lim2 = 1.0 / jnp.sqrt(hidden)
    return {
        # Linear(output_dim, 256)
        "w1": jax.random.uniform(k1, (output_dim, hidden), jnp.float32, -lim1, lim1),
        "b1": jax.random.uniform(k2, (1, hidden), jnp.float32, -lim1, lim1),
        # BatchNorm1d(256) — default affine / running stats
        "g1": jnp.ones((1, hidden), jnp.float32),
        "be1": jnp.zeros((1, hidden), jnp.float32),
        "m1": jnp.zeros((1, hidden), jnp.float32),
        "v1": jnp.ones((1, hidden), jnp.float32),
        # Linear(256, 1)
        "w2": jax.random.uniform(k3, (hidden, 1), jnp.float32, -lim2, lim2),
        "b2": jax.random.uniform(k4, (1, 1), jnp.float32, -lim2, lim2),
        # BatchNorm1d(1)
        "g2": jnp.ones((1, 1), jnp.float32),
        "be2": jnp.zeros((1, 1), jnp.float32),
        "m2": jnp.zeros((1, 1), jnp.float32),
        "v2": jnp.ones((1, 1), jnp.float32),
    }


def _reference(x, p):
    """Pure-JAX f32 reference with the original (unfolded) module semantics."""
    h = x @ p["w1"] + p["b1"]
    h = (h - p["m1"]) / jnp.sqrt(p["v1"] + _BN_EPS) * p["g1"] + p["be1"]
    h = _selu(h)
    z = h @ p["w2"] + p["b2"]
    z = (z - p["m2"]) / jnp.sqrt(p["v2"] + _BN_EPS) * p["g2"] + p["be2"]
    z = _selu(z)
    return 1.0 / (1.0 + jnp.exp(-z))


if __name__ == "__main__":
    key = jax.random.PRNGKey(0)
    k_x, k_p = jax.random.split(key)

    output_dim = 32   # GNN_Surv(output_dim=32)
    N = 1000          # nodes / encoder feature vectors (not a tile multiple
                      #  -> exercises the ragged last block and a 2-step grid)

    # Stand-in for the (unspecified) GNN encoder output x = encoder(data_wsi)
    x = jax.random.normal(k_x, (N, output_dim), dtype=jnp.float32)
    params = init_params(k_p, output_dim)
    folded = fold_params(params)

    out = gnn_surv_head(x, folded)
    out = jax.block_until_ready(out)

    ref = _reference(x, params)
    assert out.shape == (N, 1)
    # bf16 inputs to the first matmul (f32 accumulation) + optional bf16 layer-2
    # multiply -> loose-but-meaningful tolerance on sigmoid outputs (range [0,1]).
    assert jnp.allclose(out, ref, atol=1e-2, rtol=0.0), float(jnp.max(jnp.abs(out - ref)))

    print("KERNEL_OK")
</pallas_src>

<mosaic_0001>
module attributes {stable_mosaic.version = 11 : i64} {
  func.func @deepsurv_kernel(%arg0: i32, %arg1: memref<512x32xf32, #tpu.memory_space<vmem>>, %arg2: memref<32x256xbf16, #tpu.memory_space<vmem>>, %arg3: memref<1x256xf32, #tpu.memory_space<vmem>>, %arg4: memref<1x256xf32, #tpu.memory_space<vmem>>, %arg5: memref<1x1xf32, #tpu.memory_space<smem>>, %arg6: memref<512x1xf32, #tpu.memory_space<vmem>>) attributes {dimension_semantics = [#tpu.dimension_semantics<parallel>], iteration_bounds = array<i64: 2>, scalar_prefetch = 0 : i64, scratch_operands = 0 : i64, tpu.core_type = #tpu.core_type<tc>, window_params = [{transform_indices = @transform_0, window_bounds = array<i64: 512, 32>}, {pipeline_mode = #tpu.pipeline_mode<synchronous>, transform_indices = @transform_1, window_bounds = array<i64: 32, 256>}, {pipeline_mode = #tpu.pipeline_mode<synchronous>, transform_indices = @transform_2, window_bounds = array<i64: 1, 256>}, {pipeline_mode = #tpu.pipeline_mode<synchronous>, transform_indices = @transform_3, window_bounds = array<i64: 1, 256>}, {transform_indices = @transform_4, window_bounds = array<i64: 1, 1>}, {transform_indices = @transform_5, window_bounds = array<i64: 512, 1>}]} {
    %c0 = arith.constant 0 : index
    %c0_0 = arith.constant 0 : index
    %0 = vector.load %arg1[%c0, %c0_0] : memref<512x32xf32, #tpu.memory_space<vmem>>, vector<512x32xf32>
    %1 = arith.truncf %0 : vector<512x32xf32> to vector<512x32xbf16>
    %c0_1 = arith.constant 0 : index
    %c0_2 = arith.constant 0 : index
    %2 = vector.load %arg2[%c0_1, %c0_2] : memref<32x256xbf16, #tpu.memory_space<vmem>>, vector<32x256xbf16>
    %cst = arith.constant dense<0.000000e+00> : vector<512x256xf32>
    %3 = tpu.matmul %1, %2, %cst {dimension_numbers = #tpu.dot_dimension_numbers<[1], [0], [0], [1], [0, 0, 1, 1], [], []>} : vector<512x32xbf16>, vector<32x256xbf16>, vector<512x256xf32> -> vector<512x256xf32>
    %c0_3 = arith.constant 0 : index
    %c0_4 = arith.constant 0 : index
    %4 = vector.load %arg3[%c0_3, %c0_4] : memref<1x256xf32, #tpu.memory_space<vmem>>, vector<1x256xf32>
    %5 = vector.broadcast %4 : vector<1x256xf32> to vector<512x256xf32>
    %6 = arith.addf %3, %5 : vector<512x256xf32>
    %cst_5 = arith.constant 0.000000e+00 : f32
    %7 = vector.broadcast %cst_5 : f32 to vector<512x256xf32>
    %8 = arith.cmpf ogt, %6, %7 : vector<512x256xf32>
    %9 = math.exp %6 : vector<512x256xf32>
    %cst_6 = arith.constant 1.000000e+00 : f32
    %10 = vector.broadcast %cst_6 : f32 to vector<512x256xf32>
    %11 = arith.subf %9, %10 : vector<512x256xf32>
    %cst_7 = arith.constant 1.67326319 : f32
    %12 = vector.broadcast %cst_7 : f32 to vector<512x256xf32>
    %13 = arith.mulf %12, %11 : vector<512x256xf32>
    %14 = arith.select %8, %6, %13 : vector<512x256xi1>, vector<512x256xf32>
    %cst_8 = arith.constant 1.05070102 : f32
    %15 = vector.broadcast %cst_8 : f32 to vector<512x256xf32>
    %16 = arith.mulf %15, %14 : vector<512x256xf32>
    %c0_9 = arith.constant 0 : index
    %c0_10 = arith.constant 0 : index
    %17 = vector.load %arg4[%c0_9, %c0_10] : memref<1x256xf32, #tpu.memory_space<vmem>>, vector<1x256xf32>
    %18 = vector.broadcast %17 : vector<1x256xf32> to vector<512x256xf32>
    %19 = arith.mulf %16, %18 : vector<512x256xf32>
    %cst_11 = arith.constant dense<0.000000e+00> : vector<512xf32>
    %20 = vector.multi_reduction <add>, %19, %cst_11 [1] : vector<512x256xf32> to vector<512xf32>
    %21 = vector.shape_cast %20 : vector<512xf32> to vector<512x1xf32>
    %c0_12 = arith.constant 0 : index
    %c0_13 = arith.constant 0 : index
    %22 = memref.load %arg5[%c0_12, %c0_13] : memref<1x1xf32, #tpu.memory_space<smem>>
    %23 = vector.broadcast %22 : f32 to vector<512x1xf32>
    %24 = arith.addf %21, %23 : vector<512x1xf32>
    %cst_14 = arith.constant 0.000000e+00 : f32
    %25 = vector.broadcast %cst_14 : f32 to vector<512x1xf32>
    %26 = arith.cmpf ogt, %24, %25 : vector<512x1xf32>
    %27 = math.exp %24 : vector<512x1xf32>
    %cst_15 = arith.constant 1.000000e+00 : f32
    %28 = vector.broadcast %cst_15 : f32 to vector<512x1xf32>
    %29 = arith.subf %27, %28 : vector<512x1xf32>
    %cst_16 = arith.constant 1.67326319 : f32
    %30 = vector.broadcast %cst_16 : f32 to vector<512x1xf32>
    %31 = arith.mulf %30, %29 : vector<512x1xf32>
    %32 = arith.select %26, %24, %31 : vector<512x1xi1>, vector<512x1xf32>
    %cst_17 = arith.constant 1.05070102 : f32
    %33 = vector.broadcast %cst_17 : f32 to vector<512x1xf32>
    %34 = arith.mulf %33, %32 : vector<512x1xf32>
    %cst_18 = arith.constant 0.000000e+00 : f32
    %35 = vector.broadcast %cst_18 : f32 to vector<512x1xf32>
    %36 = arith.subf %35, %34 : vector<512x1xf32>
    %37 = math.exp %36 : vector<512x1xf32>
    %cst_19 = arith.constant 1.000000e+00 : f32
    %38 = vector.broadcast %cst_19 : f32 to vector<512x1xf32>
    %39 = arith.addf %38, %37 : vector<512x1xf32>
    %cst_20 = arith.constant 1.000000e+00 : f32
    %40 = vector.broadcast %cst_20 : f32 to vector<512x1xf32>
    %41 = arith.divf %40, %39 : vector<512x1xf32>
    %c0_21 = arith.constant 0 : index
    %c0_22 = arith.constant 0 : index
    %42 = vector.load %arg6[%c0_21, %c0_22] : memref<512x1xf32, #tpu.memory_space<vmem>>, vector<512x1xf32>
    tpu.vector_store %arg6[%c0_21, %c0_22], %41 {strides = array<i32>} : memref<512x1xf32, #tpu.memory_space<vmem>>, vector<512x1xf32>,
    return
  }
  func.func @transform_0(%arg0: i32) -> (i32, i32) {
    %c0_i32 = arith.constant 0 : i32
    %c0_i32_0 = arith.constant 0 : i32
    return %arg0, %c0_i32 : i32, i32
  }
  func.func @transform_1(%arg0: i32) -> (i32, i32) {
    %c0_i32 = arith.constant 0 : i32
    %c0_i32_0 = arith.constant 0 : i32
    %c0_i32_1 = arith.constant 0 : i32
    return %c0_i32, %c0_i32_0 : i32, i32
  }
  func.func @transform_2(%arg0: i32) -> (i32, i32) {
    %c0_i32 = arith.constant 0 : i32
    %c0_i32_0 = arith.constant 0 : i32
    %c0_i32_1 = arith.constant 0 : i32
    return %c0_i32, %c0_i32_0 : i32, i32
  }
  func.func @transform_3(%arg0: i32) -> (i32, i32) {
    %c0_i32 = arith.constant 0 : i32
    %c0_i32_0 = arith.constant 0 : i32
    %c0_i32_1 = arith.constant 0 : i32
    return %c0_i32, %c0_i32_0 : i32, i32
  }
  func.func @transform_4(%arg0: i32) -> (i32, i32) {
    %c0_i32 = arith.constant 0 : i32
    %c0_i32_0 = arith.constant 0 : i32
    %c0_i32_1 = arith.constant 0 : i32
    return %c0_i32, %c0_i32_0 : i32, i32
  }
  func.func @transform_5(%arg0: i32) -> (i32, i32) {
    %c0_i32 = arith.constant 0 : i32
    %c0_i32_0 = arith.constant 0 : i32
    return %arg0, %c0_i32 : i32, i32
  }
}

</mosaic_0001>

<bundles_post_ra>
// kernel: tpu_custom_call.1
= control target key start
LH: loop header
LB: loop body
LE: loop exit
PB: predicated region body
PF: predicated region fallthrough
CT: control target
= control target key end

     0   :  { %s7601_s0 = inlined_call_operand.vmem [shape: f32[1000,32], index: 0, kind: input, shape index: {}]   ;;  %s7602_s1 = inlined_call_operand.vmem [shape: bf16[32,256], index: 1, kind: input, shape index: {}]   ;;  %s7603_s2 = inlined_call_operand.vmem [shape: f32[1,256], index: 2, kind: input, shape index: {}]   ;;  %s7604_s3 = inlined_call_operand.vmem [shape: f32[1,256], index: 3, kind: input, shape index: {}]   ;;  %s7605_s4 = inlined_call_operand.<no memory space> [shape: f32[1,1], index: 4, kind: input, shape index: {}]   ;;  %s7606_s5 = inlined_call_operand.vmem [shape: f32[1000,1], index: 5, kind: output, shape index: {}]  }
   0x1   :  { %10 = sst [smem:[#allocation2]] %s7605_s4 }
   0x2   :  { %s4604_s20 = smov 0   ;;  %s4606_s21 = smov 0  }
   0x3   :  { %s4608_s22 = smov 0  }
   0x4 LB: > { %s4617_s4 = sadd.s32 4294967295, %s4536_s22   ;;  %s4619_s23 = sadd.s32 1, %s4536_s22   ;;  %s4536_s22 = sphi %s4608_s22, %s7773_s22   ;;  %s4532_s21 = sphi %s4606_s21, %s7772_s21   ;;  %s4528_s20 = sphi %s4604_s20, %s7771_s20  }
   0x5   : > { %s130_s24 = ssub.s32 %s4536_s22, %s4619_s23  ;;  %s133_s25 = sadd.s32 1, %s4532_s21 }
   0x6   : > { %p131_p0 = scmp.eq.s32.totalorder %s130_s24, 0  ;;  %p143_p1 = scmp.ne.s32.totalorder %s4532_s21, %s4528_s20 }
   0x7   : > { %p144_p2 = scmp.eq.s32.totalorder %s4617_s4, 1  ;;  %p3491_p3 = scmp.ge.s32.totalorder %s4536_s22, 1 }
   0x8   : > { %s4627_s26 = scalar_select %p131_p0, %s4532_s21, %s133_s25  }
   0x9   : > { %p4629_p4 = por %p144_p2, %p143_p1  ;;  %p197_p5 = scmp.lt.s32.totalorder %s4536_s22, 3 }
   0xb   : > { %p198_p6 = pnand %p3491_p3, %p197_p5 }
   0xd   : > { %201 = sbr.rel (%p198_p6) target bundleno = 880 (0x370), region = 40 }
  0x14   : > { %v3836_v0 = vld [vmem:[%s7602_s1 + $0x4] ss:$8 sps:$4 sm:$0xff]   ;;  %s4637_s30 = sshll.u32 %s4617_s4, 6  ;;  %v3838_v1 = vld [vmem:[%s7602_s1] ss:$8 sps:$4 sm:$0xff]   ;;  %v4570_v2 = vmov 0  }
  0x15   : > { %509 = vmatprep.mubr.bf16.mxu0 %v4570_v2  ;;  %669 = vmatprep.mubr.bf16.mxu1 %v4570_v2  ;;  %p233_p7 = scmp.lt.s32.totalorder %s4637_s30, 124  ;;  %v3839_v3 = vld [vmem:[%s7602_s1 + $0x14] ss:$8 sps:$4 sm:$0xff]   ;;  %v3841_v4 = vld [vmem:[%s7602_s1 + $0x10] ss:$8 sps:$4 sm:$0xff]   ;;  %vm380_vm0 = vcmask 261120  }
  0x16   : > { %477 = vmatprep.subr.bf16.mxu0 %v3836_v0  ;;  %3743 = vmatprep.subr.bf16.mxu1 %v3836_v0  ;;  %s6638_s24 = sld [smem:[#allocation2]]  ;;  %s225_s25 = sand.u32 1, %s4528_s20  }
  0x17   : > { %478 = vmatpush1.bf16.msra.mxu0 %v3838_v1  ;;  %3745 = vmatpush1.bf16.msra.mxu1 %v3838_v1  ;;  %s234_s12 = scalar_select %p233_p7, %s4637_s30, 124 }
  0x18   : > { %479 = vmatprep.subr.bf16.mxu0 %v3839_v3  ;;  %3744 = vmatprep.subr.bf16.mxu1 %v3839_v3  ;;  %s3492_s20 = sshll.u32 %s225_s25, 9  ;;  %s3029_s29 = ssub.s32 (%p4629_p4), 125, %s4637_s30 }
  0x19   : > { %s3494_s13 = sshll.u32 %s234_s12, 3  ;;  %s6851_s28 = scalar_lea.vmem [#allocation3], %s3492_s20  }
  0x1a   : > { %s4655_s16 = scalar_lea.vmem %s7601_s0, %s3494_s13  ;;  %s3740_s6 = sshll.u32 (%p4629_p4), %s4617_s4, 9 }
  0x1b   : > { %480 = vmatpush1.bf16.msra.mxu0 %v3841_v4  ;;  %3746 = vmatpush1.bf16.msra.mxu1 %v3841_v4  ;;  %v248_v5 = vld [vmem:[%s4655_s16] sm:$0xff]  ;;  %v249_v6 = vld [vmem:[%s4655_s16 + $0x8] sm:$0xff]  ;;  %v250_v11 = vld [vmem:[%s4655_s16 + $0x10] sm:$0xff]  ;;  %p3030_p8 = scmp.lt.s32.totalorder (%p4629_p4), %s3029_s29, 64  ;;  %s7402_s9 = scalar_lea.vmem (%p4629_p4), %s7606_s5, %s3740_s6  }
  0x1c   : > { %v280_v7 = vld [vmem:[%s4655_s16 + $0x100] sm:$0xff]  ;;  %v312_v8 = vpack.c.bf16 %v249_v6, %v248_v5  ;;  %v281_v9 = vld [vmem:[%s4655_s16 + $0x108] sm:$0xff]  ;;  %v251_v12 = vld [vmem:[%s4655_s16 + $0x18] sm:$0xff] }
  0x1d   : > { %v328_v10 = vpack.c.bf16 %v281_v9, %v280_v7  ;;  %v282_v13 = vld [vmem:[%s4655_s16 + $0x110] sm:$0xff]  ;;  %v283_v14 = vld [vmem:[%s4655_s16 + $0x118] sm:$0xff]  ;;  %v313_v15 = vpack.c.bf16 %v251_v12, %v250_v11  ;;  %v252_v17 = vld [vmem:[%s4655_s16 + $0x20] sm:$0xff] }
  0x1e   : > { %3499 = vmatmul.mubr.msk.bf16.vlgmr.msra.gmra.mrb[0].mxu0 %vm380_vm0, %v312_v8  ;;  %v329_v16 = vpack.c.bf16 %v283_v14, %v282_v13  ;;  %v253_v18 = vld [vmem:[%s4655_s16 + $0x28] sm:$0xff]  ;;  %v284_v19 = vld [vmem:[%s4655_s16 + $0x120] sm:$0xff]  ;;  %v254_v23 = vld [vmem:[%s4655_s16 + $0x30] sm:$0xff] }
  0x1f   : > { %3515 = vmatmul.mubr.msk.bf16.vlgmr.msra.gmra.mrb[0].mxu1 %vm380_vm0, %v328_v10  ;;  %519 = vmatprep.mubr.bf16.mxu0 %v4570_v2  ;;  %v285_v20 = vld [vmem:[%s4655_s16 + $0x128] sm:$0xff]  ;;  %v314_v21 = vpack.c.bf16 %v253_v18, %v252_v17  ;;  %v255_v24 = vld [vmem:[%s4655_s16 + $0x38] sm:$0xff]  ;;  %v286_v25 = vld [vmem:[%s4655_s16 + $0x130] sm:$0xff] }
  0x20   : > { %679 = vmatprep.mubr.bf16.mxu1 %v4570_v2  ;;  %v330_v22 = vpack.c.bf16 %v285_v20, %v284_v19  ;;  %v287_v26 = vld [vmem:[%s4655_s16 + $0x138] sm:$0xff]  ;;  %v315_v27 = vpack.c.bf16 %v255_v24, %v254_v23  ;;  %v256_v29 = vld [vmem:[%s4655_s16 + $0x40] sm:$0xff]  ;;  %v257_v30 = vld [vmem:[%s4655_s16 + $0x48] sm:$0xff] }
  0x21   : > { %v331_v28 = vpack.c.bf16 %v287_v26, %v286_v25  ;;  %v288_v31 = vld [vmem:[%s4655_s16 + $0x140] sm:$0xff]  ;;  %v289_v32 = vld [vmem:[%s4655_s16 + $0x148] sm:$0xff]  ;;  %v316_v33 = vpack.c.bf16 %v257_v30, %v256_v29  ;;  %v258_v35 = vld [vmem:[%s4655_s16 + $0x50] sm:$0xff] }
  0x22   : > { %v332_v34 = vpack.c.bf16 %v289_v32, %v288_v31  ;;  %v259_v36 = vld [vmem:[%s4655_s16 + $0x58] sm:$0xff]  ;;  %v290_v37 = vld [vmem:[%s4655_s16 + $0x150] sm:$0xff]  ;;  %v260_v41 = vld [vmem:[%s4655_s16 + $0x60] sm:$0xff] }
  0x23   : > { %v291_v38 = vld [vmem:[%s4655_s16 + $0x158] sm:$0xff]  ;;  %v317_v39 = vpack.c.bf16 %v259_v36, %v258_v35  ;;  %v261_v42 = vld [vmem:[%s4655_s16 + $0x68] sm:$0xff]  ;;  %v292_v43 = vld [vmem:[%s4655_s16 + $0x160] sm:$0xff] }
  0x24   : > { %v333_v40 = vpack.c.bf16 %v291_v38, %v290_v37  ;;  %v293_v44 = vld [vmem:[%s4655_s16 + $0x168] sm:$0xff]  ;;  %v318_v45 = vpack.c.bf16 %v261_v42, %v260_v41  ;;  %v262_v47 = vld [vmem:[%s4655_s16 + $0x70] sm:$0xff]  ;;  %v263_v48 = vld [vmem:[%s4655_s16 + $0x78] sm:$0xff]  ;;  %v350_v38 = vlaneseq }
  0x25   : > { %v334_v46 = vpack.c.bf16 %v293_v44, %v292_v43  ;;  %v294_v49 = vld [vmem:[%s4655_s16 + $0x170] sm:$0xff]  ;;  %v295_v50 = vld [vmem:[%s4655_s16 + $0x178] sm:$0xff]  ;;  %v319_v51 = vpack.c.bf16 %v263_v48, %v262_v47  ;;  %v264_v53 = vld [vmem:[%s4655_s16 + $0x80] sm:$0xff] }
  0x26   : > { %3500 = vmatmul.mubr.msk.bf16.gmra.mrb[4].mxu0 %vm380_vm0, %v313_v15  ;;  %v335_v52 = vpack.c.bf16 %v295_v50, %v294_v49  ;;  %v265_v54 = vld [vmem:[%s4655_s16 + $0x88] sm:$0xff]  ;;  %v296_v55 = vld [vmem:[%s4655_s16 + $0x180] sm:$0xff]  ;;  %v266_v59 = vld [vmem:[%s4655_s16 + $0x90] sm:$0xff] }
  0x27   : > { %3516 = vmatmul.mubr.msk.bf16.gmra.mrb[4].mxu1 %vm380_vm0, %v329_v16  ;;  %529 = vmatprep.mubr.bf16.mxu0 %v4570_v2  ;;  %v297_v56 = vld [vmem:[%s4655_s16 + $0x188] sm:$0xff]  ;;  %v320_v57 = vpack.c.bf16 %v265_v54, %v264_v53  ;;  %v267_v60 = vld [vmem:[%s4655_s16 + $0x98] sm:$0xff]  ;;  %v298_v61 = vld [vmem:[%s4655_s16 + $0x190] sm:$0xff] }
  0x28   : > { %689 = vmatprep.mubr.bf16.mxu1 %v4570_v2  ;;  %v336_v58 = vpack.c.bf16 %v297_v56, %v296_v55  ;;  %v299_v62 = vld [vmem:[%s4655_s16 + $0x198] sm:$0xff]  ;;  %v321_v63 = vpack.c.bf16 %v267_v60, %v266_v59  ;;  %v268_v1 = vld [vmem:[%s4655_s16 + $0xa0] sm:$0xff]  ;;  %v269_v3 = vld [vmem:[%s4655_s16 + $0xa8] sm:$0xff] }
  0x29   : > { %v337_v0 = vpack.c.bf16 %v299_v62, %v298_v61  ;;  %v300_v4 = vld [vmem:[%s4655_s16 + $0x1a0] sm:$0xff]  ;;  %v301_v5 = vld [vmem:[%s4655_s16 + $0x1a8] sm:$0xff]  ;;  %v322_v6 = vpack.c.bf16 %v269_v3, %v268_v1  ;;  %v270_v8 = vld [vmem:[%s4655_s16 + $0xb0] sm:$0xff] }
  0x2a   : > { %v338_v7 = vpack.c.bf16 %v301_v5, %v300_v4  ;;  %v271_v9 = vld [vmem:[%s4655_s16 + $0xb8] sm:$0xff]  ;;  %v302_v10 = vld [vmem:[%s4655_s16 + $0x1b0] sm:$0xff]  ;;  %v272_v14 = vld [vmem:[%s4655_s16 + $0xc0] sm:$0xff] }
  0x2b   : > { %v303_v11 = vld [vmem:[%s4655_s16 + $0x1b8] sm:$0xff]  ;;  %v323_v12 = vpack.c.bf16 %v271_v9, %v270_v8  ;;  %v273_v15 = vld [vmem:[%s4655_s16 + $0xc8] sm:$0xff]  ;;  %v304_v16 = vld [vmem:[%s4655_s16 + $0x1c0] sm:$0xff] }
  0x2c   : > { %v339_v13 = vpack.c.bf16 %v303_v11, %v302_v10  ;;  %v305_v17 = vld [vmem:[%s4655_s16 + $0x1c8] sm:$0xff]  ;;  %v324_v18 = vpack.c.bf16 %v273_v15, %v272_v14  ;;  %v274_v20 = vld [vmem:[%s4655_s16 + $0xd0] sm:$0xff]  ;;  %v307_v23 = vld [vmem:[%s4655_s16 + $0x1d8] sm:$0xff] }
  0x2d   : > { %v340_v19 = vpack.c.bf16 %v305_v17, %v304_v16  ;;  %v276_v26 = vld [vmem:[%s4655_s16 + $0xe0] sm:$0xff]  ;;  %v309_v29 = vld [vmem:[%s4655_s16 + $0x1e8] sm:$0xff]  ;;  %v278_v32 = vld [vmem:[%s4655_s16 + $0xf0] sm:$0xff] }
  0x2e   : > { %3501 = vmatmul.mubr.msk.bf16.gmra.mrb[8].mxu0 %vm380_vm0, %v314_v21  ;;  %v275_v21 = vld [vmem:[%s4655_s16 + $0xd8] sm:$0xff]  ;;  %v348_v47 = vld [vmem:[%s7603_s2] sm:$0x3] }
  0x2f   : > { %3517 = vmatmul.mubr.msk.bf16.gmra.mrb[8].mxu1 %vm380_vm0, %v330_v22  ;;  %539 = vmatprep.mubr.bf16.mxu0 %v4570_v2  ;;  %v306_v22 = vld [vmem:[%s4655_s16 + $0x1d0] sm:$0xff]  ;;  %v325_v24 = vpack.c.bf16 %v275_v21, %v274_v20  ;;  %v311_v35 = vld [vmem:[%s4655_s16 + $0x1f8] sm:$0xff] }
  0x30   : > { %699 = vmatprep.mubr.bf16.mxu1 %v4570_v2  ;;  %v341_v25 = vpack.c.bf16 %v307_v23, %v306_v22 }
  0x36   : > { %3502 = vmatmul.mubr.msk.bf16.gmra.mrb[12].mxu0 %vm380_vm0, %v315_v27  ;;  %v277_v27 = vld [vmem:[%s4655_s16 + $0xe8] sm:$0xff] }
  0x37   : > { %3518 = vmatmul.mubr.msk.bf16.gmra.mrb[12].mxu1 %vm380_vm0, %v331_v28  ;;  %549 = vmatprep.mubr.bf16.mxu0 %v4570_v2  ;;  %v308_v28 = vld [vmem:[%s4655_s16 + $0x1e0] sm:$0xff]  ;;  %v326_v30 = vpack.c.bf16 %v277_v27, %v276_v26 }
  0x38   : > { %709 = vmatprep.mubr.bf16.mxu1 %v4570_v2  ;;  %v342_v31 = vpack.c.bf16 %v309_v29, %v308_v28 }
  0x3e   : > { %3503 = vmatmul.mubr.msk.bf16.gmra.mrb[16].mxu0 %vm380_vm0, %v316_v33  ;;  %v279_v33 = vld [vmem:[%s4655_s16 + $0xf8] sm:$0xff] }
  0x3f   : > { %3519 = vmatmul.mubr.msk.bf16.gmra.mrb[16].mxu1 %vm380_vm0, %v332_v34  ;;  %559 = vmatprep.mubr.bf16.mxu0 %v4570_v2  ;;  %v310_v34 = vld [vmem:[%s4655_s16 + $0x1f0] sm:$0xff]  ;;  %v327_v36 = vpack.c.bf16 %v279_v33, %v278_v32 }
  0x40   : > { %719 = vmatprep.mubr.bf16.mxu1 %v4570_v2  ;;  %v343_v37 = vpack.c.bf16 %v311_v35, %v310_v34 }
  0x46   : > { %3504 = vmatmul.mubr.msk.bf16.gmra.mrb[20].mxu0 %vm380_vm0, %v317_v39  ;;  %v4783_v39 = vshrl.u32 %v350_v38, 7 }
  0x47   : > { %3520 = vmatmul.mubr.msk.bf16.gmra.mrb[20].mxu1 %vm380_vm0, %v333_v40  ;;  %569 = vmatprep.mubr.bf16.mxu0 %v4570_v2 }
  0x48   : > { %729 = vmatprep.mubr.bf16.mxu1 %v4570_v2  ;;  %v7607_v48 = vsub.s32 1, %v4783_v39 }
  0x4e   : > { %3505 = vmatmul.mubr.msk.bf16.gmra.mrb[24].mxu0 %vm380_vm0, %v318_v45  ;;  %v7608_v45 = vsub.s32 0, %v4783_v39 }
  0x4f   : > { %3521 = vmatmul.mubr.msk.bf16.gmra.mrb[24].mxu1 %vm380_vm0, %v334_v46  ;;  %579 = vmatprep.mubr.bf16.mxu0 %v4570_v2 }
  0x50   : > { %739 = vmatprep.mubr.bf16.mxu1 %v4570_v2  ;;  %v4794_v50 = vrot.slane %v348_v47, %v7608_v45 }
  0x56   : > { %3506 = vmatmul.mubr.msk.bf16.gmra.mrb[28].mxu0 %vm380_vm0, %v319_v51  ;;  %v4798_v51 = vrot.slane %v348_v47, %v7607_v48 }
  0x57   : > { %3522 = vmatmul.mubr.msk.bf16.gmra.mrb[28].mxu1 %vm380_vm0, %v335_v52  ;;  %589 = vmatprep.mubr.bf16.mxu0 %v4570_v2 }
  0x58   : > { %749 = vmatprep.mubr.bf16.mxu1 %v4570_v2 }
  0x5e   : > { %3507 = vmatmul.mubr.msk.bf16.gmra.mrb[32].mxu0 %vm380_vm0, %v320_v57 }
  0x5f   : > { %3523 = vmatmul.mubr.msk.bf16.gmra.mrb[32].mxu1 %vm380_vm0, %v336_v58  ;;  %599 = vmatprep.mubr.bf16.mxu0 %v4570_v2 }
  0x60   : > { %759 = vmatprep.mubr.bf16.mxu1 %v4570_v2 }
  0x66   : > { %3508 = vmatmul.mubr.msk.bf16.gmra.mrb[36].mxu0 %vm380_vm0, %v321_v63 }
  0x67   : > { %3524 = vmatmul.mubr.msk.bf16.gmra.mrb[36].mxu1 %vm380_vm0, %v337_v0  ;;  %609 = vmatprep.mubr.bf16.mxu0 %v4570_v2 }
  0x68   : > { %769 = vmatprep.mubr.bf16.mxu1 %v4570_v2 }
  0x6e   : > { %3509 = vmatmul.mubr.msk.bf16.gmra.mrb[40].mxu0 %vm380_vm0, %v322_v6 }
  0x6f   : > { %3525 = vmatmul.mubr.msk.bf16.gmra.mrb[40].mxu1 %vm380_vm0, %v338_v7  ;;  %619 = vmatprep.mubr.bf16.mxu0 %v4570_v2 }
  0x70   : > { %779 = vmatprep.mubr.bf16.mxu1 %v4570_v2 }
  0x76   : > { %3510 = vmatmul.mubr.msk.bf16.gmra.mrb[44].mxu0 %vm380_vm0, %v323_v12 }
  0x77   : > { %3526 = vmatmul.mubr.msk.bf16.gmra.mrb[44].mxu1 %vm380_vm0, %v339_v13  ;;  %629 = vmatprep.mubr.bf16.mxu0 %v4570_v2 }
  0x78   : > { %789 = vmatprep.mubr.bf16.mxu1 %v4570_v2 }
  0x7e   : > { %3511 = vmatmul.mubr.msk.bf16.gmra.mrb[48].mxu0 %vm380_vm0, %v324_v18 }
  0x7f   : > { %3527 = vmatmul.mubr.msk.bf16.gmra.mrb[48].mxu1 %vm380_vm0, %v340_v19  ;;  %639 = vmatprep.mubr.bf16.mxu0 %v4570_v2 }
  0x80   : > { %799 = vmatprep.mubr.bf16.mxu1 %v4570_v2 }
  0x86   : > { %3512 = vmatmul.mubr.msk.bf16.gmra.mrb[52].mxu0 %vm380_vm0, %v325_v24 }
  0x87   : > { %3528 = vmatmul.mubr.msk.bf16.gmra.mrb[52].mxu1 %vm380_vm0, %v341_v25  ;;  %649 = vmatprep.mubr.bf16.mxu0 %v4570_v2 }
  0x88   : > { %809 = vmatprep.mubr.bf16.mxu1 %v4570_v2 }
  0x8e   : > { %3513 = vmatmul.mubr.msk.bf16.gmra.mrb[56].mxu0 %vm380_vm0, %v326_v30 }
  0x8f   : > { %3529 = vmatmul.mubr.msk.bf16.gmra.mrb[56].mxu1 %vm380_vm0, %v342_v31  ;;  %659 = vmatprep.mubr.bf16.mxu0 %v4570_v2 }
  0x90   : > { %819 = vmatprep.mubr.bf16.mxu1 %v4570_v2 }
  0x96   : > { %3514 = vmatmul.mubr.msk.bf16.gmra.mrb[60].mxu0 %vm380_vm0, %v327_v36 }
  0x97   : > { %3530 = vmatmul.mubr.msk.bf16.gmra.mrb[60].mxu1 %vm380_vm0, %v343_v37 }
  0xf1   : > { %v511_v40 = vpop.f32.mrb[0].mxu0 }
  0xf2   : > { %v671_v41 = vpop.f32.mrb[0].mxu1  ;;  %v513_v42 = vpop.f32.mrb[1].mxu0  ;;  %v4821_v6 = vadd.f32 %v511_v40, %v4794_v50 }
  0xf3   : > { %v673_v43 = vpop.f32.mrb[1].mxu1  ;;  %v515_v44 = vpop.f32.mrb[2].mxu0  ;;  %v4801_v56 = vadd.f32 %v671_v41, %v4794_v50  ;;  %v4852_v22 = vadd.f32 %v513_v42, %v4798_v51 }
  0xf4   : > { %v675_v46 = vpop.f32.mrb[2].mxu1  ;;  %v517_v2 = vpop.f32.mrb[3].mxu0  ;;  %v4804_v59 = vadd.f32 %v673_v43, %v4798_v51  ;;  %v4807_v62 = vadd.f32 %v515_v44, %v4794_v50  ;;  %v958_v21 = vmul.f32 1.442695, %v4821_v6  ;;  %vm830_vm10 = vcmp.gt.f32.partialorder %v4821_v6, 0.0 }
  0xf5   : > { %v4790_v49 = vpop.f32.mrb[3].mxu1  ;;  %v4810_v63 = vadd.f32 %v517_v2, %v4798_v51  ;;  %v1086_v0 = vmul.f32 1.442695, %v4801_v56  ;;  %v960_v28 = vmul.f32 1.442695, %v4852_v22  ;;  %v4873_v33 = vadd.f32 %v675_v46, %v4794_v50 }
  0xf6   : > { %v1088_v3 = vmul.f32 1.442695, %v4804_v59  ;;  %v962_v7 = vmul.f32 1.442695, %v4807_v62  ;;  %vm894_vm1 = vcmp.gt.f32.partialorder %v4801_v56, 0.0  ;;  %vm895_vm2 = vcmp.gt.f32.partialorder %v4804_v59, 0.0 }
  0xf7   : > { %v964_v10 = vmul.f32 1.442695, %v4810_v63  ;;  %3842 = vpow2.f32 %v1086_v0  ;;  %v1090_v2 = vmul.f32 1.442695, %v4873_v33  ;;  %vm832_vm3 = vcmp.gt.f32.partialorder %v4807_v62, 0.0 }
  0xf8   : > { %3844 = vpow2.f32 %v1088_v3  ;;  %vm833_vm4 = vcmp.gt.f32.partialorder %v4810_v63, 0.0  ;;  %vm831_vm13 = vcmp.gt.f32.partialorder %v4852_v22, 0.0  ;;  %vm896_vm15 = vcmp.gt.f32.partialorder %v4873_v33, 0.0 }
  0xf9   : > { %v521_v52 = vpop.f32.mrb[4].mxu0  ;;  %3846 = vpow2.f32 %v962_v7 }
  0xfa   : > { %v681_v53 = vpop.f32.mrb[4].mxu1  ;;  %v523_v54 = vpop.f32.mrb[5].mxu0  ;;  %v4814_v1 = vadd.f32 %v521_v52, %v4794_v50  ;;  %3848 = vpow2.f32 %v964_v10  ;;  %v4894_v52 = vadd.f32 %v4790_v49, %v4798_v51 }
  0xfb   : > { %v683_v55 = vpop.f32.mrb[5].mxu1  ;;  %v525_v57 = vpop.f32.mrb[6].mxu0  ;;  %v4818_v4 = vadd.f32 %v681_v53, %v4794_v50  ;;  %v4830_v11 = vadd.f32 %v523_v54, %v4798_v51 }
  0xfc   : > { %v685_v58 = vpop.f32.mrb[6].mxu1  ;;  %v527_v60 = vpop.f32.mrb[7].mxu0  ;;  %v966_v14 = vmul.f32 1.442695, %v4814_v1  ;;  %v4838_v15 = vadd.f32 %v683_v55, %v4798_v51  ;;  %v4846_v19 = vadd.f32 %v525_v57, %v4794_v50  ;;  %vm834_vm5 = vcmp.gt.f32.partialorder %v4814_v1, 0.0 }
  0xfd   : > { %v687_v61 = vpop.f32.mrb[7].mxu1  ;;  %v1094_v18 = vmul.f32 1.442695, %v4818_v4  ;;  %v968_v23 = vmul.f32 1.442695, %v4830_v11  ;;  %v4857_v25 = vadd.f32 %v685_v58, %v4794_v50  ;;  %v4864_v29 = vadd.f32 %v527_v60, %v4798_v51 }
  0xfe   : > { %3850 = vpow2.f32 %v966_v14  ;;  %v1096_v24 = vmul.f32 1.442695, %v4838_v15  ;;  %v970_v26 = vmul.f32 1.442695, %v4846_v19  ;;  %v4879_v36 = vadd.f32 %v687_v61, %v4798_v51 }
  0xff   : > { %3852 = vpow2.f32 %v1094_v18  ;;  %v1098_v34 = vmul.f32 1.442695, %v4857_v25  ;;  %v972_v38 = vmul.f32 1.442695, %v4864_v29  ;;  %vm898_vm6 = vcmp.gt.f32.partialorder %v4818_v4, 0.0 }
 0x100   : > { %3854 = vpow2.f32 %v958_v21  ;;  %v1100_v53 = vmul.f32 1.442695, %v4879_v36  ;;  %vm835_vm7 = vcmp.gt.f32.partialorder %v4830_v11, 0.0  ;;  %vm899_vm8 = vcmp.gt.f32.partialorder %v4838_v15, 0.0 }
 0x101   : > { %v531_v5 = vpop.f32.mrb[8].mxu0  ;;  %3856 = vpow2.f32 %v968_v23  ;;  %v3843_v37 = vpop.eup %3842  ;;  %vm836_vm9 = vcmp.gt.f32.partialorder %v4846_v19, 0.0  ;;  %vm900_vm11 = vcmp.gt.f32.partialorder %v4857_v25, 0.0  ;;  %vm837_vm12 = vcmp.gt.f32.partialorder %v4864_v29, 0.0 }
 0x102   : > { %v4824_v8 = vpop.f32.mrb[8].mxu1  ;;  %v4826_v9 = vpop.f32.mrb[9].mxu0  ;;  %3858 = vpow2.f32 %v1096_v24  ;;  %v4887_v43 = vadd.f32 %v531_v5, %v4794_v50  ;;  %v3595_v60 = vadd.f32 -1.0, %v3843_v37  ;;  %v1092_v24 = vmul.f32 1.442695, %v4894_v52 }
 0x103   : > { %v4832_v12 = vpop.f32.mrb[9].mxu1  ;;  %v4834_v13 = vpop.f32.mrb[10].mxu0  ;;  %3860 = vpow2.f32 %v970_v26  ;;  %v4912_v7 = vadd.f32 %v4824_v8, %v4794_v50  ;;  %vm901_vm14 = vcmp.gt.f32.partialorder %v4879_v36, 0.0  ;;  %vm897_vm0 = vcmp.gt.f32.partialorder %v4894_v52, 0.0 }
 0x104   : > { %v4840_v16 = vpop.f32.mrb[10].mxu1  ;;  %v4842_v17 = vpop.f32.mrb[11].mxu0  ;;  %3862 = vpow2.f32 %v960_v28  ;;  %v974_v0 = vmul.f32 1.442695, %v4887_v43 }
 0x105   : > { %v4848_v20 = vpop.f32.mrb[11].mxu1  ;;  %v3845_v42 = vpop.eup %3844  ;;  %3864 = vpow2.f32 %v1098_v34  ;;  %v1102_v48 = vmul.f32 1.442695, %v4912_v7 }
 0x106   : > { %v3847_v46 = vpop.eup %3846  ;;  %3866 = vpow2.f32 %v972_v38  ;;  %v3596_v61 = vadd.f32 -1.0, %v3845_v42  ;;  %v1406_v42 = vmul.f32 1.6732632, %v3595_v60 }
 0x107   : > { %v3849_v47 = vpop.eup %3848  ;;  %3868 = vpow2.f32 %v1090_v2  ;;  %v3533_v21 = vadd.f32 -1.0, %v3847_v46 }
 0x108   : > { %v3851_v55 = vpop.eup %3850  ;;  %v3534_v23 = vadd.f32 -1.0, %v3849_v47  ;;  %3870 = vpow2.f32 %v1100_v53  ;;  %v1407_v2 = vmul.f32 1.6732632, %v3596_v61 }
 0x109   : > { %v4860_v27 = vpop.f32.mrb[12].mxu0  ;;  %v3853_v58 = vpop.eup %3852  ;;  %v3535_v37 = vadd.f32 -1.0, %v3851_v55  ;;  %3872 = vpow2.f32 %v974_v0  ;;  %v4932_v55 = vadd.f32 %v4826_v9, %v4798_v51  ;;  %v1344_v45 = vmul.f32 1.6732632, %v3533_v21 }
 0x10a   : > { %v4866_v30 = vpop.f32.mrb[12].mxu1  ;;  %v4868_v31 = vpop.f32.mrb[13].mxu0  ;;  %v3599_v8 = vadd.f32 -1.0, %v3853_v58  ;;  %v1345_v58 = vmul.f32 1.6732632, %v3534_v23  ;;  %3874 = vpow2.f32 %v1092_v24  ;;  %v1535_v21 = vsel %vm895_vm2, %v4804_v59, %v1407_v2 }
 0x10b   : > { %v4870_v32 = vpop.f32.mrb[13].mxu1  ;;  %v4876_v35 = vpop.f32.mrb[14].mxu0  ;;  %v1346_v0 = vmul.f32 1.6732632, %v3535_v37  ;;  %3876 = vpow2.f32 %v1102_v48  ;;  %v4954_v37 = vadd.f32 %v4834_v13, %v4794_v50  ;;  %v1472_v59 = vsel %vm832_vm3, %v4807_v62, %v1344_v45 }
 0x10c   : > { %v4882_v40 = vpop.f32.mrb[14].mxu1  ;;  %v4884_v41 = vpop.f32.mrb[15].mxu0  ;;  %vm902_vm2 = vcmp.gt.f32.partialorder %v4912_v7, 0.0  ;;  %vm839_vm3 = vcmp.gt.f32.partialorder %v4932_v55, 0.0 }
 0x10d   : > { %v4889_v44 = vpop.f32.mrb[15].mxu1  ;;  %v3855_v5 = vpop.eup %3854 }
 0x10e   : > { %v3857_v18 = vpop.eup %3856  ;;  %v4926_v47 = vadd.f32 -1.0, %v3855_v5 }
 0x10f   : > { %v3859_v34 = vpop.eup %3858  ;;  %v3536_v53 = vadd.f32 -1.0, %v3857_v18  ;;  %v4938_v18 = vadd.f32 %v4832_v12, %v4798_v51  ;;  %v976_v12 = vmul.f32 1.442695, %v4932_v55 }
 0x110   : > { %v3861_v38 = vpop.eup %3860  ;;  %v3600_v60 = vadd.f32 -1.0, %v3859_v34 }
 0x111   : > { %v4897_v54 = vpop.f32.mrb[16].mxu0  ;;  %v3863_v46 = vpop.eup %3862  ;;  %v3537_v5 = vadd.f32 -1.0, %v3861_v38  ;;  %v1347_v34 = vmul.f32 1.6732632, %v3536_v53  ;;  %3878 = vpow2.f32 %v976_v12  ;;  %v7620_v12 = vsub.s32 0, %v4783_v39 }
 0x112   : > { %v4901_v57 = vpop.f32.mrb[16].mxu1  ;;  %v4904_v3 = vpop.f32.mrb[17].mxu0  ;;  %v4943_v9 = vadd.f32 -1.0, %v3863_v46  ;;  %v1411_v38 = vmul.f32 1.6732632, %v3600_v60  ;;  %v1474_v46 = vsel %vm834_vm5, %v4814_v1, %v1346_v0  ;;  %vm840_vm5 = vcmp.gt.f32.partialorder %v4954_v37, 0.0 }
 0x113   : > { %v4906_v49 = vpop.f32.mrb[17].mxu1  ;;  %v4914_v10 = vpop.f32.mrb[18].mxu0  ;;  %v1348_v62 = vmul.f32 1.6732632, %v3537_v5  ;;  %v1475_v5 = vsel %vm835_vm7, %v4830_v11, %v1347_v34 }
 0x114   : > { %v4916_v14 = vpop.f32.mrb[18].mxu1  ;;  %v4919_v26 = vpop.f32.mrb[19].mxu0 }
 0x115   : > { %7610 = vst [vmem:[#allocation4_spill] sm:$0xff] %v4916_v14  ;;  %7611 = vst [vmem:[#allocation5_spill] sm:$0xff] %v4919_v26  ;;  %v4921_v28 = vpop.f32.mrb[19].mxu1  ;;  %v1410_v26 = vmul.f32 1.6732632, %v3599_v8  ;;  %v1534_v14 = vsel %vm894_vm1, %v4801_v56, %v1406_v42  ;;  %v1473_v8 = vsel %vm833_vm4, %v4810_v63, %v1345_v58  ;;  %v1476_v11 = vsel %vm836_vm9, %v4846_v19, %v1348_v62 }
 0x116   : > { %7612 = vst [vmem:[#allocation6_spill] sm:$0xff] %v4921_v28  ;;  %v3865_v28 = vpop.eup %3864  ;;  %v1104_v63 = vmul.f32 1.442695, %v4938_v18  ;;  %v4994_v0 = vmul.f32 1.050701, %v1473_v8  ;;  %v5031_v62 = vadd.f32 %v4842_v17, %v4798_v51  ;;  %vm838_vm1 = vcmp.gt.f32.partialorder %v4887_v43, 0.0 }
 0x117   : > { %v3867_v24 = vpop.eup %3866  ;;  %v3601_v48 = vadd.f32 -1.0, %v3865_v28  ;;  %v1538_v45 = vsel %vm898_vm6, %v4818_v4, %v1410_v26  ;;  %v1726_v28 = vld [vmem:[%s7604_s3] sm:$0x3]  ;;  %v4992_v26 = vmul.f32 1.050701, %v1472_v59  ;;  %vm903_vm4 = vcmp.gt.f32.partialorder %v4938_v18, 0.0 }
 0x118   : > { %v3869_v2 = vpop.eup %3868  ;;  %v3538_v1 = vadd.f32 -1.0, %v3867_v24  ;;  %v1539_v24 = vsel %vm899_vm8, %v4838_v15, %v1411_v38  ;;  %3880 = vpow2.f32 %v1104_v63  ;;  %v5019_v15 = vadd.f32 %v4840_v16, %v4794_v50 }
 0x119   : > { %v4934_v61 = vpop.f32.mrb[20].mxu0  ;;  %v3871_v60 = vpop.eup %3870  ;;  %v1412_v34 = vmul.f32 1.6732632, %v3601_v48  ;;  %v5023_v38 = vrot.slane %v1726_v28, %v7620_v12  ;;  %v1342_v63 = vmul.f32 1.6732632, %v4926_v47  ;;  %vm841_vm7 = vcmp.gt.f32.partialorder %v5031_v62, 0.0 }
 0x11a   : > { %v4949_v23 = vpop.f32.mrb[20].mxu1  ;;  %v4956_v56 = vpop.f32.mrb[21].mxu0  ;;  %v3602_v8 = vadd.f32 -1.0, %v3871_v60  ;;  %v5041_v12 = vmul.f32 1.050701, %v1476_v11  ;;  %vm904_vm6 = vcmp.gt.f32.partialorder %v5019_v15, 0.0 }
 0x11b   : > { %7613 = vst [vmem:[#allocation7_spill] sm:$0xff] %v4956_v56  ;;  %v4966_v42 = vpop.f32.mrb[21].mxu1  ;;  %v4968_v13 = vpop.f32.mrb[22].mxu0  ;;  %v1349_v56 = vmul.f32 1.6732632, %v3538_v1  ;;  %v3597_v1 = vadd.f32 -1.0, %v3869_v2  ;;  %v1540_v47 = vsel %vm900_vm11, %v4857_v25, %v1412_v34  ;;  %v1470_v2 = vsel %vm830_vm10, %v4821_v6, %v1342_v63 }
 0x11c   : > { %7614 = vst [vmem:[#allocation8_spill] sm:$0xff] %v4966_v42  ;;  %7615 = vst [vmem:[#allocation9_spill] sm:$0xff] %v4968_v13  ;;  %v4980_v53 = vpop.f32.mrb[22].mxu1  ;;  %v4982_v58 = vpop.f32.mrb[23].mxu0  ;;  %v4984_v13 = vmul.f32 1.050701, %v1534_v14  ;;  %v5070_v6 = vadd.f32 %v4860_v27, %v4794_v50 }
 0x11d   : > { %7616 = vst [vmem:[#allocation10_spill] sm:$0xff] %v4980_v53  ;;  %7617 = vst [vmem:[#allocation11_spill] sm:$0xff] %v4982_v58  ;;  %v4986_v42 = vmul.f32 1.050701, %v1535_v21  ;;  %v4989_v4 = vpop.f32.mrb[23].mxu1  ;;  %v3873_v58 = vpop.eup %3872  ;;  %v1477_v25 = vsel %vm837_vm12, %v4864_v29, %v1349_v56 }
 0x11e   : > { %7618 = vst [vmem:[#allocation12_spill] sm:$0xff] %v4989_v4  ;;  %v978_v14 = vmul.f32 1.442695, %v4954_v37  ;;  %v5000_v21 = vmul.f32 1.050701, %v1474_v46  ;;  %v3539_v48 = vadd.f32 -1.0, %v3873_v58  ;;  %v5045_v58 = vadd.f32 %v4848_v20, %v4798_v51 }
 0x11f   : > { %v5002_v53 = vmul.f32 1.050701, %v1538_v45  ;;  %v3875_v45 = vpop.eup %3874  ;;  %v5015_v4 = vmul.f32 1.050701, %v1475_v5  ;;  %v5039_v5 = vmul.f32 1.050701, %v1539_v24 }
 0x120   : > { %3882 = vpow2.f32 %v978_v14  ;;  %v3877_v17 = vpop.eup %3876  ;;  %v3598_v24 = vadd.f32 -1.0, %v3875_v45  ;;  %v1106_v20 = vmul.f32 1.442695, %v5019_v15  ;;  %v1598_v11 = vmul.f32 1.050701, %v1470_v2 }
 0x121   : > { %v5008_v59 = vpop.f32.mrb[24].mxu0  ;;  %v980_v34 = vmul.f32 1.442695, %v5031_v62  ;;  %v3603_v45 = vadd.f32 -1.0, %v3877_v17  ;;  %v1408_v27 = vmul.f32 1.6732632, %v3597_v1 }
 0x122   : > { %7619 = vst [vmem:[#allocation13_spill] sm:$0xff] %v5008_v59  ;;  %v5013_v46 = vpop.f32.mrb[24].mxu1  ;;  %v5025_v59 = vpop.f32.mrb[25].mxu0  ;;  %v5086_v17 = vmul.f32 1.050701, %v1477_v25  ;;  %3884 = vpow2.f32 %v1106_v20  ;;  %vm905_vm8 = vcmp.gt.f32.partialorder %v5045_v58, 0.0 }
 0x123   : > { %7621 = vst [vmem:[#allocation14_spill] sm:$0xff] %v5025_v59  ;;  %v5027_v19 = vpop.f32.mrb[25].mxu1  ;;  %v5034_v60 = vpop.f32.mrb[26].mxu0  ;;  %3886 = vpow2.f32 %v980_v34  ;;  %v982_v2 = vmul.f32 1.442695, %v5070_v6  ;;  %vm842_vm9 = vcmp.gt.f32.partialorder %v5070_v6, 0.0 }
 0x124   : > { %7622 = vst [vmem:[#allocation15_spill] sm:$0xff] %v5027_v19  ;;  %7623 = vst [vmem:[#allocation16_spill] sm:$0xff] %v5034_v60  ;;  %v5036_v16 = vpop.f32.mrb[26].mxu1  ;;  %v5047_v14 = vpop.f32.mrb[27].mxu0  ;;  %v1413_v60 = vmul.f32 1.6732632, %v3602_v8 }
 0x125   : > { %7624 = vst [vmem:[#allocation17_spill] sm:$0xff] %v5036_v16  ;;  %7625 = vst [vmem:[#allocation18_spill] sm:$0xff] %v5047_v14  ;;  %v1343_v16 = vmul.f32 1.6732632, %v4943_v9  ;;  %v7626_v14 = vsub.s32 1, %v4783_v39  ;;  %v5062_v59 = vpop.f32.mrb[27].mxu1 }
 0x126   : > { %v1350_v9 = vmul.f32 1.6732632, %v3539_v48  ;;  %v5072_v8 = vmul.f32 1.050701, %v1540_v47  ;;  %v1108_v39 = vmul.f32 1.442695, %v5045_v58  ;;  %v1541_v29 = vsel %vm901_vm14, %v4879_v36, %v1413_v60 }
 0x127   : > { %v5060_v19 = vrot.slane %v1726_v28, %v7626_v14  ;;  %v1471_v28 = vsel %vm831_vm13, %v4852_v22, %v1343_v16  ;;  %v3879_v14 = vpop.eup %3878  ;;  %v5091_v22 = vadd.f32 %v4866_v30, %v4794_v50  ;;  %v1738_v16 = vmul.f32 %v5023_v38, %v1598_v11 }
 0x128   : > { %v1599_v56 = vmul.f32 1.050701, %v1471_v28  ;;  %v3881_v60 = vpop.eup %3880  ;;  %v1478_v1 = vsel %vm838_vm1, %v4887_v43, %v1350_v9  ;;  %v1409_v25 = vmul.f32 1.6732632, %v3598_v24  ;;  %v5102_v20 = vmul.f32 1.050701, %v1541_v29 }
 0x129   : > { %v5078_v63 = vpop.f32.mrb[28].mxu0  ;;  %v5106_v30 = vadd.f32 %v4868_v31, %v4798_v51  ;;  %v3540_v9 = vadd.f32 -1.0, %v3879_v14  ;;  %3888 = vpow2.f32 %v1108_v39  ;;  %v5117_v24 = vadd.f32 %v4870_v32, %v4798_v51 }
 0x12a   : > { %v5084_v48 = vpop.f32.mrb[28].mxu1  ;;  %v5094_v47 = vpop.f32.mrb[29].mxu0  ;;  %v1739_v11 = vmul.f32 %v5060_v19, %v1599_v56  ;;  %v1536_v31 = vsel %vm896_vm15, %v4873_v33, %v1408_v27  ;;  %v3604_v29 = vadd.f32 -1.0, %v3881_v60  ;;  %v5128_v56 = vadd.f32 %v4876_v35, %v4794_v50 }
 0x12b   : > { %7627 = vst [vmem:[#allocation19_spill] sm:$0xff] %v5084_v48  ;;  %7628 = vst [vmem:[#allocation20_spill] sm:$0xff] %v5094_v47  ;;  %v5096_v36 = vpop.f32.mrb[29].mxu1  ;;  %v5100_v28 = vpop.f32.mrb[30].mxu0  ;;  %v1414_v48 = vmul.f32 1.6732632, %v3603_v45  ;;  %3890 = vpow2.f32 %v982_v2  ;;  %v5134_v39 = vadd.f32 %v4882_v40, %v4794_v50  ;;  %v1537_v33 = vsel %vm897_vm0, %v4894_v52, %v1409_v25 }
 0x12c   : > { %7629 = vst [vmem:[#allocation21_spill] sm:$0xff] %v5096_v36  ;;  %v5109_v47 = vpop.f32.mrb[30].mxu1  ;;  %v5111_v36 = vpop.f32.mrb[31].mxu0  ;;  %v5124_v45 = vmul.f32 1.050701, %v1478_v1  ;;  %v1866_v14 = vadd.f32 %v1739_v11, %v1738_v16  ;;  %v5142_v35 = vadd.f32 %v4884_v41, %v4798_v51  ;;  %v5147_v40 = vadd.f32 %v4889_v44, %v4798_v51 }
 0x12d   : > { %7630 = vst [vmem:[#allocation22_spill] sm:$0xff] %v5111_v36  ;;  %v3883_v43 = vpop.eup %3882  ;;  %v5122_v34 = vpop.f32.mrb[31].mxu1  ;;  %v1110_v32 = vmul.f32 1.442695, %v5091_v22  ;;  %v984_v60 = vmul.f32 1.442695, %v5106_v30  ;;  %v1542_v41 = vsel %vm902_vm2, %v4912_v7, %v1414_v48 }
 0x12e   : > { %7631 = vst [vmem:[#allocation23_spill] sm:$0xff] %v5122_v34  ;;  %v3541_v27 = vadd.f32 -1.0, %v3883_v43  ;;  %1867 = vadd.xlane.f32.xlu0 %v1866_v14  ;;  %v1664_v16 = vmul.f32 1.050701, %v1536_v31  ;;  %v1351_v1 = vmul.f32 1.6732632, %v3540_v9  ;;  %v3885_v14 = vpop.eup %3884 }
 0x12f   : > { %v1112_v2 = vmul.f32 1.442695, %v5117_v24  ;;  %v1665_v11 = vmul.f32 1.050701, %v1537_v33  ;;  %v1415_v34 = vmul.f32 1.6732632, %v3604_v29  ;;  %3892 = vpow2.f32 %v1110_v32  ;;  %v3887_v48 = vpop.eup %3886 }
 0x130   : > { %v986_v52 = vmul.f32 1.442695, %v5128_v56  ;;  %v1804_v25 = vmul.f32 %v5023_v38, %v1664_v16  ;;  %v1114_v9 = vmul.f32 1.442695, %v5134_v39  ;;  %v1352_v33 = vmul.f32 1.6732632, %v3541_v27 }
 0x131   : > { %v5151_v43 = vpop.f32.mrb[32].mxu0  ;;  %v1805_v44 = vmul.f32 %v5060_v19, %v1665_v11  ;;  %3894 = vpow2.f32 %v984_v60  ;;  %v988_v16 = vmul.f32 1.442695, %v5142_v35  ;;  %v1116_v32 = vmul.f32 1.442695, %v5147_v40 }
 0x132   : > { %7632 = vst [vmem:[#allocation24_spill] sm:$0xff] %v5151_v43  ;;  %v5153_v36 = vpop.f32.mrb[32].mxu1  ;;  %v5160_v31 = vpop.f32.mrb[33].mxu0  ;;  %3896 = vpow2.f32 %v1112_v2  ;;  %v1543_v60 = vsel %vm903_vm4, %v4938_v18, %v1415_v34  ;;  %v5186_v2 = vadd.f32 %v4897_v54, %v4794_v50  ;;  %v5195_v18 = vadd.f32 %v4901_v57, %v4794_v50 }
 0x133   : > { %7633 = vst [vmem:[#allocation25_spill] sm:$0xff] %v5153_v36  ;;  %7634 = vst [vmem:[#allocation26_spill] sm:$0xff] %v5160_v31  ;;  %v5162_v29 = vpop.f32.mrb[33].mxu1  ;;  %v1802_v36 = vmul.f32 %v5023_v38, %v4984_v13  ;;  %v5167_v43 = vpop.f32.mrb[34].mxu0  ;;  %v1965_v11 = vadd.f32 %v1805_v44, %v1804_v25  ;;  %v1479_v13 = vsel %vm839_vm3, %v4932_v55, %v1351_v1  ;;  %3898 = vpow2.f32 %v986_v52 }
 0x134   : > { %7635 = vst [vmem:[#allocation27_spill] sm:$0xff] %v5162_v29  ;;  %v5169_v7 = vpop.f32.mrb[34].mxu1  ;;  %v1803_v29 = vmul.f32 %v5060_v19, %v4986_v42  ;;  %v5174_v31 = vpop.f32.mrb[35].mxu0  ;;  %v5188_v44 = vmul.f32 1.050701, %v1542_v41  ;;  %v3605_v42 = vadd.f32 -1.0, %v3885_v14  ;;  %3900 = vpow2.f32 %v1114_v9 }
 0x135   : > { %7636 = vst [vmem:[#allocation28_spill] sm:$0xff] %v5174_v31  ;;  %v5176_v27 = vpop.f32.mrb[35].mxu1  ;;  %v3889_v25 = vpop.eup %3888  ;;  %1966 = vadd.xlane.f32.xlu1 %v1965_v11  ;;  %v1480_v55 = vsel %vm840_vm5, %v4954_v37, %v1352_v33  ;;  %v3542_v1 = vadd.f32 -1.0, %v3887_v48  ;;  %3902 = vpow2.f32 %v988_v16  ;;  %v5199_v52 = vmul.f32 1.050701, %v1479_v13 }
 0x136   : > { %7637 = vst [vmem:[#allocation29_spill] sm:$0xff] %v5176_v27  ;;  %v1962_v27 = vadd.f32 %v1803_v29, %v1802_v36  ;;  %v3891_v54 = vpop.eup %3890  ;;  %v5201_v41 = vmul.f32 1.050701, %v1543_v60  ;;  %3904 = vpow2.f32 %v1116_v32  ;;  %v3606_v37 = vadd.f32 -1.0, %v3889_v25 }
 0x137   : > { %v990_v29 = vmul.f32 1.442695, %v5186_v2  ;;  %v5213_v33 = vmul.f32 1.050701, %v1480_v55  ;;  %v1416_v16 = vmul.f32 1.6732632, %v3605_v42  ;;  %v5223_v13 = vadd.f32 %v4904_v3, %v4798_v51 }
 0x138   : > { %1963 = vadd.xlane.f32.xlu0 %v1962_v27  ;;  %v1353_v11 = vmul.f32 1.6732632, %v3542_v1  ;;  %v1118_v27 = vmul.f32 1.442695, %v5195_v18  ;;  %v3543_v55 = vadd.f32 -1.0, %v3891_v54  ;;  %v1742_v42 = vmul.f32 %v5023_v38, %v5000_v21 }
 0x139   : > { %v5197_v34 = vpop.f32.mrb[36].mxu0  ;;  %v3893_v25 = vpop.eup %3892  ;;  %v1740_v1 = vmul.f32 %v5023_v38, %v4992_v26  ;;  %3906 = vpow2.f32 %v990_v29  ;;  %v5236_v3 = vadd.f32 %v4906_v49, %v4798_v51  ;;  %v5243_v21 = vadd.f32 %v4914_v10, %v4794_v50 }
 0x13a   : > { %7638 = vst [vmem:[#allocation30_spill] sm:$0xff] %v5197_v34  ;;  %v5203_v36 = vpop.f32.mrb[36].mxu1  ;;  %v5205_v9 = vpop.f32.mrb[37].mxu0  ;;  %v1744_v26 = vmul.f32 %v5023_v38, %v5041_v12  ;;  %3908 = vpow2.f32 %v1118_v27  ;;  %v992_v49 = vmul.f32 1.442695, %v5223_v13  ;;  %v1807_v27 = vmul.f32 %v5060_v19, %v5039_v5 }
 0x13b   : > { %7639 = vst [vmem:[#allocation31_spill] sm:$0xff] %v5203_v36  ;;  %7640 = vst [vmem:[#allocation32_spill] sm:$0xff] %v5205_v9  ;;  %v5209_v57 = vpop.f32.mrb[37].mxu1  ;;  %v5211_v14 = vpop.f32.mrb[38].mxu0  ;;  %vm906_vm10 = vcmp.gt.f32.partialorder %v5091_v22, 0.0  ;;  %vm843_vm11 = vcmp.gt.f32.partialorder %v5106_v30, 0.0 }
 0x13c   : > { %7641 = vst [vmem:[#allocation33_spill] sm:$0xff] %v5209_v57  ;;  %7642 = vst [vmem:[#allocation34_spill] sm:$0xff] %v5211_v14  ;;  %v5215_v48 = vpop.f32.mrb[38].mxu1  ;;  %v5217_v32 = vpop.f32.mrb[39].mxu0  ;;  %v1417_v14 = vmul.f32 1.6732632, %v3606_v37  ;;  %v1745_v37 = vmul.f32 %v5060_v19, %v5086_v17  ;;  %v1806_v17 = vmul.f32 %v5023_v38, %v5002_v53  ;;  %3910 = vpow2.f32 %v992_v49 }
 0x13d   : > { %7643 = vst [vmem:[#allocation35_spill] sm:$0xff] %v5215_v48  ;;  %7644 = vst [vmem:[#allocation36_spill] sm:$0xff] %v5217_v32  ;;  %v5225_v60 = vpop.f32.mrb[39].mxu1  ;;  %v1743_v32 = vmul.f32 %v5060_v19, %v5015_v4  ;;  %v3895_v48 = vpop.eup %3894  ;;  %vm907_vm12 = vcmp.gt.f32.partialorder %v5117_v24, 0.0  ;;  %vm844_vm13 = vcmp.gt.f32.partialorder %v5128_v56, 0.0  ;;  %vm908_vm14 = vcmp.gt.f32.partialorder %v5134_v39, 0.0 }
 0x13e   : > { %7645 = vst [vmem:[#allocation37_spill] sm:$0xff] %v5225_v60  ;;  %v1741_v60 = vmul.f32 %v5060_v19, %v4994_v0  ;;  %v3897_v54 = vpop.eup %3896  ;;  %v7646_v0 = vld [vmem:[#allocation4_spill] sm:$0xff]  ;;  %v1875_v12 = vadd.f32 %v1745_v37, %v1744_v26  ;;  %v7651_v26 = vld [vmem:[#allocation6_spill] sm:$0xff]  ;;  %vm845_vm15 = vcmp.gt.f32.partialorder %v5142_v35, 0.0  ;;  %vm909_vm0 = vcmp.gt.f32.partialorder %v5147_v40, 0.0 }
 0x13f   : > { %v1872_v4 = vadd.f32 %v1743_v32, %v1742_v42  ;;  %v3899_v29 = vpop.eup %3898  ;;  %v5252_v57 = vadd.f32 %v7646_v0, %v4794_v50  ;;  %v7648_v32 = vld [vmem:[#allocation5_spill] sm:$0xff]  ;;  %v5275_v53 = vadd.f32 %v7651_v26, %v4798_v51  ;;  %vm846_vm1 = vcmp.gt.f32.partialorder %v5186_v2, 0.0 }
 0x140   : > { %v1869_v9 = vadd.f32 %v1741_v60, %v1740_v1  ;;  %v3901_v10 = vpop.eup %3900  ;;  %v5258_v42 = vadd.f32 %v7648_v32, %v4798_v51  ;;  %v1544_v1 = vsel %vm904_vm6, %v5019_v15, %v1416_v16  ;;  %v3607_v32 = vadd.f32 -1.0, %v3893_v25 }
 0x141   : > { %v5254_v36 = vpop.f32.mrb[40].mxu0  ;;  %1873 = vadd.xlane.f32.xlu1 %v1872_v4  ;;  %v3903_v60 = vpop.eup %3902  ;;  %v1120_v4 = vmul.f32 1.442695, %v5236_v3  ;;  %v3608_v15 = vadd.f32 -1.0, %v3897_v54  ;;  %v994_v16 = vmul.f32 1.442695, %v5243_v21  ;;  %v1968_v25 = vadd.f32 %v1807_v27, %v1806_v17 }
 0x142   : > { %7647 = vst [vmem:[#allocation4_spill] sm:$0xff] %v5254_v36  ;;  %v5264_v34 = vpop.f32.mrb[40].mxu1  ;;  %v5266_v0 = vpop.f32.mrb[41].mxu0  ;;  %1870 = vadd.xlane.f32.xlu0 %v1869_v9  ;;  %v3609_v36 = vadd.f32 -1.0, %v3901_v10  ;;  %v1481_v54 = vsel %vm841_vm7, %v5031_v62, %v1353_v11  ;;  %v3546_v31 = vadd.f32 -1.0, %v3903_v60  ;;  %vm910_vm2 = vcmp.gt.f32.partialorder %v5195_v18, 0.0 }
 0x143   : > { %7649 = vst [vmem:[#allocation5_spill] sm:$0xff] %v5264_v34  ;;  %7650 = vst [vmem:[#allocation38_spill] sm:$0xff] %v5266_v0  ;;  %v5277_v5 = vpop.f32.mrb[41].mxu1  ;;  %v5279_v37 = vpop.f32.mrb[42].mxu0  ;;  %v3544_v34 = vadd.f32 -1.0, %v3895_v48  ;;  %3912 = vpow2.f32 %v1120_v4  ;;  %vm847_vm3 = vcmp.gt.f32.partialorder %v5223_v13, 0.0 }
 0x144   : > { %7652 = vst [vmem:[#allocation6_spill] sm:$0xff] %v5277_v5  ;;  %7653 = vst [vmem:[#allocation39_spill] sm:$0xff] %v5279_v37  ;;  %v3905_v0 = vpop.eup %3904  ;;  %v5286_v26 = vpop.f32.mrb[42].mxu1  ;;  %v1354_v5 = vmul.f32 1.6732632, %v3543_v55  ;;  %v3545_v37 = vadd.f32 -1.0, %v3899_v29  ;;  %v1545_v55 = vsel %vm905_vm8, %v5045_v58, %v1417_v14  ;;  %3914 = vpow2.f32 %v994_v16 }
 0x145   : > { %7654 = vst [vmem:[#allocation40_spill] sm:$0xff] %v5286_v26  ;;  %v5288_v9 = vpop.f32.mrb[43].mxu0  ;;  %v1122_v48 = vmul.f32 1.442695, %v5252_v57  ;;  %v996_v17 = vmul.f32 1.442695, %v5258_v42  ;;  %1876 = vadd.xlane.f32.xlu1 %v1875_v12  ;;  %v3907_v60 = vpop.eup %3906 }
 0x146   : > { %7655 = vst [vmem:[#allocation41_spill] sm:$0xff] %v5288_v9  ;;  %v3610_v29 = vadd.f32 -1.0, %v3905_v0  ;;  %v1124_v10 = vmul.f32 1.442695, %v5275_v53  ;;  %1969 = vadd.xlane.f32.xlu0 %v1968_v25  ;;  %v5301_v27 = vpop.f32.mrb[43].mxu1  ;;  %v1482_v49 = vsel %vm842_vm9, %v5070_v6, %v1354_v5  ;;  %vm911_vm4 = vcmp.gt.f32.partialorder %v5236_v3, 0.0 }
 0x147   : > { %7656 = vst [vmem:[#allocation42_spill] sm:$0xff] %v5301_v27  ;;  %v1418_v9 = vmul.f32 1.6732632, %v3607_v32  ;;  %v1355_v62 = vmul.f32 1.6732632, %v3544_v34  ;;  %3916 = vpow2.f32 %v1122_v48  ;;  %v5312_v32 = vadd.f32 %v4934_v61, %v4794_v50 }
 0x148   : > { %v1419_v11 = vmul.f32 1.6732632, %v3608_v15  ;;  %v1356_v12 = vmul.f32 1.6732632, %v3545_v37  ;;  %v1420_v26 = vmul.f32 1.6732632, %v3609_v36  ;;  %3918 = vpow2.f32 %v996_v17  ;;  %v3909_v15 = vpop.eup %3908 }
 0x149   : > { %v5306_v58 = vpop.f32.mrb[44].mxu0  ;;  %v5308_v14 = vmul.f32 1.050701, %v1544_v1  ;;  %v1357_v0 = vmul.f32 1.6732632, %v3546_v31  ;;  %3920 = vpow2.f32 %v1124_v10  ;;  %v5322_v36 = vadd.f32 %v4949_v23, %v4794_v50 }
 0x14a   : > { %7657 = vst [vmem:[#allocation43_spill] sm:$0xff] %v5306_v58  ;;  %v5314_v34 = vpop.f32.mrb[44].mxu1  ;;  %v5316_v4 = vpop.f32.mrb[45].mxu0  ;;  %v5318_v16 = vmul.f32 1.050701, %v1481_v54  ;;  %v1546_v61 = vsel %vm906_vm10, %v5091_v22, %v1418_v9  ;;  %v1483_v48 = vsel %vm843_vm11, %v5106_v30, %v1355_v62  ;;  %v1547_v23 = vsel %vm907_vm12, %v5117_v24, %v1419_v11  ;;  %v7665_v24 = vld [vmem:[#allocation7_spill] sm:$0xff] }
 0x14b   : > { %7658 = vst [vmem:[#allocation44_spill] sm:$0xff] %v5314_v34  ;;  %7659 = vst [vmem:[#allocation45_spill] sm:$0xff] %v5316_v4  ;;  %v1421_v6 = vmul.f32 1.6732632, %v3610_v29  ;;  %v5324_v1 = vpop.f32.mrb[45].mxu1  ;;  %v5333_v37 = vpop.f32.mrb[46].mxu0  ;;  %v1484_v54 = vsel %vm844_vm13, %v5128_v56, %v1356_v12  ;;  %v1548_v22 = vsel %vm908_vm14, %v5134_v39, %v1420_v26  ;;  %v1485_v30 = vsel %vm845_vm15, %v5142_v35, %v1357_v0 }
 0x14c   : > { %7660 = vst [vmem:[#allocation46_spill] sm:$0xff] %v5324_v1  ;;  %v5326_v31 = vmul.f32 1.050701, %v1545_v55  ;;  %v5328_v5 = vmul.f32 1.050701, %v1482_v49  ;;  %7661 = vst [vmem:[#allocation47_spill] sm:$0xff] %v5333_v37  ;;  %v5359_v10 = vadd.f32 %v7665_v24, %v4798_v51  ;;  %v3911_v11 = vpop.eup %3910 }
 0x14d   : > { %v5335_v25 = vpop.f32.mrb[46].mxu1  ;;  %v5349_v9 = vpop.f32.mrb[47].mxu0  ;;  %v3547_v55 = vadd.f32 -1.0, %v3907_v60  ;;  %v998_v29 = vmul.f32 1.442695, %v5312_v32  ;;  %v1549_v39 = vsel %vm909_vm0, %v5147_v40, %v1421_v6  ;;  %v3611_v26 = vadd.f32 -1.0, %v3909_v15 }
 0x14e   : > { %7662 = vst [vmem:[#allocation48_spill] sm:$0xff] %v5335_v25  ;;  %7663 = vst [vmem:[#allocation49_spill] sm:$0xff] %v5349_v9  ;;  %v5351_v17 = vpop.f32.mrb[47].mxu1  ;;  %v5361_v56 = vmul.f32 1.050701, %v1546_v61  ;;  %v7666_v12 = vld [vmem:[#allocation8_spill] sm:$0xff]  ;;  %v3913_v61 = vpop.eup %3912  ;;  %v1808_v40 = vmul.f32 %v5023_v38, %v5072_v8  ;;  %v1809_v9 = vmul.f32 %v5060_v19, %v5102_v20 }
 0x14f   : > { %7664 = vst [vmem:[#allocation50_spill] sm:$0xff] %v5351_v17  ;;  %v1126_v62 = vmul.f32 1.442695, %v5322_v36  ;;  %v5367_v49 = vmul.f32 1.050701, %v1483_v48  ;;  %v5375_v0 = vadd.f32 %v7666_v12, %v4798_v51  ;;  %v3915_v15 = vpop.eup %3914  ;;  %3922 = vpow2.f32 %v998_v29  ;;  %v7672_v20 = vld [vmem:[#allocation11_spill] sm:$0xff] }
 0x150   : > { %v5369_v35 = vmul.f32 1.050701, %v1547_v23  ;;  %v5371_v60 = vmul.f32 1.050701, %v1484_v54  ;;  %v5377_v24 = vmul.f32 1.050701, %v1548_v22 }
 0x151   : > { %v5379_v17 = vmul.f32 1.050701, %v1485_v30  ;;  %v5384_v6 = vmul.f32 1.050701, %v1549_v39  ;;  %v1358_v48 = vmul.f32 1.6732632, %v3547_v55  ;;  %v3917_v54 = vpop.eup %3916  ;;  %3924 = vpow2.f32 %v1126_v62 }
 0x152   : > { %v1000_v23 = vmul.f32 1.442695, %v5359_v10  ;;  %v5387_v12 = vmul.f32 1.6732632, %v3611_v26  ;;  %v7667_v22 = vld [vmem:[#allocation9_spill] sm:$0xff]  ;;  %v5395_v25 = vpop.f32.mrb[48].mxu0  ;;  %v3919_v39 = vpop.eup %3918 }
 0x153   : > { %v5391_v30 = vadd.f32 %v7667_v22, %v4794_v50  ;;  %7668 = vst [vmem:[#allocation7_spill] sm:$0xff] %v5395_v25  ;;  %v5397_v8 = vpop.f32.mrb[48].mxu1  ;;  %v3548_v55 = vadd.f32 -1.0, %v3911_v11  ;;  %v3612_v29 = vadd.f32 -1.0, %v3913_v61  ;;  %v1128_v37 = vmul.f32 1.442695, %v5375_v0  ;;  %v3921_v22 = vpop.eup %3920 }
 0x154   : > { %7669 = vst [vmem:[#allocation8_spill] sm:$0xff] %v5397_v8  ;;  %v7670_v26 = vld [vmem:[#allocation10_spill] sm:$0xff]  ;;  %v5404_v62 = vpop.f32.mrb[49].mxu0  ;;  %v5410_v25 = vadd.f32 %v7672_v20, %v4798_v51  ;;  %v1971_v8 = vadd.f32 %v1809_v9, %v1808_v40  ;;  %v1746_v11 = vmul.f32 %v5023_v38, %v5124_v45  ;;  %v1747_v61 = vmul.f32 %v5060_v19, %v5199_v52  ;;  %v7675_v9 = vld [vmem:[#allocation12_spill] sm:$0xff] }
 0x155   : > { %v5402_v1 = vadd.f32 %v7670_v26, %v4794_v50  ;;  %7671 = vst [vmem:[#allocation9_spill] sm:$0xff] %v5404_v62  ;;  %v5416_v26 = vpop.f32.mrb[49].mxu1  ;;  %v5418_v4 = vpop.f32.mrb[50].mxu0  ;;  %v1486_v62 = vsel %vm846_vm1, %v5186_v2, %v1358_v48  ;;  %vm848_vm5 = vcmp.gt.f32.partialorder %v5243_v21, 0.0  ;;  %v3549_v20 = vadd.f32 -1.0, %v3915_v15 }
 0x156   : > { %7673 = vst [vmem:[#allocation10_spill] sm:$0xff] %v5416_v26  ;;  %7674 = vst [vmem:[#allocation11_spill] sm:$0xff] %v5418_v4  ;;  %3926 = vpow2.f32 %v1000_v23  ;;  %v5427_v45 = vadd.f32 %v7675_v9, %v4798_v51  ;;  %v5429_v40 = vpop.f32.mrb[50].mxu1  ;;  %v5431_v52 = vpop.f32.mrb[51].mxu0  ;;  %v3613_v26 = vadd.f32 -1.0, %v3917_v54  ;;  %1972 = vadd.xlane.f32.xlu1 %v1971_v8  ;;  %v1878_v34 = vadd.f32 %v1747_v61, %v1746_v11 }
 0x157   : > { %7676 = vst [vmem:[#allocation12_spill] sm:$0xff] %v5429_v40  ;;  %v1002_v4 = vmul.f32 1.442695, %v5391_v30  ;;  %v1748_v2 = vmul.f32 %v5023_v38, %v5213_v33  ;;  %v5436_v48 = vpop.f32.mrb[51].mxu1  ;;  %v1359_v15 = vmul.f32 1.6732632, %v3548_v55  ;;  %3928 = vpow2.f32 %v1128_v37 }
 0x158   : > { %7677 = vst [vmem:[#allocation51_spill] sm:$0xff] %v5436_v48  ;;  %v3550_v23 = vadd.f32 -1.0, %v3919_v39  ;;  %v3614_v58 = vadd.f32 -1.0, %v3921_v22  ;;  %v1130_v9 = vmul.f32 1.442695, %v5402_v1  ;;  %1879 = vadd.xlane.f32.xlu0 %v1878_v34  ;;  %v1749_v54 = vmul.f32 %v5060_v19, %v5318_v16 }
 0x159   : > { %v1423_v27 = vmul.f32 1.6732632, %v3612_v29  ;;  %v1004_v40 = vmul.f32 1.442695, %v5410_v25  ;;  %v1360_v8 = vmul.f32 1.6732632, %v3549_v20  ;;  %v1810_v33 = vmul.f32 %v5023_v38, %v5188_v44  ;;  %v3923_v34 = vpop.eup %3922 }
 0x15a   : > { %v1132_v11 = vmul.f32 1.442695, %v5427_v45  ;;  %v1811_v39 = vmul.f32 %v5060_v19, %v5201_v41  ;;  %v1424_v55 = vmul.f32 1.6732632, %v3613_v26  ;;  %3930 = vpow2.f32 %v1002_v4  ;;  %v7678_v29 = vld [vmem:[#allocation13_spill] sm:$0xff] }
 0x15b   : > { %v5449_v37 = vadd.f32 %v7678_v29, %v4794_v50  ;;  %v1881_v22 = vadd.f32 %v1749_v54, %v1748_v2  ;;  %v1361_v61 = vmul.f32 1.6732632, %v3550_v23  ;;  %v1425_v48 = vmul.f32 1.6732632, %v3614_v58  ;;  %v3925_v20 = vpop.eup %3924  ;;  %v7679_v54 = vld [vmem:[#allocation14_spill] sm:$0xff] }
 0x15c   : > { %3932 = vpow2.f32 %v1130_v9  ;;  %v1974_v16 = vadd.f32 %v1811_v39, %v1810_v33  ;;  %vm912_vm6 = vcmp.gt.f32.partialorder %v5252_v57, 0.0  ;;  %vm849_vm7 = vcmp.gt.f32.partialorder %v5258_v42, 0.0  ;;  %v7680_v33 = vld [vmem:[#allocation15_spill] sm:$0xff] }
 0x15d   : > { %vm913_vm8 = vcmp.gt.f32.partialorder %v5275_v53, 0.0  ;;  %3934 = vpow2.f32 %v1004_v40  ;;  %1882 = vadd.xlane.f32.xlu1 %v1881_v22  ;;  %v1550_v44 = vsel %vm910_vm2, %v5195_v18, %v5387_v12  ;;  %v1487_v41 = vsel %vm847_vm3, %v5223_v13, %v1359_v15 }
 0x15e   : > { %3936 = vpow2.f32 %v1132_v11  ;;  %v5463_v58 = vadd.f32 %v5013_v46, %v4794_v50  ;;  %1975 = vadd.xlane.f32.xlu0 %v1974_v16  ;;  %v5465_v4 = vmul.f32 1.050701, %v1486_v62  ;;  %v1551_v26 = vsel %vm911_vm4, %v5236_v3, %v1423_v27 }
 0x15f   : > { %v1488_v18 = vsel %vm848_vm5, %v5243_v21, %v1360_v8  ;;  %v1006_v12 = vmul.f32 1.442695, %v5449_v37  ;;  %v1552_v13 = vsel %vm912_vm6, %v5252_v57, %v1424_v55  ;;  %v1489_v2 = vsel %vm849_vm7, %v5258_v42, %v1361_v61  ;;  %v7681_v61 = vld [vmem:[#allocation16_spill] sm:$0xff] }
 0x160   : > { %v3927_v40 = vpop.eup %3926  ;;  %v1553_v46 = vsel %vm913_vm8, %v5275_v53, %v1425_v48  ;;  %v3551_v15 = vadd.f32 -1.0, %v3923_v34  ;;  %v5477_v62 = vmul.f32 1.050701, %v1550_v44  ;;  %v5479_v23 = vmul.f32 1.050701, %v1487_v41  ;;  %v5514_v41 = vpop.f32.mrb[52].mxu0 }
 0x161   : > { %v3615_v9 = vadd.f32 -1.0, %v3925_v20  ;;  %v5481_v3 = vmul.f32 1.050701, %v1551_v26  ;;  %v5483_v27 = vmul.f32 1.050701, %v1488_v18  ;;  %v5488_v8 = vadd.f32 %v7679_v54, %v4798_v51  ;;  %v3929_v57 = vpop.eup %3928  ;;  %v5516_v26 = vpop.f32.mrb[52].mxu1 }
 0x162   : > { %v1134_v21 = vmul.f32 1.442695, %v5463_v58  ;;  %v5490_v42 = vmul.f32 1.050701, %v1552_v13  ;;  %v5492_v53 = vmul.f32 1.050701, %v1489_v2  ;;  %3938 = vpow2.f32 %v1006_v12 }
 0x163   : > { %v5494_v48 = vmul.f32 1.050701, %v1553_v46  ;;  %vm850_vm9 = vcmp.gt.f32.partialorder %v5312_v32, 0.0  ;;  %vm914_vm10 = vcmp.gt.f32.partialorder %v5322_v36, 0.0  ;;  %v1362_v11 = vmul.f32 1.6732632, %v3551_v15 }
 0x164   : > { %v5500_v39 = vadd.f32 %v7680_v33, %v4798_v51  ;;  %v1812_v55 = vmul.f32 %v5023_v38, %v5308_v14  ;;  %v1813_v29 = vmul.f32 %v5060_v19, %v5326_v31  ;;  %v3931_v22 = vpop.eup %3930  ;;  %v1426_v34 = vmul.f32 1.6732632, %v3615_v9  ;;  %7682 = vst [vmem:[#allocation13_spill] sm:$0xff] %v5516_v26  ;;  %v7683_v18 = vld [vmem:[#allocation17_spill] sm:$0xff]  ;;  %v7684_v46 = vld [vmem:[#allocation18_spill] sm:$0xff]  ;;  %v5533_v54 = vpop.f32.mrb[53].mxu1 }
 0x165   : > { %v5508_v16 = vadd.f32 %v7681_v61, %v4794_v50  ;;  %v1750_v20 = vmul.f32 %v5023_v38, %v5328_v5  ;;  %v1751_v44 = vmul.f32 %v5060_v19, %v5367_v49  ;;  %3940 = vpow2.f32 %v1134_v21  ;;  %v5531_v21 = vpop.f32.mrb[53].mxu0  ;;  %7686 = vst [vmem:[#allocation15_spill] sm:$0xff] %v5533_v54 }
 0x166   : > { %v3933_v14 = vpop.eup %3932  ;;  %v1008_v31 = vmul.f32 1.442695, %v5488_v8  ;;  %v5521_v12 = vadd.f32 %v7683_v18, %v4794_v50  ;;  %v1977_v13 = vadd.f32 %v1813_v29, %v1812_v55  ;;  %v5525_v5 = vadd.f32 %v7684_v46, %v4798_v51  ;;  %7685 = vst [vmem:[#allocation14_spill] sm:$0xff] %v5531_v21  ;;  %v5548_v18 = vpop.f32.mrb[54].mxu1 }
 0x167   : > { %v3935_v2 = vpop.eup %3934  ;;  %v1884_v15 = vadd.f32 %v1751_v44, %v1750_v20  ;;  %v1752_v49 = vmul.f32 %v5023_v38, %v5371_v60  ;;  %v1753_v9 = vmul.f32 %v5060_v19, %v5379_v17  ;;  %vm851_vm11 = vcmp.gt.f32.partialorder %v5359_v10, 0.0  ;;  %7688 = vst [vmem:[#allocation17_spill] sm:$0xff] %v5548_v18 }
 0x168   : > { %v3937_v33 = vpop.eup %3936  ;;  %v3552_v55 = vadd.f32 -1.0, %v3927_v40  ;;  %v3616_v29 = vadd.f32 -1.0, %v3929_v57  ;;  %v1136_v61 = vmul.f32 1.442695, %v5500_v39  ;;  %v5539_v20 = vadd.f32 %v5062_v59, %v4798_v51  ;;  %1978 = vadd.xlane.f32.xlu1 %v1977_v13  ;;  %v5546_v57 = vpop.f32.mrb[54].mxu0 }
 0x169   : > { %vm915_vm12 = vcmp.gt.f32.partialorder %v5375_v0, 0.0  ;;  %vm852_vm13 = vcmp.gt.f32.partialorder %v5391_v30, 0.0  ;;  %v3553_v17 = vadd.f32 -1.0, %v3931_v22  ;;  %v1010_v60 = vmul.f32 1.442695, %v5508_v16  ;;  %1885 = vadd.xlane.f32.xlu0 %v1884_v15  ;;  %7687 = vst [vmem:[#allocation16_spill] sm:$0xff] %v5546_v57 }
 0x16a   : > { %v1887_v44 = vadd.f32 %v1753_v9, %v1752_v49  ;;  %v1814_v40 = vmul.f32 %v5023_v38, %v5361_v56  ;;  %vm916_vm14 = vcmp.gt.f32.partialorder %v5402_v1, 0.0  ;;  %v3617_v59 = vadd.f32 -1.0, %v3933_v14  ;;  %v5556_v54 = vpop.f32.mrb[55].mxu0  ;;  %v5558_v15 = vpop.f32.mrb[55].mxu1 }
 0x16b   : > { %v3554_v13 = vadd.f32 -1.0, %v3935_v2  ;;  %v1138_v46 = vmul.f32 1.442695, %v5521_v12  ;;  %v5554_v22 = vadd.f32 %v5078_v63, %v4794_v50  ;;  %7689 = vst [vmem:[#allocation18_spill] sm:$0xff] %v5556_v54  ;;  %7690 = vst [vmem:[#allocation52_spill] sm:$0xff] %v5558_v15  ;;  %v3618_v49 = vadd.f32 -1.0, %v3937_v33 }
 0x16c   : > { %3942 = vpow2.f32 %v1008_v31  ;;  %v1012_v56 = vmul.f32 1.442695, %v5525_v5  ;;  %v1815_v9 = vmul.f32 %v5060_v19, %v5369_v35  ;;  %v1490_v14 = vsel %vm850_vm9, %v5312_v32, %v1362_v11  ;;  %1888 = vadd.xlane.f32.xlu1 %v1887_v44  ;;  %v3939_v15 = vpop.eup %3938  ;;  %v7691_v31 = vld [vmem:[#allocation19_spill] sm:$0xff] }
 0x16d   : > { %v1554_v63 = vsel %vm914_vm10, %v5322_v36, %v1426_v34  ;;  %3944 = vpow2.f32 %v1136_v61  ;;  %v1140_v2 = vmul.f32 1.442695, %v5539_v20  ;;  %v1363_v33 = vmul.f32 1.6732632, %v3552_v55  ;;  %v7692_v61 = vld [vmem:[#allocation20_spill] sm:$0xff] }
 0x16e   : > { %3946 = vpow2.f32 %v1010_v60  ;;  %v5572_v54 = vadd.f32 %v7691_v31, %v4794_v50  ;;  %v1980_v35 = vadd.f32 %v1815_v9, %v1814_v40  ;;  %v1427_v18 = vmul.f32 1.6732632, %v3616_v29 }
 0x16f   : > { %v1364_v57 = vmul.f32 1.6732632, %v3553_v17  ;;  %3948 = vpow2.f32 %v1138_v46  ;;  %v1014_v32 = vmul.f32 1.442695, %v5554_v22  ;;  %v1428_v11 = vmul.f32 1.6732632, %v3617_v59  ;;  %v3941_v34 = vpop.eup %3940 }
 0x170   : > { %v1365_v21 = vmul.f32 1.6732632, %v3554_v13  ;;  %v1429_v36 = vmul.f32 1.6732632, %v3618_v49  ;;  %3950 = vpow2.f32 %v1012_v56  ;;  %1981 = vadd.xlane.f32.xlu0 %v1980_v35  ;;  %vm853_vm15 = vcmp.gt.f32.partialorder %v5410_v25, 0.0 }
 0x171   : > { %v3555_v55 = vadd.f32 -1.0, %v3939_v15  ;;  %3952 = vpow2.f32 %v1140_v2  ;;  %v5578_v60 = vadd.f32 %v7692_v61, %v4798_v51  ;;  %v5580_v44 = vmul.f32 1.050701, %v1490_v14  ;;  %v5635_v61 = vpop.f32.mrb[56].mxu0 }
 0x172   : > { %v1491_v29 = vsel %vm851_vm11, %v5359_v10, %v1363_v33  ;;  %vm917_vm0 = vcmp.gt.f32.partialorder %v5427_v45, 0.0  ;;  %v1142_v17 = vmul.f32 1.442695, %v5572_v54  ;;  %v5587_v40 = vmul.f32 1.050701, %v1554_v63  ;;  %7694 = vst [vmem:[#allocation19_spill] sm:$0xff] %v5635_v61 }
 0x173   : > { %v1555_v59 = vsel %vm915_vm12, %v5375_v0, %v1427_v18  ;;  %v1492_v13 = vsel %vm852_vm13, %v5391_v30, %v1364_v57  ;;  %3954 = vpow2.f32 %v1014_v32  ;;  %v1556_v46 = vsel %vm916_vm14, %v5402_v1, %v1428_v11 }
 0x174   : > { %v1493_v10 = vsel %vm853_vm15, %v5410_v25, %v1365_v21  ;;  %v1557_v15 = vsel %vm917_vm0, %v5427_v45, %v1429_v36  ;;  %v3619_v49 = vadd.f32 -1.0, %v3941_v34  ;;  %v5600_v56 = vmul.f32 1.050701, %v1491_v29  ;;  %v7693_v21 = vld [vmem:[#allocation21_spill] sm:$0xff]  ;;  %v7695_v29 = vld [vmem:[#allocation22_spill] sm:$0xff] }
 0x175   : > { %v1366_v9 = vmul.f32 1.6732632, %v3555_v55  ;;  %v1016_v14 = vmul.f32 1.442695, %v5578_v60  ;;  %v5603_v18 = vmul.f32 1.050701, %v1555_v59  ;;  %3956 = vpow2.f32 %v1142_v17 }
 0x176   : > { %v3943_v0 = vpop.eup %3942  ;;  %v5605_v63 = vmul.f32 1.050701, %v1492_v13  ;;  %vm854_vm1 = vcmp.gt.f32.partialorder %v5449_v37, 0.0  ;;  %v5608_v1 = vmul.f32 1.050701, %v1556_v46  ;;  %v5616_v57 = vadd.f32 %v7693_v21, %v4798_v51  ;;  %v5645_v59 = vpop.f32.mrb[56].mxu1 }
 0x177   : > { %v3945_v30 = vpop.eup %3944  ;;  %v5610_v25 = vmul.f32 1.050701, %v1493_v10  ;;  %v5612_v45 = vmul.f32 1.050701, %v1557_v15  ;;  %v5618_v33 = vmul.f32 1.6732632, %v3619_v49  ;;  %v5622_v31 = vadd.f32 %v5100_v28, %v4794_v50 }
 0x178   : > { %v3947_v2 = vpop.eup %3946  ;;  %v1816_v35 = vmul.f32 %v5023_v38, %v5377_v24  ;;  %v1817_v32 = vmul.f32 %v5060_v19, %v5384_v6  ;;  %v5629_v36 = vsel %vm854_vm1, %v5449_v37, %v1366_v9  ;;  %v3556_v34 = vadd.f32 -1.0, %v3943_v0  ;;  %7696 = vst [vmem:[#allocation20_spill] sm:$0xff] %v5645_v59  ;;  %v5647_v13 = vpop.f32.mrb[57].mxu0  ;;  %v7698_v49 = vld [vmem:[#allocation23_spill] sm:$0xff]  ;;  %v7701_v21 = vld [vmem:[#allocation24_spill] sm:$0xff] }
 0x179   : > { %v3949_v11 = vpop.eup %3948  ;;  %3958 = vpow2.f32 %v1016_v14  ;;  %v5633_v55 = vadd.f32 %v5109_v47, %v4794_v50  ;;  %v5639_v17 = vadd.f32 %v7695_v29, %v4798_v51  ;;  %v1754_v6 = vmul.f32 %v5023_v38, %v5465_v4  ;;  %7697 = vst [vmem:[#allocation21_spill] sm:$0xff] %v5647_v13  ;;  %v5654_v14 = vpop.f32.mrb[57].mxu1 }
 0x17a   : > { %v3951_v28 = vpop.eup %3950  ;;  %v1983_v24 = vadd.f32 %v1817_v32, %v1816_v35  ;;  %v1755_v37 = vmul.f32 %v5060_v19, %v5479_v23  ;;  %v3620_v46 = vadd.f32 -1.0, %v3945_v30  ;;  %v3557_v10 = vadd.f32 -1.0, %v3947_v2  ;;  %7699 = vst [vmem:[#allocation22_spill] sm:$0xff] %v5654_v14  ;;  %v5656_v0 = vpop.f32.mrb[58].mxu0 }
 0x17b   : > { %v3953_v47 = vpop.eup %3952  ;;  %v1144_v15 = vmul.f32 1.442695, %v5616_v57  ;;  %v5652_v9 = vadd.f32 %v7698_v49, %v4798_v51  ;;  %7700 = vst [vmem:[#allocation23_spill] sm:$0xff] %v5656_v0  ;;  %vm918_vm2 = vcmp.gt.f32.partialorder %v5463_v58, 0.0  ;;  %vm855_vm3 = vcmp.gt.f32.partialorder %v5488_v8, 0.0  ;;  %v5666_v35 = vpop.f32.mrb[58].mxu1 }
 0x17c   : > { %vm919_vm4 = vcmp.gt.f32.partialorder %v5500_v39, 0.0  ;;  %v3621_v4 = vadd.f32 -1.0, %v3949_v11  ;;  %v1018_v23 = vmul.f32 1.442695, %v5622_v31  ;;  %1984 = vadd.xlane.f32.xlu1 %v1983_v24  ;;  %v1890_v30 = vadd.f32 %v1755_v37, %v1754_v6  ;;  %7702 = vst [vmem:[#allocation24_spill] sm:$0xff] %v5666_v35  ;;  %v5668_v32 = vpop.f32.mrb[59].mxu0 }
 0x17d   : > { %v5664_v2 = vadd.f32 %v7701_v21, %v4794_v50  ;;  %7703 = vst [vmem:[#allocation53_spill] sm:$0xff] %v5668_v32  ;;  %v3955_v29 = vpop.eup %3954  ;;  %vm856_vm5 = vcmp.gt.f32.partialorder %v5508_v16, 0.0  ;;  %vm920_vm6 = vcmp.gt.f32.partialorder %v5521_v12, 0.0  ;;  %vm857_vm7 = vcmp.gt.f32.partialorder %v5525_v5, 0.0  ;;  %v5678_v37 = vpop.f32.mrb[59].mxu1  ;;  %v7705_v35 = vld [vmem:[#allocation25_spill] sm:$0xff] }
 0x17e   : > { %v3558_v11 = vadd.f32 -1.0, %v3951_v28  ;;  %v1146_v49 = vmul.f32 1.442695, %v5633_v55  ;;  %v1756_v24 = vmul.f32 %v5023_v38, %v5483_v27  ;;  %v1757_v6 = vmul.f32 %v5060_v19, %v5492_v53  ;;  %7704 = vst [vmem:[#allocation54_spill] sm:$0xff] %v5678_v37  ;;  %1891 = vadd.xlane.f32.xlu0 %v1890_v30 }
 0x17f   : > { %vm921_vm8 = vcmp.gt.f32.partialorder %v5539_v20, 0.0  ;;  %v3622_v21 = vadd.f32 -1.0, %v3953_v47  ;;  %v1020_v32 = vmul.f32 1.442695, %v5639_v17  ;;  %v5684_v0 = vadd.f32 %v7705_v35, %v4794_v50  ;;  %v3957_v37 = vpop.eup %3956 }
 0x180   : > { %v1818_v28 = vmul.f32 %v5023_v38, %v5477_v62  ;;  %3960 = vpow2.f32 %v1144_v15  ;;  %v1148_v27 = vmul.f32 1.442695, %v5652_v9  ;;  %v1893_v14 = vadd.f32 %v1757_v6, %v1756_v24 }
 0x181   : > { %v1819_v53 = vmul.f32 %v5060_v19, %v5481_v3  ;;  %v1367_v13 = vmul.f32 1.6732632, %v3556_v34  ;;  %v3559_v47 = vadd.f32 -1.0, %v3955_v29  ;;  %3962 = vpow2.f32 %v1018_v23 }
 0x182   : > { %v1022_v30 = vmul.f32 1.442695, %v5664_v2  ;;  %v1431_v59 = vmul.f32 1.6732632, %v3620_v46  ;;  %v1368_v61 = vmul.f32 1.6732632, %v3557_v10  ;;  %3964 = vpow2.f32 %v1146_v49  ;;  %1894 = vadd.xlane.f32.xlu1 %v1893_v14 }
 0x183   : > { %v1986_v35 = vadd.f32 %v1819_v53, %v1818_v28  ;;  %v1432_v26 = vmul.f32 1.6732632, %v3621_v4  ;;  %v1369_v62 = vmul.f32 1.6732632, %v3558_v11  ;;  %3966 = vpow2.f32 %v1020_v32  ;;  %v3959_v24 = vpop.eup %3958 }
 0x184   : > { %v1150_v15 = vmul.f32 1.442695, %v5684_v0  ;;  %v1433_v6 = vmul.f32 1.6732632, %v3622_v21  ;;  %vm858_vm9 = vcmp.gt.f32.partialorder %v5554_v22, 0.0  ;;  %v3623_v3 = vadd.f32 -1.0, %v3957_v37 }
 0x185   : > { %3968 = vpow2.f32 %v1148_v27  ;;  %1987 = vadd.xlane.f32.xlu0 %v1986_v35  ;;  %v5695_v34 = vmul.f32 1.050701, %v5629_v36  ;;  %v1370_v46 = vmul.f32 1.6732632, %v3559_v47  ;;  %vm922_vm10 = vcmp.gt.f32.partialorder %v5572_v54, 0.0  ;;  %v7706_v36 = vld [vmem:[#allocation26_spill] sm:$0xff] }
 0x186   : > { %3970 = vpow2.f32 %v1022_v30  ;;  %v1558_v10 = vsel %vm918_vm2, %v5463_v58, %v5618_v33  ;;  %v1495_v14 = vsel %vm855_vm3, %v5488_v8, %v1367_v13  ;;  %v1559_v4 = vsel %vm919_vm4, %v5500_v39, %v1431_v59  ;;  %v7707_v13 = vld [vmem:[#allocation27_spill] sm:$0xff] }
 0x187   : > { %v5710_v23 = vadd.f32 %v7706_v36, %v4798_v51  ;;  %v1496_v32 = vsel %vm856_vm5, %v5508_v16, %v1368_v61  ;;  %v1560_v58 = vsel %vm920_vm6, %v5521_v12, %v1432_v26  ;;  %v1497_v8 = vsel %vm857_vm7, %v5525_v5, %v1369_v62 }
 0x188   : > { %3972 = vpow2.f32 %v1150_v15  ;;  %v1561_v39 = vsel %vm921_vm8, %v5539_v20, %v1433_v6  ;;  %v1434_v33 = vmul.f32 1.6732632, %v3623_v3  ;;  %v3560_v59 = vadd.f32 -1.0, %v3959_v24  ;;  %v5771_v3 = vpop.f32.mrb[60].mxu0 }
 0x189   : > { %v5726_v29 = vadd.f32 %v7707_v13, %v4798_v51  ;;  %v5728_v16 = vmul.f32 1.050701, %v1558_v10  ;;  %v5730_v61 = vmul.f32 1.050701, %v1495_v14  ;;  %v1498_v26 = vsel %vm858_vm9, %v5554_v22, %v1370_v46  ;;  %v7708_v14 = vld [vmem:[#allocation28_spill] sm:$0xff]  ;;  %v5781_v36 = vpop.f32.mrb[61].mxu0 }
 0x18a   : > { %v5737_v12 = vadd.f32 %v5167_v43, %v4794_v50  ;;  %v3961_v5 = vpop.eup %3960  ;;  %v5739_v20 = vmul.f32 1.050701, %v1559_v4  ;;  %v5741_v11 = vmul.f32 1.050701, %v1496_v32  ;;  %v1024_v49 = vmul.f32 1.442695, %v5710_v23 }
 0x18b   : > { %v3963_v37 = vpop.eup %3962  ;;  %v5744_v21 = vmul.f32 1.050701, %v1560_v58  ;;  %v5746_v28 = vmul.f32 1.050701, %v1497_v8  ;;  %v5748_v27 = vmul.f32 1.050701, %v1561_v39  ;;  %v5752_v22 = vadd.f32 %v5169_v7, %v4794_v50 }
 0x18c   : > { %v3965_v43 = vpop.eup %3964  ;;  %v5754_v53 = vmul.f32 1.050701, %v1498_v26  ;;  %v5759_v47 = vsel %vm922_vm10, %v5572_v54, %v1434_v33  ;;  %v5761_v30 = vmul.f32 1.6732632, %v3560_v59  ;;  %v1152_v35 = vmul.f32 1.442695, %v5726_v29 }
 0x18d   : > { %v3967_v62 = vpop.eup %3966  ;;  %v1026_v15 = vmul.f32 1.442695, %v5737_v12  ;;  %v1820_v24 = vmul.f32 %v5023_v38, %v5490_v42  ;;  %v1821_v7 = vmul.f32 %v5060_v19, %v5494_v48  ;;  %v1758_v6 = vmul.f32 %v5023_v38, %v5580_v44  ;;  %v5773_v54 = vpop.f32.mrb[60].mxu1  ;;  %v7710_v8 = vld [vmem:[#allocation29_spill] sm:$0xff]  ;;  %v7713_v26 = vld [vmem:[#allocation30_spill] sm:$0xff] }
 0x18e   : > { %v3624_v10 = vadd.f32 -1.0, %v3961_v5  ;;  %3974 = vpow2.f32 %v1024_v49  ;;  %v5777_v4 = vadd.f32 %v7708_v14, %v4798_v51  ;;  %v1759_v42 = vmul.f32 %v5060_v19, %v5600_v56  ;;  %v5783_v48 = vpop.f32.mrb[61].mxu1  ;;  %v5792_v59 = vpop.f32.mrb[62].mxu0 }
 0x18f   : > { %v3969_v46 = vpop.eup %3968  ;;  %7709 = vst [vmem:[#allocation25_spill] sm:$0xff] %v5783_v48  ;;  %vm859_vm11 = vcmp.gt.f32.partialorder %v5578_v60, 0.0  ;;  %vm923_vm12 = vcmp.gt.f32.partialorder %v5616_v57, 0.0  ;;  %v3561_v44 = vadd.f32 -1.0, %v3963_v37  ;;  %v1154_v58 = vmul.f32 1.442695, %v5752_v22 }
 0x190   : > { %v3971_v32 = vpop.eup %3970  ;;  %v5790_v39 = vadd.f32 %v7710_v8, %v4798_v51  ;;  %v1989_v33 = vadd.f32 %v1821_v7, %v1820_v24  ;;  %7711 = vst [vmem:[#allocation26_spill] sm:$0xff] %v5792_v59  ;;  %v5794_v56 = vpop.f32.mrb[62].mxu1  ;;  %vm860_vm13 = vcmp.gt.f32.partialorder %v5622_v31, 0.0  ;;  %vm924_vm14 = vcmp.gt.f32.partialorder %v5633_v55, 0.0  ;;  %v7717_v59 = vld [vmem:[#allocation32_spill] sm:$0xff] }
 0x191   : > { %7712 = vst [vmem:[#allocation27_spill] sm:$0xff] %v5794_v56  ;;  %3976 = vpow2.f32 %v1152_v35  ;;  %v1896_v13 = vadd.f32 %v1759_v42, %v1758_v6  ;;  %v5800_v5 = vadd.f32 %v7713_v26, %v4794_v50  ;;  %v1760_v49 = vmul.f32 %v5023_v38, %v5605_v63  ;;  %v5804_v37 = vpop.f32.mrb[63].mxu0  ;;  %v5806_v24 = vpop.f32.mrb[63].mxu1  ;;  %v7716_v63 = vld [vmem:[#allocation31_spill] sm:$0xff] }
 0x192   : > { %7714 = vst [vmem:[#allocation28_spill] sm:$0xff] %v5804_v37  ;;  %7715 = vst [vmem:[#allocation29_spill] sm:$0xff] %v5806_v24  ;;  %v3973_v7 = vpop.eup %3972  ;;  %v3625_v14 = vadd.f32 -1.0, %v3965_v43  ;;  %vm861_vm15 = vcmp.gt.f32.partialorder %v5639_v17, 0.0  ;;  %v3562_v8 = vadd.f32 -1.0, %v3967_v62  ;;  %vm925_vm0 = vcmp.gt.f32.partialorder %v5652_v9, 0.0  ;;  %1990 = vadd.xlane.f32.xlu1 %v1989_v33 }
 0x193   : > { %v3626_v35 = vadd.f32 -1.0, %v3969_v46  ;;  %3978 = vpow2.f32 %v1026_v15  ;;  %v3563_v6 = vadd.f32 -1.0, %v3971_v32  ;;  %v1028_v42 = vmul.f32 1.442695, %v5777_v4  ;;  %1897 = vadd.xlane.f32.xlu0 %v1896_v13 }
 0x194   : > { %v5813_v26 = vadd.f32 %v7716_v63, %v4794_v50  ;;  %v1761_v24 = vmul.f32 %v5060_v19, %v5610_v25  ;;  %3980 = vpow2.f32 %v1154_v58  ;;  %v1156_v43 = vmul.f32 1.442695, %v5790_v39 }
 0x195   : > { %v1822_v62 = vmul.f32 %v5023_v38, %v5587_v40  ;;  %v1823_v15 = vmul.f32 %v5060_v19, %v5603_v18  ;;  %v1435_v46 = vmul.f32 1.6732632, %v3624_v10  ;;  %v3627_v32 = vadd.f32 -1.0, %v3973_v7 }
 0x196   : > { %v1030_v33 = vmul.f32 1.442695, %v5800_v5  ;;  %v1899_v13 = vadd.f32 %v1761_v24, %v1760_v49  ;;  %v1372_v37 = vmul.f32 1.6732632, %v3561_v44  ;;  %v1436_v63 = vmul.f32 1.6732632, %v3625_v14 }
 0x197   : > { %v1992_v56 = vadd.f32 %v1823_v15, %v1822_v62  ;;  %v5825_v25 = vadd.f32 %v7717_v59, %v4798_v51  ;;  %v1373_v58 = vmul.f32 1.6732632, %v3562_v8  ;;  %v1437_v48 = vmul.f32 1.6732632, %v3626_v35 }
 0x198   : > { %3982 = vpow2.f32 %v1028_v42  ;;  %v1158_v40 = vmul.f32 1.442695, %v5813_v26  ;;  %1900 = vadd.xlane.f32.xlu1 %v1899_v13  ;;  %v5829_v18 = vmul.f32 1.050701, %v5759_v47  ;;  %vm862_vm1 = vcmp.gt.f32.partialorder %v5664_v2, 0.0  ;;  %v3975_v44 = vpop.eup %3974 }
 0x199   : > { %v1374_v10 = vmul.f32 1.6732632, %v3563_v6  ;;  %3984 = vpow2.f32 %v1156_v43  ;;  %1993 = vadd.xlane.f32.xlu0 %v1992_v56  ;;  %v1499_v59 = vsel %vm859_vm11, %v5578_v60, %v5761_v30  ;;  %v1563_v49 = vsel %vm923_vm12, %v5616_v57, %v1435_v46 }
 0x19a   : > { %v1438_v24 = vmul.f32 1.6732632, %v3627_v32  ;;  %3986 = vpow2.f32 %v1030_v33  ;;  %v1500_v47 = vsel %vm860_vm13, %v5622_v31, %v1372_v37  ;;  %v1564_v56 = vsel %vm924_vm14, %v5633_v55, %v1436_v63  ;;  %v7718_v31 = vld [vmem:[#allocation33_spill] sm:$0xff]  ;;  %v7720_v63 = vld [vmem:[#allocation35_spill] sm:$0xff] }
 0x19b   : > { %vm926_vm2 = vcmp.gt.f32.partialorder %v5684_v0, 0.0  ;;  %v1032_v7 = vmul.f32 1.442695, %v5825_v25  ;;  %v3977_v14 = vpop.eup %3976  ;;  %v1501_v60 = vsel %vm861_vm15, %v5639_v17, %v1373_v58  ;;  %v1565_v57 = vsel %vm925_vm0, %v5652_v9, %v1437_v48  ;;  %v7719_v48 = vld [vmem:[#allocation34_spill] sm:$0xff] }
 0x19c   : > { %3988 = vpow2.f32 %v1158_v40  ;;  %v5855_v30 = vadd.f32 %v7718_v31, %v4798_v51  ;;  %v5857_v55 = vmul.f32 1.050701, %v1499_v59  ;;  %v5859_v8 = vmul.f32 1.050701, %v1563_v49 }
 0x19d   : > { %v3979_v37 = vpop.eup %3978  ;;  %v1502_v35 = vsel %vm862_vm1, %v5664_v2, %v1374_v10  ;;  %v3564_v6 = vadd.f32 -1.0, %v3975_v44  ;;  %v5864_v17 = vmul.f32 1.050701, %v1500_v47  ;;  %v5866_v42 = vmul.f32 1.050701, %v1564_v56  ;;  %v7721_v47 = vld [vmem:[#allocation36_spill] sm:$0xff] }
 0x19e   : > { %v1566_v9 = vsel %vm926_vm2, %v5684_v0, %v1438_v24  ;;  %v5871_v43 = vadd.f32 %v7719_v48, %v4794_v50  ;;  %v3981_v62 = vpop.eup %3980  ;;  %v5873_v15 = vmul.f32 1.050701, %v1501_v60  ;;  %v5875_v46 = vmul.f32 1.050701, %v1565_v57 }
 0x19f   : > { %v3628_v32 = vadd.f32 -1.0, %v3977_v14  ;;  %3990 = vpow2.f32 %v1032_v7  ;;  %v5877_v33 = vmul.f32 1.050701, %v1502_v35  ;;  %v3565_v2 = vadd.f32 -1.0, %v3979_v37 }
 0x1a0   : > { %v1160_v13 = vmul.f32 1.442695, %v5855_v30  ;;  %v5882_v58 = vadd.f32 %v7720_v63, %v4794_v50  ;;  %v5884_v0 = vmul.f32 1.050701, %v1566_v9  ;;  %vm863_vm3 = vcmp.gt.f32.partialorder %v5710_v23, 0.0  ;;  %v7723_v9 = vld [vmem:[#allocation4_spill] sm:$0xff] }
 0x1a1   : > { %v1375_v40 = vmul.f32 1.6732632, %v3564_v6  ;;  %vm927_vm4 = vcmp.gt.f32.partialorder %v5726_v29, 0.0  ;;  %v1824_v10 = vmul.f32 %v5023_v38, %v5608_v1  ;;  %v1825_v44 = vmul.f32 %v5060_v19, %v5612_v45  ;;  %v7722_v1 = vld [vmem:[#allocation37_spill] sm:$0xff] }
 0x1a2   : > { %v3983_v59 = vpop.eup %3982  ;;  %vm864_vm5 = vcmp.gt.f32.partialorder %v5737_v12, 0.0  ;;  %v3629_v49 = vadd.f32 -1.0, %v3981_v62  ;;  %v1034_v24 = vmul.f32 1.442695, %v5871_v43  ;;  %v5896_v56 = vadd.f32 %v7721_v47, %v4798_v51 }
 0x1a3   : > { %v1762_v7 = vmul.f32 %v5023_v38, %v5695_v34  ;;  %v3985_v14 = vpop.eup %3984  ;;  %v1439_v60 = vmul.f32 1.6732632, %v3628_v32  ;;  %v5902_v57 = vadd.f32 %v7722_v1, %v4798_v51  ;;  %v1995_v45 = vadd.f32 %v1825_v44, %v1824_v10  ;;  %v7724_v32 = vld [vmem:[#allocation5_spill] sm:$0xff] }
 0x1a4   : > { %v1763_v31 = vmul.f32 %v5060_v19, %v5730_v61  ;;  %v3987_v37 = vpop.eup %3986  ;;  %v1376_v35 = vmul.f32 1.6732632, %v3565_v2  ;;  %vm928_vm6 = vcmp.gt.f32.partialorder %v5752_v22, 0.0  ;;  %3992 = vpow2.f32 %v1160_v13 }
 0x1a5   : > { %v1162_v6 = vmul.f32 1.442695, %v5882_v58  ;;  %v5910_v34 = vadd.f32 %v7723_v9, %v4794_v50  ;;  %v3566_v48 = vadd.f32 -1.0, %v3983_v59  ;;  %1996 = vadd.xlane.f32.xlu1 %v1995_v45  ;;  %v5914_v63 = vadd.f32 %v7724_v32, %v4794_v50 }
 0x1a6   : > { %v1902_v62 = vadd.f32 %v1763_v31, %v1762_v7  ;;  %v1764_v61 = vmul.f32 %v5023_v38, %v5741_v11  ;;  %v3989_v2 = vpop.eup %3988  ;;  %v1440_v10 = vmul.f32 1.6732632, %v3629_v49  ;;  %vm865_vm7 = vcmp.gt.f32.partialorder %v5777_v4, 0.0 }
 0x1a7   : > { %v3630_v13 = vadd.f32 -1.0, %v3985_v14  ;;  %3994 = vpow2.f32 %v1034_v24  ;;  %v1036_v44 = vmul.f32 1.442695, %v5896_v56  ;;  %vm929_vm8 = vcmp.gt.f32.partialorder %v5790_v39, 0.0  ;;  %v7725_v14 = vld [vmem:[#allocation38_spill] sm:$0xff] }
 0x1a8   : > { %vm866_vm9 = vcmp.gt.f32.partialorder %v5800_v5, 0.0  ;;  %v3567_v59 = vadd.f32 -1.0, %v3987_v37  ;;  %v1164_v47 = vmul.f32 1.442695, %v5902_v57  ;;  %1903 = vadd.xlane.f32.xlu0 %v1902_v62  ;;  %v1765_v7 = vmul.f32 %v5060_v19, %v5746_v28  ;;  %v7726_v28 = vld [vmem:[#allocation6_spill] sm:$0xff] }
 0x1a9   : > { %v1826_v11 = vmul.f32 %v5023_v38, %v5728_v16  ;;  %3996 = vpow2.f32 %v1162_v6  ;;  %v1038_v49 = vmul.f32 1.442695, %v5910_v34  ;;  %v1827_v24 = vmul.f32 %v5060_v19, %v5739_v20  ;;  %v3991_v45 = vpop.eup %3990 }
 0x1aa   : > { %v5932_v1 = vadd.f32 %v7725_v14, %v4798_v51  ;;  %v3631_v31 = vadd.f32 -1.0, %v3989_v2  ;;  %v1166_v37 = vmul.f32 1.442695, %v5914_v63  ;;  %v1905_v9 = vadd.f32 %v1765_v7, %v1764_v61 }
 0x1ab   : > { %v5937_v62 = vadd.f32 %v7726_v28, %v4798_v51  ;;  %v1503_v16 = vsel %vm863_vm3, %v5710_v23, %v1375_v40  ;;  %v1567_v20 = vsel %vm927_vm4, %v5726_v29, %v1439_v60  ;;  %3998 = vpow2.f32 %v1036_v44 }
 0x1ac   : > { %v1998_v6 = vadd.f32 %v1827_v24, %v1826_v11  ;;  %v1504_v32 = vsel %vm864_vm5, %v5737_v12, %v1376_v35  ;;  %v1377_v2 = vmul.f32 1.6732632, %v3566_v48  ;;  %4000 = vpow2.f32 %v1164_v47  ;;  %1906 = vadd.xlane.f32.xlu1 %v1905_v9 }
 0x1ad   : > { %v1040_v61 = vmul.f32 1.442695, %v5932_v1  ;;  %v1441_v7 = vmul.f32 1.6732632, %v3630_v13  ;;  %v1378_v14 = vmul.f32 1.6732632, %v3567_v59  ;;  %4002 = vpow2.f32 %v1038_v49 }
 0x1ae   : > { %v3568_v28 = vadd.f32 -1.0, %v3991_v45  ;;  %1999 = vadd.xlane.f32.xlu0 %v1998_v6  ;;  %v1568_v23 = vsel %vm928_vm6, %v5752_v22, %v1440_v10  ;;  %v1442_v29 = vmul.f32 1.6732632, %v3631_v31  ;;  %4004 = vpow2.f32 %v1166_v37  ;;  %v3993_v60 = vpop.eup %3992  ;;  %v7727_v22 = vld [vmem:[#allocation39_spill] sm:$0xff]  ;;  %v7728_v45 = vld [vmem:[#allocation40_spill] sm:$0xff] }
 0x1af   : > { %v1168_v40 = vmul.f32 1.442695, %v5937_v62  ;;  %v5953_v12 = vmul.f32 1.050701, %v1503_v16  ;;  %v5955_v35 = vmul.f32 1.050701, %v1567_v20  ;;  %4006 = vpow2.f32 %v1040_v61 }
 0x1b0   : > { %vm930_vm10 = vcmp.gt.f32.partialorder %v5813_v26, 0.0  ;;  %v5958_v48 = vmul.f32 1.050701, %v1504_v32  ;;  %v1505_v13 = vsel %vm865_vm7, %v5777_v4, %v1377_v2  ;;  %vm867_vm11 = vcmp.gt.f32.partialorder %v5825_v25, 0.0  ;;  %v7729_v16 = vld [vmem:[#allocation41_spill] sm:$0xff] }
 0x1b1   : > { %v5966_v10 = vadd.f32 %v7727_v22, %v4794_v50  ;;  %v3995_v44 = vpop.eup %3994  ;;  %v5968_v59 = vmul.f32 1.050701, %v1568_v23  ;;  %v1569_v47 = vsel %vm929_vm8, %v5790_v39, %v1441_v7  ;;  %v1506_v11 = vsel %vm866_vm9, %v5800_v5, %v1378_v14 }
 0x1b2   : > { %v1379_v49 = vmul.f32 1.6732632, %v3568_v28  ;;  %v1570_v4 = vsel %vm930_vm10, %v5813_v26, %v1442_v29  ;;  %v3632_v24 = vadd.f32 -1.0, %v3993_v60  ;;  %4008 = vpow2.f32 %v1168_v40 }
 0x1b3   : > { %v5979_v31 = vadd.f32 %v7728_v45, %v4794_v50  ;;  %v3997_v37 = vpop.eup %3996  ;;  %v5981_v9 = vmul.f32 1.050701, %v1505_v13  ;;  %v5985_v20 = vadd.f32 %v7729_v16, %v4798_v51  ;;  %v1828_v39 = vmul.f32 %v5023_v38, %v5744_v21  ;;  %v7730_v21 = vld [vmem:[#allocation42_spill] sm:$0xff]  ;;  %v7732_v16 = vld [vmem:[#allocation44_spill] sm:$0xff] }
 0x1b4   : > { %v1829_v5 = vmul.f32 %v5060_v19, %v5748_v27  ;;  %v5991_v26 = vmul.f32 1.050701, %v1569_v47  ;;  %vm931_vm12 = vcmp.gt.f32.partialorder %v5855_v30, 0.0  ;;  %v3569_v6 = vadd.f32 -1.0, %v3995_v44 }
 0x1b5   : > { %v1042_v32 = vmul.f32 1.442695, %v5966_v10  ;;  %v3999_v2 = vpop.eup %3998  ;;  %v5995_v61 = vmul.f32 1.050701, %v1506_v11  ;;  %v5997_v7 = vmul.f32 1.050701, %v1570_v4  ;;  %v1507_v14 = vsel %vm867_vm11, %v5825_v25, %v1379_v49 }
 0x1b6   : > { %v6004_v28 = vadd.f32 %v7730_v21, %v4798_v51  ;;  %v4001_v27 = vpop.eup %4000  ;;  %v1443_v23 = vmul.f32 1.6732632, %v3632_v24  ;;  %v1170_v29 = vmul.f32 1.442695, %v5979_v31  ;;  %v2001_v40 = vadd.f32 %v1829_v5, %v1828_v39  ;;  %v7731_v25 = vld [vmem:[#allocation43_spill] sm:$0xff] }
 0x1b7   : > { %v1766_v60 = vmul.f32 %v5023_v38, %v5754_v53  ;;  %v4003_v13 = vpop.eup %4002  ;;  %v3633_v22 = vadd.f32 -1.0, %v3997_v37  ;;  %v1044_v44 = vmul.f32 1.442695, %v5985_v20  ;;  %v1767_v47 = vmul.f32 %v5060_v19, %v5857_v55 }
 0x1b8   : > { %v6014_v11 = vadd.f32 %v7731_v25, %v4794_v50  ;;  %v4005_v49 = vpop.eup %4004  ;;  %v6016_v4 = vmul.f32 1.050701, %v1507_v14  ;;  %vm868_vm13 = vcmp.gt.f32.partialorder %v5871_v43, 0.0  ;;  %v1380_v24 = vmul.f32 1.6732632, %v3569_v6  ;;  %2002 = vadd.xlane.f32.xlu1 %v2001_v40 }
 0x1b9   : > { %v3570_v45 = vadd.f32 -1.0, %v3999_v2  ;;  %4010 = vpow2.f32 %v1042_v32  ;;  %v4007_v53 = vpop.eup %4006  ;;  %vm932_vm14 = vcmp.gt.f32.partialorder %v5882_v58, 0.0  ;;  %vm869_vm15 = vcmp.gt.f32.partialorder %v5896_v56, 0.0 }
 0x1ba   : > { %v1172_v55 = vmul.f32 1.442695, %v6004_v28  ;;  %v1908_v37 = vadd.f32 %v1767_v47, %v1766_v60  ;;  %v6024_v39 = vadd.f32 %v7732_v16, %v4794_v50  ;;  %v1768_v5 = vmul.f32 %v5023_v38, %v5864_v17 }
 0x1bb   : > { %v1571_v6 = vsel %vm931_vm12, %v5855_v30, %v1443_v23  ;;  %vm933_vm0 = vcmp.gt.f32.partialorder %v5902_v57, 0.0  ;;  %v3634_v32 = vadd.f32 -1.0, %v4001_v27  ;;  %vm870_vm1 = vcmp.gt.f32.partialorder %v5910_v34, 0.0 }
 0x1bc   : > { %4012 = vpow2.f32 %v1170_v29  ;;  %v1046_v2 = vmul.f32 1.442695, %v6014_v11  ;;  %v1444_v14 = vmul.f32 1.6732632, %v3633_v22  ;;  %v3571_v21 = vadd.f32 -1.0, %v4003_v13  ;;  %1909 = vadd.xlane.f32.xlu0 %v1908_v37  ;;  %v4009_v40 = vpop.eup %4008  ;;  %v7733_v22 = vld [vmem:[#allocation45_spill] sm:$0xff] }
 0x1bd   : > { %vm934_vm2 = vcmp.gt.f32.partialorder %v5914_v63, 0.0  ;;  %4014 = vpow2.f32 %v1044_v44  ;;  %v1769_v17 = vmul.f32 %v5060_v19, %v5873_v15  ;;  %v3635_v60 = vadd.f32 -1.0, %v4005_v49  ;;  %v7734_v37 = vld [vmem:[#allocation46_spill] sm:$0xff] }
 0x1be   : > { %v3572_v30 = vadd.f32 -1.0, %v4007_v53  ;;  %v1830_v27 = vmul.f32 %v5023_v38, %v5829_v18  ;;  %v1831_v23 = vmul.f32 %v5060_v19, %v5859_v8  ;;  %4016 = vpow2.f32 %v1172_v55 }
 0x1bf   : > { %v1174_v29 = vmul.f32 1.442695, %v6024_v39  ;;  %v1911_v13 = vadd.f32 %v1769_v17, %v1768_v5  ;;  %v6044_v44 = vadd.f32 %v7733_v22, %v4798_v51  ;;  %v1381_v47 = vmul.f32 1.6732632, %v3570_v45  ;;  %v7735_v5 = vld [vmem:[#allocation47_spill] sm:$0xff] }
 0x1c0   : > { %v1445_v25 = vmul.f32 1.6732632, %v3634_v32  ;;  %4018 = vpow2.f32 %v1046_v2  ;;  %v2004_v15 = vadd.f32 %v1831_v23, %v1830_v27  ;;  %v1382_v49 = vmul.f32 1.6732632, %v3571_v21 }
 0x1c1   : > { %vm871_vm3 = vcmp.gt.f32.partialorder %v5932_v1, 0.0  ;;  %v3636_v53 = vadd.f32 -1.0, %v4009_v40  ;;  %1912 = vadd.xlane.f32.xlu1 %v1911_v13  ;;  %v1048_v18 = vmul.f32 1.442695, %v6044_v44  ;;  %v1446_v8 = vmul.f32 1.6732632, %v3635_v60 }
 0x1c2   : > { %v1383_v55 = vmul.f32 1.6732632, %v3572_v30  ;;  %2005 = vadd.xlane.f32.xlu0 %v2004_v15  ;;  %v6050_v16 = vadd.f32 %v7734_v37, %v4798_v51  ;;  %v6054_v45 = vadd.f32 %v7735_v5, %v4794_v50  ;;  %v6056_v32 = vmul.f32 1.050701, %v1571_v6  ;;  %v7736_v6 = vld [vmem:[#allocation48_spill] sm:$0xff] }
 0x1c3   : > { %v1508_v2 = vsel %vm868_vm13, %v5871_v43, %v1380_v24  ;;  %vm935_vm4 = vcmp.gt.f32.partialorder %v5937_v62, 0.0  ;;  %4020 = vpow2.f32 %v1174_v29  ;;  %v4011_v21 = vpop.eup %4010  ;;  %v1572_v17 = vsel %vm932_vm14, %v5882_v58, %v1444_v14  ;;  %v7737_v29 = vld [vmem:[#allocation49_spill] sm:$0xff] }
 0x1c4   : > { %v1509_v40 = vsel %vm869_vm15, %v5896_v56, %v1381_v47  ;;  %v1176_v60 = vmul.f32 1.442695, %v6050_v16  ;;  %v6071_v30 = vadd.f32 %v7736_v6, %v4794_v50  ;;  %v1573_v43 = vsel %vm933_vm0, %v5902_v57, %v1445_v25  ;;  %v7738_v25 = vld [vmem:[#allocation50_spill] sm:$0xff] }
 0x1c5   : > { %v1510_v24 = vsel %vm870_vm1, %v5910_v34, %v1382_v49  ;;  %v1447_v27 = vmul.f32 1.6732632, %v3636_v53  ;;  %4022 = vpow2.f32 %v1048_v18  ;;  %v1574_v56 = vsel %vm934_vm2, %v5914_v63, %v1446_v8 }
 0x1c6   : > { %v4013_v58 = vpop.eup %4012  ;;  %v1511_v14 = vsel %vm871_vm3, %v5932_v1, %v1383_v55  ;;  %v1050_v23 = vmul.f32 1.442695, %v6054_v45  ;;  %v6088_v57 = vadd.f32 %v7737_v29, %v4798_v51  ;;  %v6090_v22 = vmul.f32 1.050701, %v1508_v2 }
 0x1c7   : > { %v4015_v13 = vpop.eup %4014  ;;  %v6092_v34 = vmul.f32 1.050701, %v1572_v17  ;;  %v6094_v47 = vmul.f32 1.050701, %v1509_v40  ;;  %v6098_v63 = vadd.f32 %v7738_v25, %v4798_v51  ;;  %v6100_v15 = vmul.f32 1.050701, %v1573_v43 }
 0x1c8   : > { %v6102_v1 = vmul.f32 1.050701, %v1510_v24  ;;  %4024 = vpow2.f32 %v1176_v60  ;;  %v1178_v49 = vmul.f32 1.442695, %v6071_v30  ;;  %v4017_v53 = vpop.eup %4016  ;;  %v6105_v18 = vmul.f32 1.050701, %v1574_v56 }
 0x1c9   : > { %v6107_v8 = vmul.f32 1.050701, %v1511_v14  ;;  %v1575_v55 = vsel %vm935_vm4, %v5937_v62, %v1447_v27  ;;  %v3573_v37 = vadd.f32 -1.0, %v4011_v21  ;;  %vm872_vm5 = vcmp.gt.f32.partialorder %v5966_v10, 0.0  ;;  %v7739_v27 = vld [vmem:[#allocation7_spill] sm:$0xff] }
 0x1ca   : > { %v4019_v5 = vpop.eup %4018  ;;  %vm936_vm6 = vcmp.gt.f32.partialorder %v5979_v31, 0.0  ;;  %v3637_v2 = vadd.f32 -1.0, %v4013_v58  ;;  %v3574_v17 = vadd.f32 -1.0, %v4015_v13  ;;  %4026 = vpow2.f32 %v1050_v23 }
 0x1cb   : > { %v1052_v40 = vmul.f32 1.442695, %v6088_v57  ;;  %vm873_vm7 = vcmp.gt.f32.partialorder %v5985_v20, 0.0  ;;  %v1180_v60 = vmul.f32 1.442695, %v6098_v63  ;;  %v1832_v6 = vmul.f32 %v5023_v38, %v5866_v42 }
 0x1cc   : > { %v1833_v62 = vmul.f32 %v5060_v19, %v5875_v46  ;;  %v1770_v21 = vmul.f32 %v5023_v38, %v5877_v33  ;;  %v6123_v43 = vmul.f32 1.050701, %v1575_v55  ;;  %vm937_vm8 = vcmp.gt.f32.partialorder %v6004_v28, 0.0  ;;  %v7740_v33 = vld [vmem:[#allocation8_spill] sm:$0xff] }
 0x1cd   : > { %vm874_vm9 = vcmp.gt.f32.partialorder %v6014_v11, 0.0  ;;  %4028 = vpow2.f32 %v1178_v49  ;;  %v1771_v24 = vmul.f32 %v5060_v19, %v5953_v12  ;;  %v6131_v58 = vadd.f32 %v7739_v27, %v4794_v50  ;;  %v4021_v42 = vpop.eup %4020 }
 0x1ce   : > { %v3638_v56 = vadd.f32 -1.0, %v4017_v53  ;;  %v3575_v46 = vadd.f32 -1.0, %v4019_v5  ;;  %v2007_v14 = vadd.f32 %v1833_v62, %v1832_v6  ;;  %v6135_v23 = vadd.f32 %v7740_v33, %v4794_v50 }
 0x1cf   : > { %v1384_v29 = vmul.f32 1.6732632, %v3573_v37  ;;  %4030 = vpow2.f32 %v1052_v40  ;;  %v1914_v13 = vadd.f32 %v1771_v24, %v1770_v21  ;;  %v1772_v25 = vmul.f32 %v5023_v38, %v5958_v48  ;;  %v4023_v49 = vpop.eup %4022 }
 0x1d0   : > { %v1448_v12 = vmul.f32 1.6732632, %v3637_v2  ;;  %v1385_v55 = vmul.f32 1.6732632, %v3574_v17  ;;  %vm938_vm10 = vcmp.gt.f32.partialorder %v6024_v39, 0.0  ;;  %4032 = vpow2.f32 %v1180_v60  ;;  %2008 = vadd.xlane.f32.xlu1 %v2007_v14  ;;  %v7741_v17 = vld [vmem:[#allocation9_spill] sm:$0xff] }
 0x1d1   : > { %v1054_v53 = vmul.f32 1.442695, %v6131_v58  ;;  %v3639_v5 = vadd.f32 -1.0, %v4021_v42  ;;  %1915 = vadd.xlane.f32.xlu0 %v1914_v13  ;;  %v1182_v6 = vmul.f32 1.442695, %v6135_v23  ;;  %v1773_v37 = vmul.f32 %v5060_v19, %v5981_v9  ;;  %v7742_v42 = vld [vmem:[#allocation10_spill] sm:$0xff] }
 0x1d2   : > { %v1834_v40 = vmul.f32 %v5023_v38, %v5884_v0  ;;  %v1449_v48 = vmul.f32 1.6732632, %v3638_v56  ;;  %v1386_v62 = vmul.f32 1.6732632, %v3575_v46  ;;  %v1835_v2 = vmul.f32 %v5060_v19, %v5955_v35  ;;  %v4025_v21 = vpop.eup %4024 }
 0x1d3   : > { %v6150_v60 = vadd.f32 %v7741_v17, %v4798_v51  ;;  %vm875_vm11 = vcmp.gt.f32.partialorder %v6044_v44, 0.0  ;;  %v3576_v24 = vadd.f32 -1.0, %v4023_v49  ;;  %v1917_v27 = vadd.f32 %v1773_v37, %v1772_v25 }
 0x1d4   : > { %v6155_v9 = vadd.f32 %v7742_v42, %v4798_v51  ;;  %v1512_v0 = vsel %vm872_vm5, %v5966_v10, %v1384_v29  ;;  %v1576_v35 = vsel %vm936_vm6, %v5979_v31, %v1448_v12  ;;  %4034 = vpow2.f32 %v1054_v53  ;;  %v4027_v46 = vpop.eup %4026 }
 0x1d5   : > { %v2010_v56 = vadd.f32 %v1835_v2, %v1834_v40  ;;  %v1513_v14 = vsel %vm873_vm7, %v5985_v20, %v1385_v55  ;;  %v1450_v33 = vmul.f32 1.6732632, %v3639_v5  ;;  %vm939_vm12 = vcmp.gt.f32.partialorder %v6050_v16, 0.0  ;;  %1918 = vadd.xlane.f32.xlu1 %v1917_v27  ;;  %v7743_v55 = vld [vmem:[#allocation11_spill] sm:$0xff] }
 0x1d6   : > { %4036 = vpow2.f32 %v1182_v6  ;;  %v1056_v13 = vmul.f32 1.442695, %v6150_v60  ;;  %v1577_v10 = vsel %vm937_vm8, %v6004_v28, %v1449_v48  ;;  %v1514_v31 = vsel %vm874_vm9, %v6014_v11, %v1386_v62 }
 0x1d7   : > { %v3640_v29 = vadd.f32 -1.0, %v4025_v21  ;;  %2011 = vadd.xlane.f32.xlu0 %v2010_v56  ;;  %v1184_v25 = vmul.f32 1.442695, %v6155_v9  ;;  %v4029_v20 = vpop.eup %4028  ;;  %v6175_v49 = vmul.f32 1.050701, %v1512_v0  ;;  %v6179_v53 = vadd.f32 %v7743_v55, %v4794_v50  ;;  %v7745_v0 = vld [vmem:[#allocation51_spill] sm:$0xff] }
 0x1d8   : > { %v1387_v12 = vmul.f32 1.6732632, %v3576_v24  ;;  %4038 = vpow2.f32 %v1056_v13  ;;  %v6181_v5 = vmul.f32 1.050701, %v1576_v35  ;;  %v6183_v28 = vmul.f32 1.050701, %v1513_v14 }
 0x1d9   : > { %vm876_vm13 = vcmp.gt.f32.partialorder %v6054_v45, 0.0  ;;  %v3577_v11 = vadd.f32 -1.0, %v4027_v46  ;;  %v4031_v6 = vpop.eup %4030  ;;  %v6186_v37 = vmul.f32 1.050701, %v1577_v10  ;;  %v6188_v40 = vmul.f32 1.050701, %v1514_v31 }
 0x1da   : > { %v1578_v48 = vsel %vm938_vm10, %v6024_v39, %v1450_v33  ;;  %v1058_v62 = vmul.f32 1.442695, %v6179_v53  ;;  %v4033_v2 = vpop.eup %4032  ;;  %v1451_v17 = vmul.f32 1.6732632, %v3640_v29  ;;  %v3641_v21 = vadd.f32 -1.0, %v4029_v20  ;;  %v7744_v24 = vld [vmem:[#allocation12_spill] sm:$0xff] }
 0x1db   : > { %4040 = vpow2.f32 %v1184_v25  ;;  %v6196_v27 = vadd.f32 %v7744_v24, %v4794_v50  ;;  %v1515_v42 = vsel %vm875_vm11, %v6044_v44, %v1387_v12  ;;  %vm940_vm14 = vcmp.gt.f32.partialorder %v6071_v30, 0.0 }
 0x1dc   : > { %vm877_vm15 = vcmp.gt.f32.partialorder %v6088_v57, 0.0  ;;  %4042 = vpow2.f32 %v1058_v62  ;;  %v6205_v39 = vadd.f32 %v5431_v52, %v4798_v51  ;;  %v6209_v35 = vadd.f32 %v7745_v0, %v4798_v51 }
 0x1dd   : > { %v1388_v56 = vmul.f32 1.6732632, %v3577_v11  ;;  %v3578_v46 = vadd.f32 -1.0, %v4031_v6  ;;  %vm941_vm0 = vcmp.gt.f32.partialorder %v6098_v63, 0.0  ;;  %v1186_v14 = vmul.f32 1.442695, %v6196_v27 }
 0x1de   : > { %v6213_v44 = vmul.f32 1.050701, %v1578_v48  ;;  %v3642_v33 = vadd.f32 -1.0, %v4033_v2  ;;  %v1060_v13 = vmul.f32 1.442695, %v6205_v39  ;;  %v1836_v10 = vmul.f32 %v5023_v38, %v5968_v59  ;;  %v4035_v52 = vpop.eup %4034 }
 0x1df   : > { %v6218_v31 = vmul.f32 1.050701, %v1515_v42  ;;  %v1579_v29 = vsel %vm939_vm12, %v6050_v16, %v1451_v17  ;;  %v1452_v25 = vmul.f32 1.6732632, %v3641_v21  ;;  %4044 = vpow2.f32 %v1186_v14 }
 0x1e0   : > { %v4037_v20 = vpop.eup %4036  ;;  %4046 = vpow2.f32 %v1060_v13  ;;  %v1188_v12 = vmul.f32 1.442695, %v6209_v35  ;;  %v1837_v55 = vmul.f32 %v5060_v19, %v5991_v26  ;;  %v1774_v11 = vmul.f32 %v5023_v38, %v5995_v61  ;;  %v7746_v61 = vld [vmem:[#allocation13_spill] sm:$0xff] }
 0x1e1   : > { %v1516_v59 = vsel %vm876_vm13, %v6054_v45, %v1388_v56  ;;  %v1389_v6 = vmul.f32 1.6732632, %v3578_v46  ;;  %v1775_v16 = vmul.f32 %v5060_v19, %v6016_v4  ;;  %v6235_v48 = vadd.f32 %v5514_v41, %v4794_v50 }
 0x1e2   : > { %v4039_v62 = vpop.eup %4038  ;;  %v6237_v2 = vmul.f32 1.050701, %v1579_v29  ;;  %v1453_v17 = vmul.f32 1.6732632, %v3642_v33  ;;  %vm878_vm1 = vcmp.gt.f32.partialorder %v6131_v58, 0.0  ;;  %v2013_v26 = vadd.f32 %v1837_v55, %v1836_v10 }
 0x1e3   : > { %v6242_v21 = vadd.f32 %v7746_v61, %v4794_v50  ;;  %v3579_v45 = vadd.f32 -1.0, %v4035_v52  ;;  %vm942_vm2 = vcmp.gt.f32.partialorder %v6135_v23, 0.0  ;;  %v3643_v24 = vadd.f32 -1.0, %v4037_v20 }
 0x1e4   : > { %vm879_vm3 = vcmp.gt.f32.partialorder %v6150_v60, 0.0  ;;  %v1920_v4 = vadd.f32 %v1775_v16, %v1774_v11  ;;  %v1776_v41 = vmul.f32 %v5023_v38, %v6090_v22  ;;  %v6248_v42 = vmul.f32 1.050701, %v1516_v59  ;;  %2014 = vadd.xlane.f32.xlu1 %v2013_v26  ;;  %v7747_v11 = vld [vmem:[#allocation14_spill] sm:$0xff]  ;;  %v7749_v16 = vld [vmem:[#allocation16_spill] sm:$0xff] }
 0x1e5   : > { %v3580_v0 = vadd.f32 -1.0, %v4039_v62  ;;  %4048 = vpow2.f32 %v1188_v12  ;;  %v1062_v56 = vmul.f32 1.442695, %v6235_v48  ;;  %v4041_v46 = vpop.eup %4040  ;;  %v1580_v14 = vsel %vm940_vm14, %v6071_v30, %v1452_v25 }
 0x1e6   : > { %v1517_v33 = vsel %vm877_vm15, %v6088_v57, %v1389_v6  ;;  %1921 = vadd.xlane.f32.xlu0 %v1920_v4  ;;  %v1190_v13 = vmul.f32 1.442695, %v6242_v21  ;;  %v1777_v22 = vmul.f32 %v5060_v19, %v6094_v47  ;;  %v4043_v10 = vpop.eup %4042  ;;  %v1581_v52 = vsel %vm941_vm0, %v6098_v63, %v1453_v17 }
 0x1e7   : > { %4050 = vpow2.f32 %v1062_v56  ;;  %v1838_v29 = vmul.f32 %v5023_v38, %v5997_v7  ;;  %v1839_v30 = vmul.f32 %v5060_v19, %v6056_v32  ;;  %v1390_v25 = vmul.f32 1.6732632, %v3579_v45  ;;  %v7748_v32 = vld [vmem:[#allocation15_spill] sm:$0xff] }
 0x1e8   : > { %v1454_v57 = vmul.f32 1.6732632, %v3643_v24  ;;  %vm943_vm4 = vcmp.gt.f32.partialorder %v6155_v9, 0.0  ;;  %4052 = vpow2.f32 %v1190_v13  ;;  %v1923_v20 = vadd.f32 %v1777_v22, %v1776_v41  ;;  %v7750_v24 = vld [vmem:[#allocation17_spill] sm:$0xff] }
 0x1e9   : > { %v1391_v12 = vmul.f32 1.6732632, %v3580_v0  ;;  %v3644_v47 = vadd.f32 -1.0, %v4041_v46  ;;  %v2016_v55 = vadd.f32 %v1839_v30, %v1838_v29  ;;  %v6270_v59 = vadd.f32 %v7747_v11, %v4798_v51  ;;  %v4045_v63 = vpop.eup %4044 }
 0x1ea   : > { %vm880_vm5 = vcmp.gt.f32.partialorder %v6179_v53, 0.0  ;;  %v3581_v7 = vadd.f32 -1.0, %v4043_v10  ;;  %1924 = vadd.xlane.f32.xlu1 %v1923_v20  ;;  %v6275_v6 = vadd.f32 %v7748_v32, %v4798_v51  ;;  %v6279_v62 = vadd.f32 %v7749_v16, %v4794_v50  ;;  %v4047_v17 = vpop.eup %4046 }
 0x1eb   : > { %v6281_v26 = vmul.f32 1.050701, %v1580_v14  ;;  %v3645_v61 = vadd.f32 -1.0, %v4045_v63  ;;  %2017 = vadd.xlane.f32.xlu0 %v2016_v55  ;;  %v1064_v45 = vmul.f32 1.442695, %v6270_v59  ;;  %v6286_v4 = vadd.f32 %v7750_v24, %v4794_v50  ;;  %v7752_v55 = vld [vmem:[#allocation52_spill] sm:$0xff] }
 0x1ec   : > { %v6288_v41 = vmul.f32 1.050701, %v1517_v33  ;;  %v6290_v0 = vmul.f32 1.050701, %v1581_v52  ;;  %v1518_v56 = vsel %vm878_vm1, %v6131_v58, %v1390_v25  ;;  %v1192_v46 = vmul.f32 1.442695, %v6275_v6 }
 0x1ed   : > { %v1582_v14 = vsel %vm942_vm2, %v6135_v23, %v1454_v57  ;;  %v1519_v13 = vsel %vm879_vm3, %v6150_v60, %v1391_v12  ;;  %v1455_v22 = vmul.f32 1.6732632, %v3644_v47  ;;  %4054 = vpow2.f32 %v1064_v45  ;;  %v7751_v60 = vld [vmem:[#allocation18_spill] sm:$0xff] }
 0x1ee   : > { %v1392_v33 = vmul.f32 1.6732632, %v3581_v7  ;;  %v3582_v10 = vadd.f32 -1.0, %v4047_v17  ;;  %4056 = vpow2.f32 %v1192_v46  ;;  %v1066_v52 = vmul.f32 1.442695, %v6279_v62 }
 0x1ef   : > { %v4049_v29 = vpop.eup %4048  ;;  %vm944_vm6 = vcmp.gt.f32.partialorder %v6196_v27, 0.0  ;;  %v1456_v58 = vmul.f32 1.6732632, %v3645_v61  ;;  %vm881_vm7 = vcmp.gt.f32.partialorder %v6205_v39, 0.0  ;;  %v1194_v30 = vmul.f32 1.442695, %v6286_v4 }
 0x1f0   : > { %v6306_v23 = vmul.f32 1.050701, %v1518_v56  ;;  %v6308_v25 = vmul.f32 1.050701, %v1582_v14  ;;  %4058 = vpow2.f32 %v1066_v52  ;;  %v6312_v57 = vadd.f32 %v7751_v60, %v4798_v51 }
 0x1f1   : > { %v4051_v20 = vpop.eup %4050  ;;  %v6314_v12 = vmul.f32 1.050701, %v1519_v13  ;;  %v1583_v47 = vsel %vm943_vm4, %v6155_v9, %v1455_v22  ;;  %vm945_vm8 = vcmp.gt.f32.partialorder %v6209_v35, 0.0  ;;  %4060 = vpow2.f32 %v1194_v30 }
 0x1f2   : > { %v6322_v11 = vadd.f32 %v7752_v55, %v4798_v51  ;;  %v4053_v63 = vpop.eup %4052  ;;  %v1520_v7 = vsel %vm880_vm5, %v6179_v53, %v1392_v33  ;;  %v1393_v32 = vmul.f32 1.6732632, %v3582_v10  ;;  %v3646_v16 = vadd.f32 -1.0, %v4049_v29 }
 0x1f3   : > { %v1068_v17 = vmul.f32 1.442695, %v6312_v57  ;;  %v1584_v9 = vsel %vm944_vm6, %v6196_v27, %v1456_v58  ;;  %v3583_v61 = vadd.f32 -1.0, %v4051_v20  ;;  %v1840_v24 = vmul.f32 %v5023_v38, %v6092_v34  ;;  %v7753_v34 = vld [vmem:[#allocation19_spill] sm:$0xff] }
 0x1f4   : > { %v1196_v45 = vmul.f32 1.442695, %v6322_v11  ;;  %vm882_vm9 = vcmp.gt.f32.partialorder %v6235_v48, 0.0  ;;  %vm946_vm10 = vcmp.gt.f32.partialorder %v6242_v21, 0.0  ;;  %v3647_v56 = vadd.f32 -1.0, %v4053_v63 }
 0x1f5   : > { %4062 = vpow2.f32 %v1068_v17  ;;  %v1841_v53 = vmul.f32 %v5060_v19, %v6100_v15  ;;  %v1778_v46 = vmul.f32 %v5023_v38, %v6102_v1  ;;  %v6340_v14 = vmul.f32 1.050701, %v1583_v47  ;;  %v7754_v15 = vld [vmem:[#allocation20_spill] sm:$0xff] }
 0x1f6   : > { %4064 = vpow2.f32 %v1196_v45  ;;  %v1779_v27 = vmul.f32 %v5060_v19, %v6107_v8  ;;  %v6346_v13 = vadd.f32 %v7753_v34, %v4794_v50  ;;  %v6348_v22 = vmul.f32 1.050701, %v1520_v7 }
 0x1f7   : > { %v1457_v33 = vmul.f32 1.6732632, %v3646_v16  ;;  %vm883_vm11 = vcmp.gt.f32.partialorder %v6270_v59, 0.0  ;;  %v2019_v10 = vadd.f32 %v1841_v53, %v1840_v24  ;;  %v6353_v52 = vadd.f32 %v7754_v15, %v4794_v50  ;;  %v4055_v1 = vpop.eup %4054 }
 0x1f8   : > { %v6355_v29 = vmul.f32 1.050701, %v1584_v9  ;;  %v1394_v58 = vmul.f32 1.6732632, %v3583_v61  ;;  %vm947_vm12 = vcmp.gt.f32.partialorder %v6275_v6, 0.0  ;;  %v1926_v8 = vadd.f32 %v1779_v27, %v1778_v46  ;;  %v4057_v60 = vpop.eup %4056  ;;  %v7755_v61 = vld [vmem:[#allocation21_spill] sm:$0xff] }
 0x1f9   : > { %v1780_v30 = vmul.f32 %v5023_v38, %v6175_v49  ;;  %v1521_v20 = vsel %vm881_vm7, %v6205_v39, %v1393_v32  ;;  %v1458_v47 = vmul.f32 1.6732632, %v3647_v56  ;;  %v3584_v55 = vadd.f32 -1.0, %v4055_v1  ;;  %2020 = vadd.xlane.f32.xlu1 %v2019_v10 }
 0x1fa   : > { %vm884_vm13 = vcmp.gt.f32.partialorder %v6279_v62, 0.0  ;;  %v1070_v63 = vmul.f32 1.442695, %v6346_v13  ;;  %v3648_v7 = vadd.f32 -1.0, %v4057_v60  ;;  %1927 = vadd.xlane.f32.xlu0 %v1926_v8  ;;  %v1198_v16 = vmul.f32 1.442695, %v6353_v52  ;;  %v4059_v9 = vpop.eup %4058 }
 0x1fb   : > { %v1781_v17 = vmul.f32 %v5060_v19, %v6183_v28  ;;  %v1842_v49 = vmul.f32 %v5023_v38, %v6105_v18  ;;  %v1585_v39 = vsel %vm945_vm8, %v6209_v35, %v1457_v33  ;;  %v1843_v32 = vmul.f32 %v5060_v19, %v6123_v43  ;;  %v4061_v24 = vpop.eup %4060  ;;  %v7756_v8 = vld [vmem:[#allocation22_spill] sm:$0xff] }
 0x1fc   : > { %4066 = vpow2.f32 %v1070_v63  ;;  %v6377_v45 = vadd.f32 %v7755_v61, %v4798_v51  ;;  %v1395_v56 = vmul.f32 1.6732632, %v3584_v55  ;;  %v3585_v53 = vadd.f32 -1.0, %v4059_v9 }
 0x1fd   : > { %vm948_vm14 = vcmp.gt.f32.partialorder %v6286_v4, 0.0  ;;  %4068 = vpow2.f32 %v1198_v16  ;;  %v1929_v18 = vadd.f32 %v1781_v17, %v1780_v30  ;;  %v6380_v28 = vmul.f32 1.050701, %v1521_v20 }
 0x1fe   : > { %v1459_v46 = vmul.f32 1.6732632, %v3648_v7  ;;  %v3649_v27 = vadd.f32 -1.0, %v4061_v24  ;;  %v2022_v35 = vadd.f32 %v1843_v32, %v1842_v49  ;;  %v1522_v43 = vsel %vm882_vm9, %v6235_v48, %v1394_v58  ;;  %v7757_v48 = vld [vmem:[#allocation23_spill] sm:$0xff] }
 0x1ff   : > { %v1586_v34 = vsel %vm946_vm10, %v6242_v21, %v1458_v47  ;;  %v1396_v33 = vmul.f32 1.6732632, %v3585_v53  ;;  %1930 = vadd.xlane.f32.xlu1 %v1929_v18  ;;  %v1072_v10 = vmul.f32 1.442695, %v6377_v45  ;;  %v4063_v15 = vpop.eup %4062  ;;  %v6389_v1 = vmul.f32 1.050701, %v1585_v39 }
 0x200   : > { %vm885_vm15 = vcmp.gt.f32.partialorder %v6312_v57, 0.0  ;;  %2023 = vadd.xlane.f32.xlu0 %v2022_v35  ;;  %v6394_v30 = vadd.f32 %v7756_v8, %v4798_v51  ;;  %v6398_v58 = vadd.f32 %v7757_v48, %v4794_v50  ;;  %v4065_v60 = vpop.eup %4064  ;;  %v1523_v21 = vsel %vm883_vm11, %v6270_v59, %v1395_v56  ;;  %v7758_v47 = vld [vmem:[#allocation24_spill] sm:$0xff]  ;;  %v7759_v39 = vld [vmem:[#allocation53_spill] sm:$0xff] }
 0x201   : > { %v3586_v20 = vadd.f32 -1.0, %v4063_v15  ;;  %4070 = vpow2.f32 %v1072_v10  ;;  %v6405_v55 = vadd.f32 %v7758_v47, %v4794_v50  ;;  %v6407_v63 = vmul.f32 1.050701, %v1522_v43 }
 0x202   : > { %v6409_v7 = vmul.f32 1.050701, %v1586_v34  ;;  %v1587_v16 = vsel %vm947_vm12, %v6275_v6, %v1459_v46  ;;  %v1460_v17 = vmul.f32 1.6732632, %v3649_v27  ;;  %v1524_v49 = vsel %vm884_vm13, %v6279_v62, %v1396_v33  ;;  %v7760_v33 = vld [vmem:[#allocation54_spill] sm:$0xff] }
 0x203   : > { %v3650_v59 = vadd.f32 -1.0, %v4065_v60  ;;  %v1200_v9 = vmul.f32 1.442695, %v6394_v30  ;;  %v6420_v32 = vadd.f32 %v7759_v39, %v4798_v51  ;;  %v6422_v61 = vmul.f32 1.050701, %v1523_v21 }
 0x204   : > { %vm949_vm0 = vcmp.gt.f32.partialorder %v6322_v11, 0.0  ;;  %vm886_vm1 = vcmp.gt.f32.partialorder %v6346_v13, 0.0  ;;  %vm950_vm2 = vcmp.gt.f32.partialorder %v6353_v52, 0.0  ;;  %v1074_v6 = vmul.f32 1.442695, %v6398_v58 }
 0x205   : > { %v6428_v24 = vmul.f32 1.050701, %v1587_v16  ;;  %v1397_v62 = vmul.f32 1.6732632, %v3586_v20  ;;  %4072 = vpow2.f32 %v1200_v9  ;;  %v1202_v56 = vmul.f32 1.442695, %v6405_v55 }
 0x206   : > { %v4067_v53 = vpop.eup %4066  ;;  %v6431_v18 = vmul.f32 1.050701, %v1524_v49  ;;  %v1588_v46 = vsel %vm948_vm14, %v6286_v4, %v1460_v17  ;;  %4074 = vpow2.f32 %v1074_v6  ;;  %v1076_v27 = vmul.f32 1.442695, %v6420_v32 }
 0x207   : > { %v4069_v35 = vpop.eup %4068  ;;  %v1461_v43 = vmul.f32 1.6732632, %v3650_v59  ;;  %v3587_v34 = vadd.f32 -1.0, %v4067_v53  ;;  %4076 = vpow2.f32 %v1202_v56  ;;  %v6439_v10 = vadd.f32 %v7760_v33, %v4798_v51 }
 0x208   : > { %v3651_v15 = vadd.f32 -1.0, %v4069_v35  ;;  %4078 = vpow2.f32 %v1076_v27  ;;  %v1844_v8 = vmul.f32 %v5023_v38, %v6181_v5  ;;  %v1845_v48 = vmul.f32 %v5060_v19, %v6186_v37  ;;  %v6497_v35 = vpop.xlane.xlu0 %1867 }
 0x209   : > { %v1525_v4 = vsel %vm885_vm15, %v6312_v57, %v1397_v62  ;;  %v1398_v60 = vmul.f32 1.6732632, %v3587_v34  ;;  %vm887_vm3 = vcmp.gt.f32.partialorder %v6377_v45, 0.0  ;;  %v1204_v21 = vmul.f32 1.442695, %v6439_v10 }
 0x20a   : > { %v1782_v20 = vmul.f32 %v5023_v38, %v6188_v40  ;;  %v1462_v47 = vmul.f32 1.6732632, %v3651_v15  ;;  %v2025_v16 = vadd.f32 %v1845_v48, %v1844_v8  ;;  %v1783_v5 = vmul.f32 %v5060_v19, %v6218_v31  ;;  %v6506_v48 = vpop.xlane.xlu1 %1966 }
 0x20b   : > { %v6456_v37 = vadd.f32 %v5771_v3, %v4794_v50  ;;  %v4071_v17 = vpop.eup %4070  ;;  %v6458_v49 = vmul.f32 1.050701, %v1588_v46  ;;  %vm951_vm4 = vcmp.gt.f32.partialorder %v6394_v30, 0.0  ;;  %4080 = vpow2.f32 %v1204_v21  ;;  %v7761_v46 = vld [vmem:[#allocation25_spill] sm:$0xff] }
 0x20c   : > { %v6463_v57 = vadd.f32 %v5773_v54, %v4794_v50  ;;  %v6465_v40 = vmul.f32 1.050701, %v1525_v4  ;;  %v3588_v59 = vadd.f32 -1.0, %v4071_v17  ;;  %vm888_vm5 = vcmp.gt.f32.partialorder %v6398_v58, 0.0  ;;  %2026 = vadd.xlane.f32.xlu1 %v2025_v16 }
 0x20d   : > { %v1932_v31 = vadd.f32 %v1783_v5, %v1782_v20  ;;  %v1784_v3 = vmul.f32 %v5023_v38, %v6248_v42  ;;  %v1589_v9 = vsel %vm949_vm0, %v6322_v11, %v1461_v43  ;;  %v1526_v39 = vsel %vm886_vm1, %v6346_v13, %v1398_v60 }
 0x20e   : > { %v1590_v54 = vsel %vm950_vm2, %v6353_v52, %v1462_v47  ;;  %vm952_vm6 = vcmp.gt.f32.partialorder %v6405_v55, 0.0  ;;  %v1078_v6 = vmul.f32 1.442695, %v6456_v37  ;;  %v1399_v62 = vmul.f32 1.6732632, %v3588_v59  ;;  %v7762_v59 = vld [vmem:[#allocation26_spill] sm:$0xff] }
 0x20f   : > { %vm889_vm7 = vcmp.gt.f32.partialorder %v6420_v32, 0.0  ;;  %1933 = vadd.xlane.f32.xlu0 %v1932_v31  ;;  %v1206_v42 = vmul.f32 1.442695, %v6463_v57  ;;  %v1785_v11 = vmul.f32 %v5060_v19, %v6288_v41  ;;  %v1846_v13 = vmul.f32 %v5023_v38, %v6213_v44  ;;  %v4073_v56 = vpop.eup %4072 }
 0x210   : > { %4082 = vpow2.f32 %v1078_v6  ;;  %v1847_v52 = vmul.f32 %v5060_v19, %v6237_v2  ;;  %v6491_v53 = vadd.f32 %v5781_v36, %v4798_v51  ;;  %v6495_v27 = vadd.f32 %v7761_v46, %v4798_v51  ;;  %v4075_v43 = vpop.eup %4074 }
 0x211   : > { %v6499_v41 = vmul.f32 1.050701, %v1589_v9  ;;  %v3652_v34 = vadd.f32 -1.0, %v4073_v56  ;;  %4084 = vpow2.f32 %v1206_v42  ;;  %v1935_v44 = vadd.f32 %v1785_v11, %v1784_v3  ;;  %v4077_v33 = vpop.eup %4076  ;;  %v6528_v42 = vpop.xlane.xlu0 %1963 }
 0x212   : > { %v6501_v15 = vmul.f32 1.050701, %v1526_v39  ;;  %v6503_v2 = vmul.f32 1.050701, %v1590_v54  ;;  %v3589_v8 = vadd.f32 -1.0, %v4075_v43  ;;  %vm953_vm8 = vcmp.gt.f32.partialorder %v6439_v10, 0.0  ;;  %v4079_v4 = vpop.eup %4078  ;;  %v6530_v11 = vpop.xlane.xlu1 %1873 }
 0x213   : > { %v2028_v36 = vadd.f32 %v1847_v52, %v1846_v13  ;;  %v1527_v60 = vsel %vm887_vm3, %v6377_v45, %v1399_v62  ;;  %v1463_v21 = vmul.f32 1.6732632, %v3652_v34  ;;  %v3653_v20 = vadd.f32 -1.0, %v4077_v33  ;;  %1936 = vadd.xlane.f32.xlu1 %v1935_v44  ;;  %v7763_v45 = vld [vmem:[#allocation27_spill] sm:$0xff] }
 0x214   : > { %v1080_v47 = vmul.f32 1.442695, %v6491_v53  ;;  %v1400_v16 = vmul.f32 1.6732632, %v3589_v8  ;;  %v3590_v5 = vadd.f32 -1.0, %v4079_v4  ;;  %v6515_v31 = vadd.f32 %v7762_v59, %v4794_v50 }
 0x215   : > { %2029 = vadd.xlane.f32.xlu0 %v2028_v36  ;;  %v1208_v17 = vmul.f32 1.442695, %v6495_v27  ;;  %v1591_v3 = vsel %vm951_vm4, %v6394_v30, %v1463_v21  ;;  %v1464_v9 = vmul.f32 1.6732632, %v3653_v20  ;;  %v6522_v39 = vadd.f32 %v7763_v45, %v4794_v50  ;;  %v4081_v54 = vpop.eup %4080  ;;  %v7765_v36 = vld [vmem:[#allocation29_spill] sm:$0xff] }
 0x216   : > { %4086 = vpow2.f32 %v1080_v47  ;;  %v1528_v6 = vsel %vm888_vm5, %v6398_v58, %v1400_v16  ;;  %v1401_v62 = vmul.f32 1.6732632, %v3590_v5  ;;  %vm890_vm9 = vcmp.gt.f32.partialorder %v6456_v37, 0.0 }
 0x217   : > { %4088 = vpow2.f32 %v1208_v17  ;;  %v6532_v30 = vmul.f32 1.050701, %v1527_v60  ;;  %v1592_v50 = vsel %vm952_vm6, %v6405_v55, %v1464_v9  ;;  %v3654_v13 = vadd.f32 -1.0, %v4081_v54  ;;  %v7764_v55 = vld [vmem:[#allocation28_spill] sm:$0xff]  ;;  %v6571_v17 = vpop.xlane.xlu0 %1870 }
 0x218   : > { %vm954_vm10 = vcmp.gt.f32.partialorder %v6463_v57, 0.0  ;;  %v6538_v56 = vmul.f32 1.050701, %v1591_v3  ;;  %v6540_v58 = vmul.f32 1.050701, %v1528_v6  ;;  %v1529_v52 = vsel %vm889_vm7, %v6420_v32, %v1401_v62 }
 0x219   : > { %v1082_v46 = vmul.f32 1.442695, %v6515_v31  ;;  %v6546_v43 = vmul.f32 1.050701, %v1592_v50  ;;  %v1465_v34 = vmul.f32 1.6732632, %v3654_v13  ;;  %v6551_v33 = vadd.f32 %v7764_v55, %v4798_v51 }
 0x21a   : > { %v1210_v44 = vmul.f32 1.442695, %v6522_v39  ;;  %v4083_v8 = vpop.eup %4082  ;;  %v6555_v4 = vadd.f32 %v7765_v36, %v4798_v51  ;;  %v1848_v32 = vmul.f32 %v5023_v38, %v6281_v26  ;;  %v1849_v60 = vmul.f32 %v5060_v19, %v6290_v0  ;;  %v6573_v0 = vpop.xlane.xlu1 %1876 }
 0x21b   : > { %4090 = vpow2.f32 %v1082_v46  ;;  %v4085_v21 = vpop.eup %4084  ;;  %v6561_v20 = vmul.f32 1.050701, %v1529_v52  ;;  %v1593_v47 = vsel %vm953_vm8, %v6439_v10, %v1465_v34  ;;  %v3591_v16 = vadd.f32 -1.0, %v4083_v8 }
 0x21c   : > { %vm891_vm11 = vcmp.gt.f32.partialorder %v6491_v53, 0.0  ;;  %4092 = vpow2.f32 %v1210_v44  ;;  %v6567_v5 = vmul.f32 1.050701, %v1593_v47  ;;  %v3655_v51 = vadd.f32 -1.0, %v4085_v21 }
 0x21d   : > { %vm955_vm12 = vcmp.gt.f32.partialorder %v6495_v27, 0.0  ;;  %v1084_v26 = vmul.f32 1.442695, %v6551_v33  ;;  %v1402_v59 = vmul.f32 1.6732632, %v3591_v16  ;;  %v2031_v9 = vadd.f32 %v1849_v60, %v1848_v32  ;;  %v6606_v32 = vpop.xlane.xlu0 %1969 }
 0x21e   : > { %v1212_v3 = vmul.f32 1.442695, %v6555_v4  ;;  %v1786_v10 = vmul.f32 %v5023_v38, %v6306_v23  ;;  %v1466_v45 = vmul.f32 1.6732632, %v3655_v51  ;;  %v1787_v54 = vmul.f32 %v5060_v19, %v6314_v12  ;;  %v6608_v60 = vpop.xlane.xlu1 %1972 }
 0x21f   : > { %4094 = vpow2.f32 %v1084_v26  ;;  %v1788_v6 = vmul.f32 %v5023_v38, %v6348_v22  ;;  %v1530_v50 = vsel %vm890_vm9, %v6456_v37, %v1402_v59  ;;  %2032 = vadd.xlane.f32.xlu1 %v2031_v9  ;;  %v1789_v13 = vmul.f32 %v5060_v19, %v6380_v28 }
 0x220   : > { %v4087_v62 = vpop.eup %4086  ;;  %4096 = vpow2.f32 %v1212_v3  ;;  %v1850_v23 = vmul.f32 %v5023_v38, %v6308_v25  ;;  %v6589_v46 = vmul.f32 1.050701, %v1530_v50  ;;  %v1594_v12 = vsel %vm954_vm10, %v6463_v57, %v1466_v45 }
 0x221   : > { %v4089_v52 = vpop.eup %4088  ;;  %v3592_v22 = vadd.f32 -1.0, %v4087_v62  ;;  %vm892_vm13 = vcmp.gt.f32.partialorder %v6515_v31, 0.0  ;;  %v1938_v34 = vadd.f32 %v1787_v54, %v1786_v10  ;;  %v6595_v37 = vmul.f32 1.050701, %v1594_v12 }
 0x222   : > { %v3656_v44 = vadd.f32 -1.0, %v4089_v52  ;;  %vm956_vm14 = vcmp.gt.f32.partialorder %v6522_v39, 0.0  ;;  %v1941_v28 = vadd.f32 %v1789_v13, %v1788_v6  ;;  %v1851_v25 = vmul.f32 %v5060_v19, %v6340_v14  ;;  %v6640_v52 = vpop.xlane.xlu0 %1879 }
 0x223   : > { %v1403_v55 = vmul.f32 1.6732632, %v3592_v22  ;;  %1939 = vadd.xlane.f32.xlu0 %v1938_v34  ;;  %v1852_v8 = vmul.f32 %v5023_v38, %v6355_v29  ;;  %v1853_v57 = vmul.f32 %v5060_v19, %v6389_v1  ;;  %v1790_v36 = vmul.f32 %v5023_v38, %v6407_v63 }
 0x224   : > { %v1467_v21 = vmul.f32 1.6732632, %v3656_v44  ;;  %1942 = vadd.xlane.f32.xlu1 %v1941_v28  ;;  %v2034_v47 = vadd.f32 %v1851_v25, %v1850_v23  ;;  %v1791_v14 = vmul.f32 %v5060_v19, %v6422_v61  ;;  %v1792_v16 = vmul.f32 %v5023_v38, %v6431_v18 }
 0x225   : > { %v4091_v29 = vpop.eup %4090  ;;  %v1531_v1 = vsel %vm891_vm11, %v6491_v53, %v1403_v55  ;;  %vm893_vm15 = vcmp.gt.f32.partialorder %v6551_v33, 0.0  ;;  %v2037_v63 = vadd.f32 %v1853_v57, %v1852_v8  ;;  %v1793_v51 = vmul.f32 %v5060_v19, %v6465_v40 }
 0x226   : > { %v1854_v26 = vmul.f32 %v5023_v38, %v6409_v7  ;;  %v4093_v59 = vpop.eup %4092  ;;  %v1659_v3 = vmul.f32 1.050701, %v1531_v1  ;;  %v1595_v61 = vsel %vm955_vm12, %v6495_v27, %v1467_v21  ;;  %v3593_v18 = vadd.f32 -1.0, %v4091_v29  ;;  %v1976_v29 = vpop.xlane.xlu0 %1975 }
 0x227   : > { %vm957_vm0 = vcmp.gt.f32.partialorder %v6555_v4, 0.0  ;;  %v1944_v9 = vadd.f32 %v1791_v14, %v1790_v36  ;;  %v1723_v53 = vmul.f32 1.050701, %v1595_v61  ;;  %v3657_v10 = vadd.f32 -1.0, %v4093_v59  ;;  %2035 = vadd.xlane.f32.xlu0 %v2034_v47 }
 0x228   : > { %v1947_v45 = vadd.f32 %v1793_v51, %v1792_v16  ;;  %v1855_v40 = vmul.f32 %v5060_v19, %v6428_v24  ;;  %v1404_v54 = vmul.f32 1.6732632, %v3593_v18  ;;  %2038 = vadd.xlane.f32.xlu1 %v2037_v63  ;;  %v1856_v7 = vmul.f32 %v5023_v38, %v6458_v49  ;;  %v6642_v49 = vpop.xlane.xlu1 %1882 }
 0x229   : > { %v1857_v6 = vmul.f32 %v5060_v19, %v6499_v41  ;;  %v1794_v27 = vmul.f32 %v5023_v38, %v6501_v15  ;;  %v4095_v62 = vpop.eup %4094  ;;  %v1468_v50 = vmul.f32 1.6732632, %v3657_v10  ;;  %v1795_v23 = vmul.f32 %v5060_v19, %v6532_v30 }
 0x22a   : > { %v2040_v13 = vadd.f32 %v1855_v40, %v1854_v26  ;;  %v1796_v24 = vmul.f32 %v5023_v38, %v6540_v58  ;;  %v4097_v12 = vpop.eup %4096  ;;  %v1532_v41 = vsel %vm892_vm13, %v6515_v31, %v1404_v54  ;;  %v3594_v15 = vadd.f32 -1.0, %v4095_v62  ;;  %v1886_v40 = vpop.xlane.xlu0 %1885 }
 0x22b   : > { %v2043_v22 = vadd.f32 %v1857_v6, %v1856_v7  ;;  %v1797_v34 = vmul.f32 %v5060_v19, %v6561_v20  ;;  %v1660_v30 = vmul.f32 1.050701, %v1532_v41  ;;  %v1596_v58 = vsel %vm956_vm14, %v6522_v39, %v1468_v50  ;;  %1945 = vadd.xlane.f32.xlu0 %v1944_v9 }
 0x22c   : > { %v3658_v44 = vadd.f32 -1.0, %v4097_v12  ;;  %v1950_v28 = vadd.f32 %v1795_v23, %v1794_v27  ;;  %v1724_v25 = vmul.f32 1.050701, %v1596_v58  ;;  %v1405_v55 = vmul.f32 1.6732632, %v3594_v15  ;;  %1948 = vadd.xlane.f32.xlu1 %v1947_v45  ;;  %v1979_v1 = vpop.xlane.xlu1 %1978 }
 0x22d   : > { %v1953_v8 = vadd.f32 %v1797_v34, %v1796_v24  ;;  %v1858_v31 = vmul.f32 %v5023_v38, %v6503_v2  ;;  %v1859_v36 = vmul.f32 %v5060_v19, %v6538_v56  ;;  %v1860_v20 = vmul.f32 %v5023_v38, %v6546_v43 }
 0x22e   : > { %v1469_v57 = vmul.f32 1.6732632, %v3658_v44  ;;  %v1861_v39 = vmul.f32 %v5060_v19, %v6567_v5  ;;  %v1533_v21 = vsel %vm893_vm15, %v6551_v33, %v1405_v55  ;;  %v1798_v47 = vmul.f32 %v5023_v38, %v6589_v46  ;;  %v1982_v23 = vpop.xlane.xlu0 %1981 }
 0x22f   : > { %v1799_v14 = vmul.f32 %v5060_v19, %v1659_v3  ;;  %v1800_v2 = vmul.f32 %v5023_v38, %v1660_v30  ;;  %v1661_v16 = vmul.f32 1.050701, %v1533_v21  ;;  %2041 = vadd.xlane.f32.xlu0 %v2040_v13  ;;  %v2046_v43 = vadd.f32 %v1859_v36, %v1858_v31 }
 0x230   : > { %v1597_v56 = vsel %vm957_vm0, %v6555_v4, %v1469_v57  ;;  %v2049_v5 = vadd.f32 %v1861_v39, %v1860_v20  ;;  %2044 = vadd.xlane.f32.xlu1 %v2043_v22  ;;  %v1862_v46 = vmul.f32 %v5023_v38, %v6595_v37  ;;  %v1863_v51 = vmul.f32 %v5060_v19, %v1723_v53  ;;  %v1889_v54 = vpop.xlane.xlu1 %1888 }
 0x231   : > { %v1725_v63 = vmul.f32 1.050701, %v1597_v56  ;;  %v1956_v33 = vadd.f32 %v1799_v14, %v1798_v47  ;;  %v1801_v26 = vmul.f32 %v5060_v19, %v1661_v16  ;;  %v1864_v59 = vmul.f32 %v5023_v38, %v1724_v25 }
 0x232   : > { %v6676_v3 = vstv %s6638_s24  ;;  %v2052_v4 = vadd.f32 %v1863_v51, %v1862_v46  ;;  %v6766_v51 = vpop.xlane.xlu0 %1891 }
 0x233   : > { %v1865_v61 = vmul.f32 %v5060_v19, %v1725_v63  ;;  %v6681_v18 = vadd.f32 %v6676_v3, %v6497_v35  ;;  %v6685_v9 = vadd.f32 %v6676_v3, %v6506_v48  ;;  %1951 = vadd.xlane.f32.xlu0 %v1950_v28  ;;  %v1959_v37 = vadd.f32 %v1801_v26, %v1800_v2 }
 0x234   : > { %v6689_v53 = vadd.f32 %v6676_v3, %v6528_v42  ;;  %v6693_v38 = vadd.f32 %v6676_v3, %v6530_v11  ;;  %v6697_v19 = vadd.f32 %v6676_v3, %v6571_v17  ;;  %1954 = vadd.xlane.f32.xlu1 %v1953_v8  ;;  %v6706_v17 = vadd.f32 %v6676_v3, %v6573_v0  ;;  %v1985_v24 = vpop.xlane.xlu1 %1984 }
 0x235   : > { %v2055_v35 = vadd.f32 %v1865_v61, %v1864_v59  ;;  %v2188_v10 = vmul.f32 1.442695, %v6681_v18  ;;  %v2254_v48 = vmul.f32 1.442695, %v6685_v9  ;;  %v6710_v7 = vadd.f32 %v6676_v3, %v6606_v32 }
 0x236   : > { %v2252_v45 = vmul.f32 1.442695, %v6689_v53  ;;  %v2192_v42 = vmul.f32 1.442695, %v6693_v38  ;;  %v2190_v11 = vmul.f32 1.442695, %v6697_v19  ;;  %v6714_v6 = vadd.f32 %v6676_v3, %v6608_v60 }
 0x237   : > { %4098 = vpow2.f32 %v2188_v10  ;;  %2047 = vadd.xlane.f32.xlu0 %v2046_v43  ;;  %v6718_v27 = vadd.f32 %v6676_v3, %v6640_v52  ;;  %v6722_v62 = vadd.f32 %v6676_v3, %v6642_v49  ;;  %v6725_v0 = vadd.f32 %v6676_v3, %v1976_v29 }
 0x238   : > { %4100 = vpow2.f32 %v2254_v48  ;;  %2050 = vadd.xlane.f32.xlu1 %v2049_v5  ;;  %v2194_v32 = vmul.f32 1.442695, %v6706_v17  ;;  %v2256_v60 = vmul.f32 1.442695, %v6710_v7  ;;  %v2258_v50 = vmul.f32 1.442695, %v6714_v6 }
 0x239   : > { %4102 = vpow2.f32 %v2252_v45  ;;  %v2196_v13 = vmul.f32 1.442695, %v6718_v27  ;;  %v2198_v52 = vmul.f32 1.442695, %v6722_v62  ;;  %v2260_v49 = vmul.f32 1.442695, %v6725_v0 }
 0x23a   : > { %4104 = vpow2.f32 %v2192_v42  ;;  %v6734_v12 = vadd.f32 %v6676_v3, %v1979_v1  ;;  %v6737_v41 = vadd.f32 %v6676_v3, %v1886_v40  ;;  %v6740_v15 = vadd.f32 %v6676_v3, %v1889_v54 }
 0x23b   : > { %4106 = vpow2.f32 %v2190_v11  ;;  %1957 = vadd.xlane.f32.xlu0 %v1956_v33  ;;  %v6743_v22 = vadd.f32 %v6676_v3, %v1982_v23  ;;  %v6746_v34 = vadd.f32 %v6676_v3, %v1985_v24  ;;  %vm2124_vm1 = vcmp.gt.f32.partialorder %v6681_v18, 0.0 }
 0x23c   : > { %4108 = vpow2.f32 %v2194_v32  ;;  %1960 = vadd.xlane.f32.xlu1 %v1959_v37  ;;  %vm2157_vm2 = vcmp.gt.f32.partialorder %v6685_v9, 0.0  ;;  %v2262_v30 = vmul.f32 1.442695, %v6734_v12  ;;  %vm2156_vm3 = vcmp.gt.f32.partialorder %v6689_v53, 0.0 }
 0x23d   : > { %4110 = vpow2.f32 %v2256_v60  ;;  %v2200_v44 = vmul.f32 1.442695, %v6737_v41  ;;  %v2202_v28 = vmul.f32 1.442695, %v6740_v15  ;;  %vm2126_vm4 = vcmp.gt.f32.partialorder %v6693_v38, 0.0 }
 0x23e   : > { %4112 = vpow2.f32 %v2258_v50  ;;  %v2264_v8 = vmul.f32 1.442695, %v6743_v22  ;;  %vm2125_vm5 = vcmp.gt.f32.partialorder %v6697_v19, 0.0  ;;  %v2266_v36 = vmul.f32 1.442695, %v6746_v34 }
 0x23f   : > { %4114 = vpow2.f32 %v2196_v13  ;;  %2053 = vadd.xlane.f32.xlu0 %v2052_v4  ;;  %vm2127_vm6 = vcmp.gt.f32.partialorder %v6706_v17, 0.0  ;;  %vm2158_vm7 = vcmp.gt.f32.partialorder %v6710_v7, 0.0  ;;  %vm2159_vm8 = vcmp.gt.f32.partialorder %v6714_v6, 0.0 }
 0x240   : > { %4116 = vpow2.f32 %v2198_v52  ;;  %2056 = vadd.xlane.f32.xlu1 %v2055_v35  ;;  %vm2128_vm9 = vcmp.gt.f32.partialorder %v6718_v27, 0.0  ;;  %vm2129_vm10 = vcmp.gt.f32.partialorder %v6722_v62, 0.0  ;;  %vm2160_vm11 = vcmp.gt.f32.partialorder %v6725_v0, 0.0 }
 0x241   : > { %v4099_v58 = vpop.eup %4098  ;;  %4118 = vpow2.f32 %v2260_v49  ;;  %v6787_v49 = vpop.xlane.xlu1 %1894  ;;  %vm2161_vm12 = vcmp.gt.f32.partialorder %v6734_v12, 0.0  ;;  %vm2130_vm13 = vcmp.gt.f32.partialorder %v6737_v41, 0.0  ;;  %vm2131_vm14 = vcmp.gt.f32.partialorder %v6740_v15, 0.0 }
 0x242   : > { %v4101_v25 = vpop.eup %4100  ;;  %v3659_v55 = vadd.f32 -1.0, %v4099_v58  ;;  %4120 = vpow2.f32 %v2262_v30  ;;  %vm2162_vm15 = vcmp.gt.f32.partialorder %v6743_v22, 0.0  ;;  %vm2163_vm0 = vcmp.gt.f32.partialorder %v6746_v34, 0.0 }
 0x243   : > { %v4103_v31 = vpop.eup %4102  ;;  %v3692_v57 = vadd.f32 -1.0, %v4101_v25  ;;  %4122 = vpow2.f32 %v2200_v44 }
 0x244   : > { %v4105_v20 = vpop.eup %4104  ;;  %v2380_v39 = vmul.f32 1.6732632, %v3659_v55  ;;  %v3691_v21 = vadd.f32 -1.0, %v4103_v31  ;;  %4124 = vpow2.f32 %v2202_v28 }
 0x245   : > { %v4107_v47 = vpop.eup %4106  ;;  %v2413_v14 = vmul.f32 1.6732632, %v3692_v57  ;;  %v3661_v2 = vadd.f32 -1.0, %v4105_v20  ;;  %4126 = vpow2.f32 %v2264_v8 }
 0x246   : > { %v4109_v16 = vpop.eup %4108  ;;  %v2444_v56 = vsel %vm2124_vm1, %v6681_v18, %v2380_v39  ;;  %v2412_v43 = vmul.f32 1.6732632, %v3691_v21  ;;  %v3660_v5 = vadd.f32 -1.0, %v4107_v47  ;;  %4128 = vpow2.f32 %v2266_v36 }
 0x247   : > { %v4111_v29 = vpop.eup %4110  ;;  %v2508_v1 = vmul.f32 1.050701, %v2444_v56  ;;  %v2477_v63 = vsel %vm2157_vm2, %v6685_v9, %v2413_v14  ;;  %v2382_v33 = vmul.f32 1.6732632, %v3661_v2  ;;  %v3662_v46 = vadd.f32 -1.0, %v4109_v16 }
 0x248   : > { %v4113_v26 = vpop.eup %4112  ;;  %v2541_v59 = vmul.f32 1.050701, %v2477_v63  ;;  %v2476_v4 = vsel %vm2156_vm3, %v6689_v53, %v2412_v43  ;;  %v2381_v61 = vmul.f32 1.6732632, %v3660_v5  ;;  %v3693_v18 = vadd.f32 -1.0, %v4111_v29 }
 0x249   : > { %v4115_v37 = vpop.eup %4114  ;;  %v2572_v35 = vsub.f32 0.0, %v2508_v1  ;;  %v2540_v10 = vmul.f32 1.050701, %v2476_v4  ;;  %v2446_v48 = vsel %vm2126_vm4, %v6693_v38, %v2382_v33  ;;  %v2383_v9 = vmul.f32 1.6732632, %v3662_v46  ;;  %v6798_v1 = vpop.xlane.xlu1 %1990 }
 0x24a   : > { %v4117_v45 = vpop.eup %4116  ;;  %v2605_v40 = vsub.f32 0.0, %v2541_v59  ;;  %v2510_v54 = vmul.f32 1.050701, %v2446_v48  ;;  %v2445_v42 = vsel %vm2125_vm5, %v6697_v19, %v2381_v61  ;;  %v2414_v53 = vmul.f32 1.6732632, %v3693_v18 }
 0x24b   : > { %v4119_v11 = vpop.eup %4118  ;;  %v2636_v32 = vmul.f32 1.442695, %v2572_v35  ;;  %v2604_v60 = vsub.f32 0.0, %v2540_v10  ;;  %v2509_v50 = vmul.f32 1.050701, %v2445_v42  ;;  %v2447_v38 = vsel %vm2127_vm6, %v6706_v17, %v2383_v9  ;;  %v6790_v17 = vpop.xlane.xlu0 %1987 }
 0x24c   : > { %v4121_v13 = vpop.eup %4120  ;;  %v2702_v23 = vmul.f32 1.442695, %v2605_v40  ;;  %v2574_v24 = vsub.f32 0.0, %v2510_v54  ;;  %v2511_v52 = vmul.f32 1.050701, %v2447_v38  ;;  %v2478_v19 = vsel %vm2158_vm7, %v6710_v7, %v2414_v53 }
 0x24d   : > { %v4123_v30 = vpop.eup %4122  ;;  %4130 = vpow2.f32 %v2636_v32  ;;  %v2700_v58 = vmul.f32 1.442695, %v2604_v60  ;;  %v2573_v44 = vsub.f32 0.0, %v2509_v50  ;;  %v2542_v28 = vmul.f32 1.050701, %v2478_v19  ;;  %v6820_v32 = vpop.xlane.xlu1 %1900 }
 0x24e   : > { %v4125_v25 = vpop.eup %4124  ;;  %4132 = vpow2.f32 %v2702_v23  ;;  %v2640_v55 = vmul.f32 1.442695, %v2574_v24  ;;  %v2575_v8 = vsub.f32 0.0, %v2511_v52  ;;  %v3694_v31 = vadd.f32 -1.0, %v4113_v26 }
 0x24f   : > { %v4127_v57 = vpop.eup %4126  ;;  %4134 = vpow2.f32 %v2700_v58  ;;  %v2638_v7 = vmul.f32 1.442695, %v2573_v44  ;;  %v2606_v36 = vsub.f32 0.0, %v2542_v28  ;;  %v3663_v20 = vadd.f32 -1.0, %v4115_v37  ;;  %v6803_v26 = vpop.xlane.xlu0 %1897 }
 0x250   : > { %v6793_v39 = vpop.eup %4128  ;;  %4136 = vpow2.f32 %v2640_v55  ;;  %v2642_v21 = vmul.f32 1.442695, %v2575_v8  ;;  %v2415_v47 = vmul.f32 1.6732632, %v3694_v31  ;;  %v3664_v14 = vadd.f32 -1.0, %v4117_v45 }
 0x251   : > { %4138 = vpow2.f32 %v2638_v7  ;;  %v2704_v2 = vmul.f32 1.442695, %v2606_v36  ;;  %v2384_v16 = vmul.f32 1.6732632, %v3663_v20  ;;  %v3695_v56 = vadd.f32 -1.0, %v4119_v11 }
 0x252   : > { %4140 = vpow2.f32 %v2642_v21  ;;  %v2479_v43 = vsel %vm2159_vm8, %v6714_v6, %v2415_v47  ;;  %v2385_v5 = vmul.f32 1.6732632, %v3664_v14  ;;  %v3696_v29 = vadd.f32 -1.0, %v4121_v13  ;;  %v6829_v14 = vpop.xlane.xlu1 %1996 }
 0x253   : > { %4142 = vpow2.f32 %v2704_v2  ;;  %v2543_v63 = vmul.f32 1.050701, %v2479_v43  ;;  %v2448_v33 = vsel %vm2128_vm9, %v6718_v27, %v2384_v16  ;;  %v2416_v46 = vmul.f32 1.6732632, %v3695_v56  ;;  %v6822_v13 = vpop.xlane.xlu0 %1993 }
 0x254   : > { %v2512_v59 = vmul.f32 1.050701, %v2448_v33  ;;  %v2449_v4 = vsel %vm2129_vm10, %v6722_v62, %v2385_v5  ;;  %v2417_v61 = vmul.f32 1.6732632, %v3696_v29  ;;  %v3665_v6 = vadd.f32 -1.0, %v4123_v30 }
 0x255   : > { %v2607_v18 = vsub.f32 0.0, %v2543_v63  ;;  %v2513_v37 = vmul.f32 1.050701, %v2449_v4  ;;  %v2480_v35 = vsel %vm2160_vm11, %v6725_v0, %v2416_v46  ;;  %v3666_v54 = vadd.f32 -1.0, %v4125_v25 }
 0x256   : > { %v2576_v10 = vsub.f32 0.0, %v2512_v59  ;;  %v2544_v27 = vmul.f32 1.050701, %v2480_v35  ;;  %v2481_v48 = vsel %vm2161_vm12, %v6734_v12, %v2417_v61  ;;  %v2386_v9 = vmul.f32 1.6732632, %v3665_v6 }
 0x257   : > { %v4131_v45 = vpop.eup %4130  ;;  %v2706_v40 = vmul.f32 1.442695, %v2607_v18  ;;  %v2545_v62 = vmul.f32 1.050701, %v2481_v48  ;;  %v3697_v11 = vadd.f32 -1.0, %v4127_v57  ;;  %v2577_v38 = vsub.f32 0.0, %v2513_v37  ;;  %v6834_v43 = vpop.xlane.xlu0 %1903 }
 0x258   : > { %v4133_v42 = vpop.eup %4132  ;;  %v2764_v53 = vadd.f32 1.0, %v4131_v45  ;;  %v2450_v0 = vsel %vm2130_vm13, %v6737_v41, %v2386_v9  ;;  %v2644_v50 = vmul.f32 1.442695, %v2576_v10  ;;  %v2608_v52 = vsub.f32 0.0, %v2544_v27  ;;  %v1907_v10 = vpop.xlane.xlu1 %1906 }
 0x259   : > { %v4135_v60 = vpop.eup %4134  ;;  %v2797_v12 = vadd.f32 1.0, %v4133_v42  ;;  %4144 = vpow2.f32 %v2706_v40  ;;  %v2514_v19 = vmul.f32 1.050701, %v2450_v0  ;;  %v2609_v58 = vsub.f32 0.0, %v2545_v62 }
 0x25a   : > { %v4137_v23 = vpop.eup %4136  ;;  %4146 = vrcp.f32 %v2764_v53  ;;  %v2796_v24 = vadd.f32 1.0, %v4135_v60  ;;  %v2387_v44 = vmul.f32 1.6732632, %v3666_v54  ;;  %v2418_v8 = vmul.f32 1.6732632, %v3697_v11 }
 0x25b   : > { %v4139_v30 = vpop.eup %4138  ;;  %4148 = vrcp.f32 %v2797_v12  ;;  %v2766_v41 = vadd.f32 1.0, %v4137_v23  ;;  %v2578_v55 = vsub.f32 0.0, %v2514_v19  ;;  %v3698_v36 = vadd.f32 -1.0, %v6793_v39 }
 0x25c   : > { %v4141_v28 = vpop.eup %4140  ;;  %4150 = vrcp.f32 %v2796_v24  ;;  %v2765_v25 = vadd.f32 1.0, %v4139_v30  ;;  %v2451_v7 = vsel %vm2131_vm14, %v6740_v15, %v2387_v44  ;;  %v2646_v21 = vmul.f32 1.442695, %v2577_v38  ;;  %v2003_v0 = vpop.xlane.xlu1 %2002 }
 0x25d   : > { %v4143_v31 = vpop.eup %4142  ;;  %4152 = vrcp.f32 %v2766_v41  ;;  %v2767_v57 = vadd.f32 1.0, %v4141_v28  ;;  %v2515_v47 = vmul.f32 1.050701, %v2451_v7  ;;  %v2708_v2 = vmul.f32 1.442695, %v2608_v52 }
 0x25e   : > { %4154 = vrcp.f32 %v2765_v25  ;;  %v2798_v20 = vadd.f32 1.0, %v4143_v31  ;;  %v2482_v16 = vsel %vm2162_vm15, %v6743_v22, %v2418_v8  ;;  %v2419_v56 = vmul.f32 1.6732632, %v3698_v36 }
 0x25f   : > { %4156 = vrcp.f32 %v2767_v57  ;;  %v2710_v15 = vmul.f32 1.442695, %v2609_v58  ;;  %v2579_v5 = vsub.f32 0.0, %v2515_v47  ;;  %v2546_v39 = vmul.f32 1.050701, %v2482_v16 }
 0x260   : > { %4158 = vrcp.f32 %v2798_v20  ;;  %vm2956_vm1 = vcmask 7168   ;;  %v2648_v29 = vmul.f32 1.442695, %v2578_v55  ;;  %v2483_v63 = vsel %vm2163_vm0, %v6746_v34, %v2419_v56  ;;  %v1913_v8 = vpop.xlane.xlu1 %1912 }
 0x261   : > { %4160 = vpow2.f32 %v2644_v50  ;;  %v2610_v33 = vsub.f32 0.0, %v2546_v39  ;;  %v2547_v46 = vmul.f32 1.050701, %v2483_v63  ;;  %v6841_v22 = vadd.f32 %v6676_v3, %v6766_v51 }
 0x262   : > { %4162 = vpow2.f32 %v2646_v21  ;;  %v2650_v4 = vmul.f32 1.442695, %v2579_v5  ;;  %v6845_v61 = vadd.f32 %v6676_v3, %v6787_v49  ;;  %v6849_v6 = vadd.f32 %v6676_v3, %v6790_v17  ;;  %v2000_v49 = vpop.xlane.xlu0 %1999 }
 0x263   : > { %v4145_v59 = vpop.eup %4144  ;;  %4164 = vpow2.f32 %v2708_v2  ;;  %v2712_v37 = vmul.f32 1.442695, %v2610_v33  ;;  %v2611_v35 = vsub.f32 0.0, %v2547_v46  ;;  %v6857_v51 = vadd.f32 %v6676_v3, %v6798_v1 }
 0x264   : > { %v4147_v18 = vpop.eup %4146  ;;  %v2799_v34 = vadd.f32 1.0, %v4145_v59  ;;  %4166 = vpow2.f32 %v2710_v15  ;;  %v2204_v9 = vmul.f32 1.442695, %v6841_v22  ;;  %v2206_v40 = vmul.f32 1.442695, %v6845_v61 }
 0x265   : > { %v4149_v27 = vpop.eup %4148  ;;  %2957 = vst.msk [vmem:[%s6851_s28] sm:$0xff] %vm2956_vm1, %v4147_v18  ;;  %4168 = vpow2.f32 %v2648_v29  ;;  %v2714_v48 = vmul.f32 1.442695, %v2611_v35  ;;  %v2268_v1 = vmul.f32 1.442695, %v6849_v6  ;;  %v6877_v60 = vadd.f32 %v6676_v3, %v6803_v26  ;;  %v2009_v35 = vpop.xlane.xlu1 %2008 }
 0x266   : > { %v4151_v17 = vpop.eup %4150  ;;  %2990 = vst.msk [vmem:[%s6851_s28 + $0x108] sm:$0xff] %vm2956_vm1, %v4149_v27  ;;  %4170 = vrcp.f32 %v2799_v34  ;;  %v2270_v42 = vmul.f32 1.442695, %v6857_v51  ;;  %v1910_v12 = vpop.xlane.xlu0 %1909  ;;  %v6881_v52 = vadd.f32 %v6676_v3, %v6820_v32  ;;  %v6886_v44 = vadd.f32 %v6676_v3, %v6822_v13 }
 0x267   : > { %v4153_v45 = vpop.eup %4152  ;;  %2989 = vst.msk [vmem:[%s6851_s28 + $0x100] sm:$0xff] %vm2956_vm1, %v4151_v17  ;;  %4172 = vpow2.f32 %v2650_v4  ;;  %v2208_v26 = vmul.f32 1.442695, %v6877_v60  ;;  %vm2132_vm2 = vcmp.gt.f32.partialorder %v6841_v22, 0.0  ;;  %v6891_v32 = vadd.f32 %v6676_v3, %v6829_v14 }
 0x268   : > { %v4155_v62 = vpop.eup %4154  ;;  %2959 = vst.msk [vmem:[%s6851_s28 + $0x10] sm:$0xff] %vm2956_vm1, %v4153_v45  ;;  %4174 = vpow2.f32 %v2712_v37  ;;  %v6895_v55 = vadd.f32 %v6676_v3, %v6834_v43  ;;  %vm2133_vm3 = vcmp.gt.f32.partialorder %v6845_v61, 0.0  ;;  %v2210_v13 = vmul.f32 1.442695, %v6881_v52 }
 0x269   : > { %v4157_v54 = vpop.eup %4156  ;;  %2958 = vst.msk [vmem:[%s6851_s28 + $0x8] sm:$0xff] %vm2956_vm1, %v4155_v62  ;;  %4176 = vpow2.f32 %v2714_v48  ;;  %v6902_v57 = vadd.f32 %v6676_v3, %v1907_v10  ;;  %v6905_v7 = vadd.f32 %v6676_v3, %v2000_v49  ;;  %vm2164_vm4 = vcmp.gt.f32.partialorder %v6849_v6, 0.0 }
 0x26a   : > { %v4159_v53 = vpop.eup %4158  ;;  %2960 = vst.msk [vmem:[%s6851_s28 + $0x18] sm:$0xff] %vm2956_vm1, %v4157_v54  ;;  %4178 = vpow2.f32 %v2204_v9  ;;  %v2006_v36 = vpop.xlane.xlu0 %2005  ;;  %v6909_v47 = vadd.f32 %v6676_v3, %v2003_v0  ;;  %v6912_v14 = vadd.f32 %v6676_v3, %v1910_v12  ;;  %vm2165_vm5 = vcmp.gt.f32.partialorder %v6857_v51, 0.0 }
 0x26b   : > { %v4161_v11 = vpop.eup %4160  ;;  %2991 = vst.msk [vmem:[%s6851_s28 + $0x110] sm:$0xff] %vm2956_vm1, %v4159_v53  ;;  %4180 = vpow2.f32 %v2206_v40  ;;  %v2272_v56 = vmul.f32 1.442695, %v6886_v44  ;;  %v6917_v43 = vadd.f32 %v6676_v3, %v1913_v8  ;;  %v2274_v39 = vmul.f32 1.442695, %v6891_v32 }
 0x26c   : > { %v4163_v50 = vpop.eup %4162  ;;  %v2768_v38 = vadd.f32 1.0, %v4161_v11  ;;  %4182 = vpow2.f32 %v2268_v1  ;;  %v2212_v29 = vmul.f32 1.442695, %v6895_v55  ;;  %v2214_v46 = vmul.f32 1.442695, %v6902_v57 }
 0x26d   : > { %v4165_v23 = vpop.eup %4164  ;;  %v2769_v24 = vadd.f32 1.0, %v4163_v50  ;;  %4184 = vpow2.f32 %v2270_v42  ;;  %v2276_v59 = vmul.f32 1.442695, %v6905_v7  ;;  %v2278_v34 = vmul.f32 1.442695, %v6909_v47 }
 0x26e   : > { %v4167_v19 = vpop.eup %4166  ;;  %4186 = vrcp.f32 %v2768_v38  ;;  %v2800_v30 = vadd.f32 1.0, %v4165_v23  ;;  %v2216_v37 = vmul.f32 1.442695, %v6912_v14  ;;  %v2218_v17 = vmul.f32 1.442695, %v6917_v43  ;;  %v1916_v48 = vpop.xlane.xlu0 %1915 }
 0x26f   : > { %v4169_v41 = vpop.eup %4168  ;;  %4188 = vrcp.f32 %v2769_v24  ;;  %v2801_v58 = vadd.f32 1.0, %v4167_v19  ;;  %v6927_v62 = vadd.f32 %v6676_v3, %v2006_v36  ;;  %vm2134_vm6 = vcmp.gt.f32.partialorder %v6877_v60, 0.0 }
 0x270   : > { %v4171_v28 = vpop.eup %4170  ;;  %4190 = vrcp.f32 %v2800_v30  ;;  %v2770_v25 = vadd.f32 1.0, %v4169_v41  ;;  %v6936_v53 = vadd.f32 %v6676_v3, %v2009_v35  ;;  %v6949_v24 = vadd.f32 %v6676_v3, %v1916_v48 }
 0x271   : > { %v4173_v31 = vpop.eup %4172  ;;  %2992 = vst.msk [vmem:[%s6851_s28 + $0x118] sm:$0xff] %vm2956_vm1, %v4171_v28  ;;  %4192 = vrcp.f32 %v2801_v58  ;;  %v1919_v58 = vpop.xlane.xlu1 %1918  ;;  %vm2135_vm7 = vcmp.gt.f32.partialorder %v6881_v52, 0.0  ;;  %vm2166_vm8 = vcmp.gt.f32.partialorder %v6886_v44, 0.0  ;;  %vm2167_vm9 = vcmp.gt.f32.partialorder %v6891_v32, 0.0 }
 0x272   : > { %v4175_v20 = vpop.eup %4174  ;;  %4194 = vrcp.f32 %v2770_v25  ;;  %v2771_v21 = vadd.f32 1.0, %v4173_v31  ;;  %v2280_v25 = vmul.f32 1.442695, %v6927_v62  ;;  %v2012_v8 = vpop.xlane.xlu0 %2011  ;;  %vm2136_vm10 = vcmp.gt.f32.partialorder %v6895_v55, 0.0 }
 0x273   : > { %v4177_v2 = vpop.eup %4176  ;;  %v2802_v16 = vadd.f32 1.0, %v4175_v20  ;;  %4196 = vpow2.f32 %v2208_v26  ;;  %vm2137_vm11 = vcmp.gt.f32.partialorder %v6902_v57, 0.0  ;;  %vm2168_vm12 = vcmp.gt.f32.partialorder %v6905_v7, 0.0 }
 0x274   : > { %v4179_v15 = vpop.eup %4178  ;;  %4198 = vrcp.f32 %v2771_v21  ;;  %v2803_v5 = vadd.f32 1.0, %v4177_v2  ;;  %vm2169_vm13 = vcmp.gt.f32.partialorder %v6909_v47, 0.0  ;;  %vm2138_vm14 = vcmp.gt.f32.partialorder %v6912_v14, 0.0 }
 0x275   : > { %v4181_v63 = vpop.eup %4180  ;;  %4200 = vrcp.f32 %v2802_v16  ;;  %v3667_v33 = vadd.f32 -1.0, %v4179_v15  ;;  %v6965_v16 = vadd.f32 %v6676_v3, %v1919_v58  ;;  %vm2139_vm15 = vcmp.gt.f32.partialorder %v6917_v43, 0.0 }
 0x276   : > { %v4183_v4 = vpop.eup %4182  ;;  %4202 = vrcp.f32 %v2803_v5  ;;  %v3668_v18 = vadd.f32 -1.0, %v4181_v63  ;;  %vm2170_vm0 = vcmp.gt.f32.partialorder %v6927_v62, 0.0 }
 0x277   : > { %v4185_v10 = vpop.eup %4184  ;;  %v2388_v27 = vmul.f32 1.6732632, %v3667_v33  ;;  %v3699_v49 = vadd.f32 -1.0, %v4183_v4  ;;  %4204 = vpow2.f32 %v2210_v13  ;;  %v2282_v33 = vmul.f32 1.442695, %v6936_v53 }
 0x278   : > { %v4187_v9 = vpop.eup %4186  ;;  %v2389_v45 = vmul.f32 1.6732632, %v3668_v18  ;;  %v3700_v40 = vadd.f32 -1.0, %v4185_v10  ;;  %4206 = vpow2.f32 %v2272_v56  ;;  %v2220_v18 = vmul.f32 1.442695, %v6949_v24 }
 0x279   : > { %v4189_v1 = vpop.eup %4188  ;;  %2961 = vst.msk [vmem:[%s6851_s28 + $0x20] sm:$0xff] %vm2956_vm1, %v4187_v9  ;;  %v2452_v54 = vsel %vm2132_vm2, %v6841_v22, %v2388_v27  ;;  %v2420_v42 = vmul.f32 1.6732632, %v3699_v49  ;;  %4208 = vpow2.f32 %v2274_v39  ;;  %v6971_v39 = vadd.f32 %v6676_v3, %v2012_v8 }
 0x27a   : > { %v4191_v0 = vpop.eup %4190  ;;  %2962 = vst.msk [vmem:[%s6851_s28 + $0x28] sm:$0xff] %vm2956_vm1, %v4189_v1  ;;  %v2516_v11 = vmul.f32 1.050701, %v2452_v54  ;;  %v2453_v12 = vsel %vm2133_vm3, %v6845_v61, %v2389_v45  ;;  %v2421_v50 = vmul.f32 1.6732632, %v3700_v40  ;;  %4210 = vpow2.f32 %v2212_v29 }
 0x27b   : > { %v4193_v22 = vpop.eup %4192  ;;  %2993 = vst.msk [vmem:[%s6851_s28 + $0x120] sm:$0xff] %vm2956_vm1, %v4191_v0  ;;  %v2517_v38 = vmul.f32 1.050701, %v2453_v12  ;;  %v2484_v23 = vsel %vm2164_vm4, %v6849_v6, %v2420_v42  ;;  %4212 = vpow2.f32 %v2214_v46  ;;  %v6983_v10 = vmul.f32 1.442695, %v6965_v16 }
 0x27c   : > { %v4195_v19 = vpop.eup %4194  ;;  %2994 = vst.msk [vmem:[%s6851_s28 + $0x128] sm:$0xff] %vm2956_vm1, %v4193_v22  ;;  %v2580_v30 = vsub.f32 0.0, %v2516_v11  ;;  %v2548_v61 = vmul.f32 1.050701, %v2484_v23  ;;  %v2485_v41 = vsel %vm2165_vm5, %v6857_v51, %v2421_v50  ;;  %4214 = vpow2.f32 %v2276_v59 }
 0x27d   : > { %v4197_v26 = vpop.eup %4196  ;;  %2963 = vst.msk [vmem:[%s6851_s28 + $0x30] sm:$0xff] %vm2956_vm1, %v4195_v19  ;;  %v2581_v6 = vsub.f32 0.0, %v2517_v38  ;;  %v2549_v28 = vmul.f32 1.050701, %v2485_v41  ;;  %4216 = vpow2.f32 %v2278_v34  ;;  %v6986_v48 = vmul.f32 1.442695, %v6971_v39 }
 0x27e   : > { %v4199_v31 = vpop.eup %4198  ;;  %v2652_v13 = vmul.f32 1.442695, %v2580_v30  ;;  %v2612_v36 = vsub.f32 0.0, %v2548_v61  ;;  %v3669_v20 = vadd.f32 -1.0, %v4197_v26  ;;  %4218 = vpow2.f32 %v2216_v37 }
 0x27f   : > { %v4201_v51 = vpop.eup %4200  ;;  %2964 = vst.msk [vmem:[%s6851_s28 + $0x38] sm:$0xff] %vm2956_vm1, %v4199_v31  ;;  %v2654_v21 = vmul.f32 1.442695, %v2581_v6  ;;  %v2613_v2 = vsub.f32 0.0, %v2549_v28  ;;  %4220 = vpow2.f32 %v2218_v17  ;;  %vm2171_vm2 = vcmp.gt.f32.partialorder %v6936_v53, 0.0 }
 0x280   : > { %v4203_v56 = vpop.eup %4202  ;;  %2995 = vst.msk [vmem:[%s6851_s28 + $0x130] sm:$0xff] %vm2956_vm1, %v4201_v51  ;;  %4222 = vpow2.f32 %v2652_v13  ;;  %v2716_v15 = vmul.f32 1.442695, %v2612_v36  ;;  %v2390_v5 = vmul.f32 1.6732632, %v3669_v20  ;;  %vm2140_vm3 = vcmp.gt.f32.partialorder %v6949_v24, 0.0 }
 0x281   : > { %v4205_v29 = vpop.eup %4204  ;;  %2996 = vst.msk [vmem:[%s6851_s28 + $0x138] sm:$0xff] %vm2956_vm1, %v4203_v56  ;;  %4224 = vpow2.f32 %v2654_v21  ;;  %v2718_v63 = vmul.f32 1.442695, %v2613_v2  ;;  %vm2141_vm4 = vcmp.gt.f32.partialorder %v6965_v16, 0.0  ;;  %vm2172_vm5 = vcmp.gt.f32.partialorder %v6971_v39, 0.0 }
 0x282   : > { %v4207_v46 = vpop.eup %4206  ;;  %4226 = vpow2.f32 %v2716_v15  ;;  %v2454_v59 = vsel %vm2134_vm6, %v6877_v60, %v2390_v5  ;;  %v3670_v4 = vadd.f32 -1.0, %v4205_v29 }
 0x283   : > { %v4209_v34 = vpop.eup %4208  ;;  %4228 = vpow2.f32 %v2718_v63  ;;  %v2518_v37 = vmul.f32 1.050701, %v2454_v59  ;;  %v3701_v35 = vadd.f32 -1.0, %v4207_v46 }
 0x284   : > { %v4211_v27 = vpop.eup %4210  ;;  %v2391_v49 = vmul.f32 1.6732632, %v3670_v4  ;;  %v3702_v17 = vadd.f32 -1.0, %v4209_v34  ;;  %4230 = vpow2.f32 %v2280_v25 }
 0x285   : > { %v4213_v60 = vpop.eup %4212  ;;  %v2582_v9 = vsub.f32 0.0, %v2518_v37  ;;  %v2422_v45 = vmul.f32 1.6732632, %v3701_v35  ;;  %v3671_v40 = vadd.f32 -1.0, %v4211_v27  ;;  %4232 = vpow2.f32 %v2282_v33 }
 0x286   : > { %v4215_v1 = vpop.eup %4214  ;;  %v2455_v54 = vsel %vm2135_vm7, %v6881_v52, %v2391_v49  ;;  %v2423_v42 = vmul.f32 1.6732632, %v3702_v17  ;;  %v3672_v0 = vadd.f32 -1.0, %v4213_v60  ;;  %4234 = vpow2.f32 %v2220_v18 }
 0x287   : > { %v4217_v11 = vpop.eup %4216  ;;  %v2656_v12 = vmul.f32 1.442695, %v2582_v9  ;;  %v2519_v50 = vmul.f32 1.050701, %v2455_v54  ;;  %v2486_v22 = vsel %vm2166_vm8, %v6886_v44, %v2422_v45  ;;  %v2392_v38 = vmul.f32 1.6732632, %v3671_v40  ;;  %v7013_v9 = vpop.xlane.xlu0 %1921 }
 0x288   : > { %v4219_v23 = vpop.eup %4218  ;;  %v2550_v19 = vmul.f32 1.050701, %v2486_v22  ;;  %v2487_v30 = vsel %vm2167_vm9, %v6891_v32, %v2423_v42  ;;  %v2393_v61 = vmul.f32 1.6732632, %v3672_v0  ;;  %v3703_v41 = vadd.f32 -1.0, %v4215_v1 }
 0x289   : > { %v4221_v52 = vpop.eup %4220  ;;  %4236 = vpow2.f32 %v2656_v12  ;;  %v2583_v58 = vsub.f32 0.0, %v2519_v50  ;;  %v2551_v26 = vmul.f32 1.050701, %v2487_v30  ;;  %v2456_v6 = vsel %vm2136_vm10, %v6895_v55, %v2392_v38 }
 0x28a   : > { %v4223_v28 = vpop.eup %4222  ;;  %v2614_v25 = vsub.f32 0.0, %v2550_v19  ;;  %v2520_v44 = vmul.f32 1.050701, %v2456_v6  ;;  %v2457_v8 = vsel %vm2137_vm11, %v6902_v57, %v2393_v61  ;;  %v2424_v31 = vmul.f32 1.6732632, %v3703_v41  ;;  %v7011_v57 = vpop.xlane.xlu1 %2014 }
 0x28b   : > { %v4225_v32 = vpop.eup %4224  ;;  %v2772_v13 = vadd.f32 1.0, %v4223_v28  ;;  %v2658_v36 = vmul.f32 1.442695, %v2583_v58  ;;  %v2615_v20 = vsub.f32 0.0, %v2551_v26  ;;  %v2521_v51 = vmul.f32 1.050701, %v2457_v8  ;;  %v7032_v26 = vpop.xlane.xlu0 %2017 }
 0x28c   : > { %v4227_v21 = vpop.eup %4226  ;;  %v2773_v2 = vadd.f32 1.0, %v4225_v32  ;;  %v2720_v55 = vmul.f32 1.442695, %v2614_v25  ;;  %v2584_v56 = vsub.f32 0.0, %v2520_v44  ;;  %v2488_v15 = vsel %vm2168_vm12, %v6905_v7, %v2424_v31 }
 0x28d   : > { %v4229_v5 = vpop.eup %4228  ;;  %4238 = vrcp.f32 %v2772_v13  ;;  %v2804_v29 = vadd.f32 1.0, %v4227_v21  ;;  %v2722_v63 = vmul.f32 1.442695, %v2615_v20  ;;  %v2585_v33 = vsub.f32 0.0, %v2521_v51 }
 0x28e   : > { %v4231_v46 = vpop.eup %4230  ;;  %4240 = vrcp.f32 %v2773_v2  ;;  %v2805_v59 = vadd.f32 1.0, %v4229_v5  ;;  %v2660_v4 = vmul.f32 1.442695, %v2584_v56  ;;  %v2552_v18 = vmul.f32 1.050701, %v2488_v15  ;;  %v7015_v12 = vpop.xlane.xlu1 %1924 }
 0x28f   : > { %v4233_v34 = vpop.eup %4232  ;;  %4242 = vrcp.f32 %v2804_v29  ;;  %v2662_v7 = vmul.f32 1.442695, %v2585_v33  ;;  %v3704_v37 = vadd.f32 -1.0, %v4217_v11  ;;  %v3673_v35 = vadd.f32 -1.0, %v4219_v23 }
 0x290   : > { %v4235_v27 = vpop.eup %4234  ;;  %4244 = vrcp.f32 %v2805_v59  ;;  %v2616_v49 = vsub.f32 0.0, %v2552_v18  ;;  %v3674_v17 = vadd.f32 -1.0, %v4221_v52  ;;  %v3705_v60 = vadd.f32 -1.0, %v4231_v46 }
 0x291   : > { %4246 = vpow2.f32 %v2658_v36  ;;  %v2425_v45 = vmul.f32 1.6732632, %v3704_v37  ;;  %v2394_v40 = vmul.f32 1.6732632, %v3673_v35  ;;  %v3706_v1 = vadd.f32 -1.0, %v4233_v34 }
 0x292   : > { %4248 = vpow2.f32 %v2720_v55  ;;  %v2724_v54 = vmul.f32 1.442695, %v2616_v49  ;;  %v2395_v42 = vmul.f32 1.6732632, %v3674_v17  ;;  %v2426_v0 = vmul.f32 1.6732632, %v3705_v60  ;;  %v7037_v31 = vpop.xlane.xlu1 %2020 }
 0x293   : > { %v4237_v50 = vpop.eup %4236  ;;  %4250 = vpow2.f32 %v2722_v63  ;;  %v2489_v11 = vsel %vm2169_vm13, %v6909_v47, %v2425_v45  ;;  %v2458_v22 = vsel %vm2138_vm14, %v6912_v14, %v2394_v40  ;;  %v2427_v38 = vmul.f32 1.6732632, %v3706_v1 }
 0x294   : > { %v2774_v23 = vadd.f32 1.0, %v4237_v50  ;;  %4252 = vpow2.f32 %v2660_v4  ;;  %v2553_v19 = vmul.f32 1.050701, %v2489_v11  ;;  %v2522_v30 = vmul.f32 1.050701, %v2458_v22 }
 0x295   : > { %4254 = vpow2.f32 %v2662_v7  ;;  %v2459_v61 = vsel %vm2139_vm15, %v6917_v43, %v2395_v42  ;;  %v2490_v41 = vsel %vm2170_vm0, %v6927_v62, %v2426_v0  ;;  %v2491_v47 = vsel %vm2171_vm2, %v6936_v53, %v2427_v38 }
 0x296   : > { %4256 = vrcp.f32 %v2774_v23  ;;  %v2617_v14 = vsub.f32 0.0, %v2553_v19  ;;  %v2586_v52 = vsub.f32 0.0, %v2522_v30  ;;  %v2523_v58 = vmul.f32 1.050701, %v2459_v61  ;;  %v7054_v18 = vpop.xlane.xlu1 %1930 }
 0x297   : > { %v4239_v6 = vpop.eup %4238  ;;  %4258 = vpow2.f32 %v2724_v54  ;;  %v2554_v28 = vmul.f32 1.050701, %v2490_v41  ;;  %v2555_v43 = vmul.f32 1.050701, %v2491_v47  ;;  %v3675_v25 = vadd.f32 -1.0, %v4235_v27 }
 0x298   : > { %v4241_v44 = vpop.eup %4240  ;;  %2965 = vst.msk [vmem:[%s6851_s28 + $0x40] sm:$0xff] %vm2956_vm1, %v4239_v6  ;;  %v2726_v62 = vmul.f32 1.442695, %v2617_v14  ;;  %v2664_v8 = vmul.f32 1.442695, %v2586_v52  ;;  %v2587_v53 = vsub.f32 0.0, %v2523_v58  ;;  %4260 = vpow2.f32 %v6983_v10 }
 0x299   : > { %v4243_v32 = vpop.eup %4242  ;;  %2966 = vst.msk [vmem:[%s6851_s28 + $0x48] sm:$0xff] %vm2956_vm1, %v4241_v44  ;;  %v2618_v13 = vsub.f32 0.0, %v2554_v28  ;;  %v2396_v36 = vmul.f32 1.6732632, %v3675_v25  ;;  %4262 = vpow2.f32 %v6986_v48  ;;  %v2619_v2 = vsub.f32 0.0, %v2555_v43  ;;  %v7048_v48 = vpop.xlane.xlu0 %1927 }
 0x29a   : > { %v4245_v20 = vpop.eup %4244  ;;  %2997 = vst.msk [vmem:[%s6851_s28 + $0x140] sm:$0xff] %vm2956_vm1, %v4243_v32  ;;  %4264 = vpow2.f32 %v2726_v62  ;;  %v2666_v51 = vmul.f32 1.442695, %v2587_v53  ;;  %v7052_v4 = vadd.f32 %v6676_v3, %v7011_v57  ;;  %v7061_v45 = vadd.f32 %v6676_v3, %v7013_v9  ;;  %v2027_v11 = vpop.xlane.xlu1 %2026 }
 0x29b   : > { %v4247_v21 = vpop.eup %4246  ;;  %2998 = vst.msk [vmem:[%s6851_s28 + $0x148] sm:$0xff] %vm2956_vm1, %v4245_v20  ;;  %4266 = vpow2.f32 %v2664_v8  ;;  %v2728_v10 = vmul.f32 1.442695, %v2618_v13  ;;  %v2460_v55 = vsel %vm2140_vm3, %v6949_v24, %v2396_v36  ;;  %v2730_v7 = vmul.f32 1.442695, %v2619_v2 }
 0x29c   : > { %v4249_v56 = vpop.eup %4248  ;;  %v2775_v15 = vadd.f32 1.0, %v4247_v21  ;;  %4268 = vpow2.f32 %v2666_v51  ;;  %v2524_v5 = vmul.f32 1.050701, %v2460_v55  ;;  %v2286_v57 = vmul.f32 1.442695, %v7052_v4 }
 0x29d   : > { %v4251_v29 = vpop.eup %4250  ;;  %v2806_v63 = vadd.f32 1.0, %v4249_v56  ;;  %4270 = vpow2.f32 %v2728_v10  ;;  %v2024_v40 = vpop.xlane.xlu0 %2023  ;;  %v7065_v42 = vadd.f32 %v6676_v3, %v7015_v12  ;;  %v7071_v23 = vadd.f32 %v6676_v3, %v7032_v26 }
 0x29e   : > { %v4253_v33 = vpop.eup %4252  ;;  %4272 = vrcp.f32 %v2775_v15  ;;  %v2807_v46 = vadd.f32 1.0, %v4251_v29  ;;  %v2588_v59 = vsub.f32 0.0, %v2524_v5  ;;  %v2224_v61 = vmul.f32 1.442695, %v7061_v45 }
 0x29f   : > { %v4255_v24 = vpop.eup %4254  ;;  %4274 = vrcp.f32 %v2806_v63  ;;  %v2776_v34 = vadd.f32 1.0, %v4253_v33  ;;  %v2226_v52 = vmul.f32 1.442695, %v7065_v42  ;;  %v7086_v62 = vadd.f32 %v6676_v3, %v7037_v31 }
 0x2a0   : > { %v4257_v37 = vpop.eup %4256  ;;  %4276 = vrcp.f32 %v2807_v46  ;;  %v2777_v35 = vadd.f32 1.0, %v4255_v24  ;;  %v2668_v49 = vmul.f32 1.442695, %v2588_v59  ;;  %v7094_v36 = vadd.f32 %v6676_v3, %v7048_v48 }
 0x2a1   : > { %v4259_v27 = vpop.eup %4258  ;;  %2967 = vst.msk [vmem:[%s6851_s28 + $0x50] sm:$0xff] %vm2956_vm1, %v4257_v37  ;;  %4278 = vrcp.f32 %v2776_v34  ;;  %v1934_v43 = vpop.xlane.xlu0 %1933  ;;  %v7100_v51 = vadd.f32 %v6676_v3, %v7054_v18  ;;  %v2290_v2 = vmul.f32 1.442695, %v7086_v62  ;;  %v7106_v55 = vadd.f32 %v6676_v3, %v2024_v40 }
 0x2a2   : > { %v4261_v17 = vpop.eup %4260  ;;  %4280 = vrcp.f32 %v2777_v35  ;;  %v2808_v60 = vadd.f32 1.0, %v4259_v27  ;;  %v7109_v5 = vadd.f32 %v6676_v3, %v2027_v11  ;;  %v2228_v63 = vmul.f32 1.442695, %v7094_v36 }
 0x2a3   : > { %v4263_v1 = vpop.eup %4262  ;;  %4282 = vpow2.f32 %v2730_v7  ;;  %v3676_v54 = vadd.f32 -1.0, %v4261_v17  ;;  %v7115_v33 = vadd.f32 %v6676_v3, %v1934_v43  ;;  %v2230_v18 = vmul.f32 1.442695, %v7100_v51 }
 0x2a4   : > { %v4265_v0 = vpop.eup %4264  ;;  %4284 = vrcp.f32 %v2808_v60  ;;  %v3707_v50 = vadd.f32 -1.0, %v4263_v1  ;;  %v2292_v35 = vmul.f32 1.442695, %v7106_v55  ;;  %v2294_v17 = vmul.f32 1.442695, %v7109_v5 }
 0x2a5   : > { %v4267_v22 = vpop.eup %4266  ;;  %v2809_v38 = vadd.f32 1.0, %v4265_v0  ;;  %4286 = vpow2.f32 %v2668_v49  ;;  %v2397_v9 = vmul.f32 1.6732632, %v3676_v54  ;;  %v2030_v48 = vpop.xlane.xlu0 %2029  ;;  %v2232_v40 = vmul.f32 1.442695, %v7115_v33 }
 0x2a6   : > { %v4269_v19 = vpop.eup %4268  ;;  %v2778_v30 = vadd.f32 1.0, %v4267_v22  ;;  %v2428_v12 = vmul.f32 1.6732632, %v3707_v50  ;;  %4288 = vpow2.f32 %v2286_v57  ;;  %v7123_v27 = vadd.f32 %v6676_v3, %v2030_v48 }
 0x2a7   : > { %v4271_v41 = vpop.eup %4270  ;;  %4290 = vrcp.f32 %v2809_v38  ;;  %v2779_v47 = vadd.f32 1.0, %v4269_v19  ;;  %v2461_v14 = vsel %vm2141_vm4, %v6965_v16, %v2397_v9  ;;  %v2288_v16 = vmul.f32 1.442695, %v7071_v23 }
 0x2a8   : > { %v4273_v58 = vpop.eup %4272  ;;  %4292 = vrcp.f32 %v2778_v30  ;;  %v2810_v26 = vadd.f32 1.0, %v4271_v41  ;;  %v2525_v6 = vmul.f32 1.050701, %v2461_v14  ;;  %v2492_v28 = vsel %vm2172_vm5, %v6971_v39, %v2428_v12  ;;  %v1937_v39 = vpop.xlane.xlu1 %1936 }
 0x2a9   : > { %v4275_v25 = vpop.eup %4274  ;;  %2968 = vst.msk [vmem:[%s6851_s28 + $0x58] sm:$0xff] %vm2956_vm1, %v4273_v58  ;;  %4294 = vrcp.f32 %v2779_v47  ;;  %v2556_v44 = vmul.f32 1.050701, %v2492_v28  ;;  %v7119_v24 = vadd.f32 %v6676_v3, %v1937_v39  ;;  %vm2173_vm6 = vcmp.gt.f32.partialorder %v7052_v4, 0.0 }
 0x2aa   : > { %v4277_v8 = vpop.eup %4276  ;;  %2999 = vst.msk [vmem:[%s6851_s28 + $0x150] sm:$0xff] %vm2956_vm1, %v4275_v25  ;;  %4296 = vrcp.f32 %v2810_v26  ;;  %v2589_v53 = vsub.f32 0.0, %v2525_v6  ;;  %vm2142_vm7 = vcmp.gt.f32.partialorder %v7061_v45, 0.0  ;;  %vm2143_vm8 = vcmp.gt.f32.partialorder %v7065_v42, 0.0 }
 0x2ab   : > { %v4279_v32 = vpop.eup %4278  ;;  %3000 = vst.msk [vmem:[%s6851_s28 + $0x158] sm:$0xff] %vm2956_vm1, %v4277_v8  ;;  %v2620_v13 = vsub.f32 0.0, %v2556_v44  ;;  %4298 = vpow2.f32 %v2224_v61  ;;  %v2234_v0 = vmul.f32 1.442695, %v7119_v24  ;;  %v2296_v38 = vmul.f32 1.442695, %v7123_v27 }
 0x2ac   : > { %v4281_v20 = vpop.eup %4280  ;;  %2969 = vst.msk [vmem:[%s6851_s28 + $0x60] sm:$0xff] %vm2956_vm1, %v4279_v32  ;;  %v2670_v31 = vmul.f32 1.442695, %v2589_v53  ;;  %4300 = vpow2.f32 %v2226_v52  ;;  %v2033_v34 = vpop.xlane.xlu1 %2032  ;;  %vm2174_vm9 = vcmp.gt.f32.partialorder %v7071_v23, 0.0  ;;  %vm2175_vm10 = vcmp.gt.f32.partialorder %v7086_v62, 0.0 }
 0x2ad   : > { %v4283_v21 = vpop.eup %4282  ;;  %2970 = vst.msk [vmem:[%s6851_s28 + $0x68] sm:$0xff] %vm2956_vm1, %v4281_v20  ;;  %v2732_v10 = vmul.f32 1.442695, %v2620_v13  ;;  %4302 = vpow2.f32 %v2288_v16  ;;  %v7132_v1 = vadd.f32 %v6676_v3, %v2033_v34  ;;  %vm2144_vm11 = vcmp.gt.f32.partialorder %v7094_v36, 0.0 }
 0x2ae   : > { %v4285_v56 = vpop.eup %4284  ;;  %v2811_v15 = vadd.f32 1.0, %v4283_v21  ;;  %4304 = vpow2.f32 %v2670_v31  ;;  %vm2145_vm12 = vcmp.gt.f32.partialorder %v7100_v51, 0.0  ;;  %vm2176_vm13 = vcmp.gt.f32.partialorder %v7106_v55, 0.0 }
 0x2af   : > { %v4287_v29 = vpop.eup %4286  ;;  %3001 = vst.msk [vmem:[%s6851_s28 + $0x160] sm:$0xff] %vm2956_vm1, %v4285_v56  ;;  %4306 = vpow2.f32 %v2732_v10  ;;  %v2298_v47 = vmul.f32 1.442695, %v7132_v1  ;;  %vm2177_vm14 = vcmp.gt.f32.partialorder %v7109_v5, 0.0  ;;  %vm2146_vm15 = vcmp.gt.f32.partialorder %v7115_v33, 0.0 }
 0x2b0   : > { %v4289_v46 = vpop.eup %4288  ;;  %4308 = vrcp.f32 %v2811_v15  ;;  %v2780_v59 = vadd.f32 1.0, %v4287_v29  ;;  %v1940_v50 = vpop.xlane.xlu0 %1939  ;;  %vm2147_vm0 = vcmp.gt.f32.partialorder %v7119_v24, 0.0  ;;  %vm2178_vm2 = vcmp.gt.f32.partialorder %v7123_v27, 0.0 }
 0x2b1   : > { %v4291_v7 = vpop.eup %4290  ;;  %v3708_v37 = vadd.f32 -1.0, %v4289_v46  ;;  %4310 = vpow2.f32 %v2290_v2  ;;  %v1943_v12 = vpop.xlane.xlu1 %1942  ;;  %vm2179_vm3 = vcmp.gt.f32.partialorder %v7132_v1, 0.0 }
 0x2b2   : > { %v4293_v49 = vpop.eup %4292  ;;  %3002 = vst.msk [vmem:[%s6851_s28 + $0x168] sm:$0xff] %vm2956_vm1, %v4291_v7  ;;  %4312 = vrcp.f32 %v2780_v59  ;;  %v7152_v25 = vadd.f32 %v6676_v3, %v1943_v12 }
 0x2b3   : > { %v4295_v60 = vpop.eup %4294  ;;  %2971 = vst.msk [vmem:[%s6851_s28 + $0x70] sm:$0xff] %vm2956_vm1, %v4293_v49  ;;  %v2429_v57 = vmul.f32 1.6732632, %v3708_v37  ;;  %4314 = vpow2.f32 %v2228_v63 }
 0x2b4   : > { %v4297_v54 = vpop.eup %4296  ;;  %2972 = vst.msk [vmem:[%s6851_s28 + $0x78] sm:$0xff] %vm2956_vm1, %v4295_v60  ;;  %4316 = vpow2.f32 %v2230_v18  ;;  %v7175_v37 = vpop.xlane.xlu0 %2035  ;;  %vm2149_vm5 = vcmp.gt.f32.partialorder %v7152_v25, 0.0 }
 0x2b5   : > { %v4299_v11 = vpop.eup %4298  ;;  %3003 = vst.msk [vmem:[%s6851_s28 + $0x170] sm:$0xff] %vm2956_vm1, %v4297_v54  ;;  %v2493_v22 = vsel %vm2173_vm6, %v7052_v4, %v2429_v57  ;;  %4318 = vpow2.f32 %v2292_v35  ;;  %v7148_v4 = vadd.f32 %v6676_v3, %v1940_v50 }
 0x2b6   : > { %v4301_v9 = vpop.eup %4300  ;;  %v2557_v19 = vmul.f32 1.050701, %v2493_v22  ;;  %v3677_v30 = vadd.f32 -1.0, %v4299_v11  ;;  %4320 = vpow2.f32 %v2294_v17 }
 0x2b7   : > { %v4303_v61 = vpop.eup %4302  ;;  %v3678_v41 = vadd.f32 -1.0, %v4301_v9  ;;  %4322 = vpow2.f32 %v2232_v40  ;;  %v2236_v31 = vmul.f32 1.442695, %v7148_v4  ;;  %vm2148_vm4 = vcmp.gt.f32.partialorder %v7148_v4, 0.0 }
 0x2b8   : > { %v4305_v14 = vpop.eup %4304  ;;  %v2621_v52 = vsub.f32 0.0, %v2557_v19  ;;  %v2398_v58 = vmul.f32 1.6732632, %v3677_v30  ;;  %v3709_v26 = vadd.f32 -1.0, %v4303_v61  ;;  %4324 = vpow2.f32 %v2234_v0 }
 0x2b9   : > { %v4307_v6 = vpop.eup %4306  ;;  %v2781_v28 = vadd.f32 1.0, %v4305_v14  ;;  %v2399_v43 = vmul.f32 1.6732632, %v3678_v41  ;;  %4326 = vpow2.f32 %v2296_v38  ;;  %v7191_v14 = vpop.xlane.xlu1 %2038 }
 0x2ba   : > { %v4309_v44 = vpop.eup %4308  ;;  %v2812_v16 = vadd.f32 1.0, %v4307_v6  ;;  %v2734_v8 = vmul.f32 1.442695, %v2621_v52  ;;  %v2462_v53 = vsel %vm2142_vm7, %v7061_v45, %v2398_v58  ;;  %v2430_v39 = vmul.f32 1.6732632, %v3709_v26 }
 0x2bb   : > { %v4311_v32 = vpop.eup %4310  ;;  %3004 = vst.msk [vmem:[%s6851_s28 + $0x178] sm:$0xff] %vm2956_vm1, %v4309_v44  ;;  %4328 = vrcp.f32 %v2781_v28  ;;  %v2526_v13 = vmul.f32 1.050701, %v2462_v53  ;;  %v2463_v20 = vsel %vm2143_vm8, %v7065_v42, %v2399_v43  ;;  %v7172_v42 = vmul.f32 1.442695, %v7152_v25 }
 0x2bc   : > { %v4313_v21 = vpop.eup %4312  ;;  %4330 = vrcp.f32 %v2812_v16  ;;  %v2527_v45 = vmul.f32 1.050701, %v2463_v20  ;;  %v2494_v10 = vsel %vm2174_vm9, %v7071_v23, %v2430_v39  ;;  %v3710_v2 = vadd.f32 -1.0, %v4311_v32 }
 0x2bd   : > { %v4315_v56 = vpop.eup %4314  ;;  %2973 = vst.msk [vmem:[%s6851_s28 + $0x80] sm:$0xff] %vm2956_vm1, %v4313_v21  ;;  %4332 = vpow2.f32 %v2734_v8  ;;  %v2590_v15 = vsub.f32 0.0, %v2526_v13  ;;  %v2558_v48 = vmul.f32 1.050701, %v2494_v10 }
 0x2be   : > { %v4317_v29 = vpop.eup %4316  ;;  %v2591_v63 = vsub.f32 0.0, %v2527_v45  ;;  %v2431_v46 = vmul.f32 1.6732632, %v3710_v2  ;;  %v3679_v59 = vadd.f32 -1.0, %v4315_v56  ;;  %4334 = vpow2.f32 %v2298_v47 }
 0x2bf   : > { %v4319_v18 = vpop.eup %4318  ;;  %v2672_v34 = vmul.f32 1.442695, %v2590_v15  ;;  %v2622_v23 = vsub.f32 0.0, %v2558_v48  ;;  %v3680_v7 = vadd.f32 -1.0, %v4317_v29  ;;  %4336 = vpow2.f32 %v2236_v31 }
 0x2c0   : > { %v4321_v35 = vpop.eup %4320  ;;  %v2674_v49 = vmul.f32 1.442695, %v2591_v63  ;;  %v2495_v17 = vsel %vm2175_vm10, %v7086_v62, %v2431_v46  ;;  %v2400_v60 = vmul.f32 1.6732632, %v3679_v59  ;;  %v3711_v57 = vadd.f32 -1.0, %v4319_v18  ;;  %v7209_v46 = vpop.xlane.xlu1 %1948 }
 0x2c1   : > { %v4323_v40 = vpop.eup %4322  ;;  %4338 = vpow2.f32 %v2672_v34  ;;  %v2736_v54 = vmul.f32 1.442695, %v2622_v23  ;;  %v2559_v0 = vmul.f32 1.050701, %v2495_v17  ;;  %v2401_v50 = vmul.f32 1.6732632, %v3680_v7 }
 0x2c2   : > { %v4325_v11 = vpop.eup %4324  ;;  %4340 = vpow2.f32 %v2674_v49  ;;  %v2464_v22 = vsel %vm2144_vm11, %v7094_v36, %v2400_v60  ;;  %v2432_v38 = vmul.f32 1.6732632, %v3711_v57  ;;  %v3712_v9 = vadd.f32 -1.0, %v4321_v35 }
 0x2c3   : > { %v4327_v19 = vpop.eup %4326  ;;  %4342 = vpow2.f32 %v2736_v54  ;;  %v2623_v62 = vsub.f32 0.0, %v2559_v0  ;;  %v2528_v30 = vmul.f32 1.050701, %v2464_v22  ;;  %v2465_v12 = vsel %vm2145_vm12, %v7100_v51, %v2401_v50  ;;  %v7194_v51 = vpop.xlane.xlu0 %1945 }
 0x2c4   : > { %v2529_v61 = vmul.f32 1.050701, %v2465_v12  ;;  %v2496_v41 = vsel %vm2176_vm13, %v7106_v55, %v2432_v38  ;;  %v2433_v47 = vmul.f32 1.6732632, %v3712_v9  ;;  %v3681_v36 = vadd.f32 -1.0, %v4323_v40 }
 0x2c5   : > { %v4329_v52 = vpop.eup %4328  ;;  %v2738_v58 = vmul.f32 1.442695, %v2623_v62  ;;  %v2592_v26 = vsub.f32 0.0, %v2528_v30  ;;  %v2560_v6 = vmul.f32 1.050701, %v2496_v41  ;;  %v3682_v28 = vadd.f32 -1.0, %v4325_v11 }
 0x2c6   : > { %v4331_v43 = vpop.eup %4330  ;;  %2974 = vst.msk [vmem:[%s6851_s28 + $0x88] sm:$0xff] %vm2956_vm1, %v4329_v52  ;;  %v2593_v44 = vsub.f32 0.0, %v2529_v61  ;;  %v2497_v55 = vsel %vm2177_vm14, %v7109_v5, %v2433_v47  ;;  %v2402_v16 = vmul.f32 1.6732632, %v3681_v36  ;;  %v3713_v8 = vadd.f32 -1.0, %v4327_v19 }
 0x2c7   : > { %v4333_v53 = vpop.eup %4332  ;;  %3005 = vst.msk [vmem:[%s6851_s28 + $0x180] sm:$0xff] %vm2956_vm1, %v4331_v43  ;;  %4344 = vpow2.f32 %v2738_v58  ;;  %v2676_v39 = vmul.f32 1.442695, %v2592_v26  ;;  %v2624_v32 = vsub.f32 0.0, %v2560_v6  ;;  %v2561_v13 = vmul.f32 1.050701, %v2497_v55  ;;  %v7211_v23 = vpop.xlane.xlu0 %2041 }
 0x2c8   : > { %v4335_v20 = vpop.eup %4334  ;;  %v2813_v31 = vadd.f32 1.0, %v4333_v53  ;;  %v2678_v21 = vmul.f32 1.442695, %v2593_v44  ;;  %v2466_v45 = vsel %vm2146_vm15, %v7115_v33, %v2402_v16  ;;  %v2403_v10 = vmul.f32 1.6732632, %v3682_v28 }
 0x2c9   : > { %v4337_v2 = vpop.eup %4336  ;;  %4346 = vpow2.f32 %v2676_v39  ;;  %v2740_v5 = vmul.f32 1.442695, %v2624_v32  ;;  %v2625_v56 = vsub.f32 0.0, %v2561_v13  ;;  %v2530_v15 = vmul.f32 1.050701, %v2466_v45 }
 0x2ca   : > { %4348 = vrcp.f32 %v2813_v31  ;;  %v2467_v48 = vsel %vm2147_vm0, %v7119_v24, %v2403_v10  ;;  %v2434_v29 = vmul.f32 1.6732632, %v3713_v8  ;;  %v3714_v63 = vadd.f32 -1.0, %v4335_v20 }
 0x2cb   : > { %v4339_v59 = vpop.eup %4338  ;;  %4350 = vpow2.f32 %v2678_v21  ;;  %v2742_v18 = vmul.f32 1.442695, %v2625_v56  ;;  %v2594_v34 = vsub.f32 0.0, %v2530_v15  ;;  %v2531_v33 = vmul.f32 1.050701, %v2467_v48  ;;  %v1952_v12 = vpop.xlane.xlu0 %1951 }
 0x2cc   : > { %v4341_v7 = vpop.eup %4340  ;;  %v2782_v35 = vadd.f32 1.0, %v4339_v59  ;;  %4352 = vpow2.f32 %v2740_v5  ;;  %v2498_v49 = vsel %vm2178_vm2, %v7123_v27, %v2434_v29  ;;  %v2435_v17 = vmul.f32 1.6732632, %v3714_v63  ;;  %v2045_v27 = vpop.xlane.xlu1 %2044 }
 0x2cd   : > { %v4343_v24 = vpop.eup %4342  ;;  %v2783_v60 = vadd.f32 1.0, %v4341_v7  ;;  %4354 = vpow2.f32 %v2742_v18  ;;  %v2680_v57 = vmul.f32 1.442695, %v2594_v34  ;;  %v2595_v40 = vsub.f32 0.0, %v2531_v33 }
 0x2ce   : > { %4356 = vrcp.f32 %v2782_v35  ;;  %v2814_v54 = vadd.f32 1.0, %v4343_v24  ;;  %v2562_v0 = vmul.f32 1.050701, %v2498_v49  ;;  %v2499_v50 = vsel %vm2179_vm3, %v7132_v1, %v2435_v17 }
 0x2cf   : > { %4358 = vrcp.f32 %v2783_v60  ;;  %v2682_v11 = vmul.f32 1.442695, %v2595_v40  ;;  %v2563_v22 = vmul.f32 1.050701, %v2499_v50  ;;  %v3683_v38 = vadd.f32 -1.0, %v4337_v2  ;;  %v2048_v39 = vpop.xlane.xlu0 %2047 }
 0x2d0   : > { %4360 = vrcp.f32 %v2814_v54  ;;  %v2626_v9 = vsub.f32 0.0, %v2562_v0  ;;  %v7224_v52 = vadd.f32 %v6676_v3, %v7175_v37  ;;  %v7230_v43 = vadd.f32 %v6676_v3, %v7191_v14  ;;  %v1955_v55 = vpop.xlane.xlu1 %1954 }
 0x2d1   : > { %v4345_v19 = vpop.eup %4344  ;;  %4362 = vpow2.f32 %v2680_v57  ;;  %v2627_v62 = vsub.f32 0.0, %v2563_v22  ;;  %v2404_v30 = vmul.f32 1.6732632, %v3683_v38  ;;  %v7235_v53 = vadd.f32 %v6676_v3, %v7194_v51 }
 0x2d2   : > { %v2815_v61 = vadd.f32 1.0, %v4345_v19  ;;  %4364 = vpow2.f32 %v2682_v11  ;;  %v2744_v41 = vmul.f32 1.442695, %v2626_v9  ;;  %v2300_v8 = vmul.f32 1.442695, %v7224_v52 }
 0x2d3   : > { %v4347_v47 = vpop.eup %4346  ;;  %v2746_v1 = vmul.f32 1.442695, %v2627_v62  ;;  %v2468_v36 = vsel %vm2148_vm4, %v7148_v4, %v2404_v30  ;;  %4366 = vpow2.f32 %v7172_v42  ;;  %v7239_v20 = vadd.f32 %v6676_v3, %v7209_v46  ;;  %v1958_v18 = vpop.xlane.xlu0 %1957 }
 0x2d4   : > { %v4349_v58 = vpop.eup %4348  ;;  %4368 = vrcp.f32 %v2815_v61  ;;  %v2784_v26 = vadd.f32 1.0, %v4347_v47  ;;  %v2532_v6 = vmul.f32 1.050701, %v2468_v36  ;;  %v2302_v21 = vmul.f32 1.442695, %v7230_v43  ;;  %v2051_v48 = vpop.xlane.xlu1 %2050 }
 0x2d5   : > { %v4351_v28 = vpop.eup %4350  ;;  %3006 = vst.msk [vmem:[%s6851_s28 + $0x188] sm:$0xff] %vm2956_vm1, %v4349_v58  ;;  %4370 = vpow2.f32 %v2744_v41  ;;  %v7250_v10 = vadd.f32 %v6676_v3, %v7211_v23  ;;  %v2240_v56 = vmul.f32 1.442695, %v7235_v53  ;;  %v2242_v15 = vmul.f32 1.442695, %v7239_v20 }
 0x2d6   : > { %v4353_v44 = vpop.eup %4352  ;;  %4372 = vrcp.f32 %v2784_v26  ;;  %v2785_v4 = vadd.f32 1.0, %v4351_v28  ;;  %v2596_v42 = vsub.f32 0.0, %v2532_v6  ;;  %v7255_v46 = vadd.f32 %v6676_v3, %v2045_v27 }
 0x2d7   : > { %v4355_v37 = vpop.eup %4354  ;;  %v2816_v16 = vadd.f32 1.0, %v4353_v44  ;;  %4374 = vpow2.f32 %v2746_v1  ;;  %v7258_v59 = vadd.f32 %v6676_v3, %v1952_v12  ;;  %v2304_v7 = vmul.f32 1.442695, %v7250_v10  ;;  %v2054_v62 = vpop.xlane.xlu0 %2053 }
 0x2d8   : > { %v4357_v14 = vpop.eup %4356  ;;  %4376 = vrcp.f32 %v2785_v4  ;;  %v2817_v32 = vadd.f32 1.0, %v4355_v37  ;;  %v2684_v13 = vmul.f32 1.442695, %v2596_v42  ;;  %v7264_v35 = vadd.f32 %v6676_v3, %v1955_v55  ;;  %v1961_v22 = vpop.xlane.xlu1 %1960 }
 0x2d9   : > { %v4359_v31 = vpop.eup %4358  ;;  %2975 = vst.msk [vmem:[%s6851_s28 + $0x90] sm:$0xff] %vm2956_vm1, %v4357_v14  ;;  %4378 = vrcp.f32 %v2816_v16  ;;  %v2306_v57 = vmul.f32 1.442695, %v7255_v46  ;;  %v2244_v40 = vmul.f32 1.442695, %v7258_v59  ;;  %v7273_v11 = vadd.f32 %v6676_v3, %v2048_v39 }
 0x2da   : > { %v4361_v45 = vpop.eup %4360  ;;  %2976 = vst.msk [vmem:[%s6851_s28 + $0x98] sm:$0xff] %vm2956_vm1, %v4359_v31  ;;  %4380 = vrcp.f32 %v2817_v32  ;;  %v2246_v27 = vmul.f32 1.442695, %v7264_v35  ;;  %v7279_v19 = vadd.f32 %v6676_v3, %v2051_v48  ;;  %vm2180_vm6 = vcmp.gt.f32.partialorder %v7224_v52, 0.0 }
 0x2db   : > { %v4363_v51 = vpop.eup %4362  ;;  %3007 = vst.msk [vmem:[%s6851_s28 + $0x190] sm:$0xff] %vm2956_vm1, %v4361_v45  ;;  %4382 = vpow2.f32 %v2684_v13  ;;  %vm2181_vm7 = vcmp.gt.f32.partialorder %v7230_v43, 0.0  ;;  %v7291_v41 = vadd.f32 %v6676_v3, %v1961_v22  ;;  %v2308_v36 = vmul.f32 1.442695, %v7273_v11 }
 0x2dc   : > { %v4365_v2 = vpop.eup %4364  ;;  %v2786_v5 = vadd.f32 1.0, %v4363_v51  ;;  %4384 = vpow2.f32 %v2300_v8  ;;  %v7295_v58 = vadd.f32 %v6676_v3, %v2054_v62  ;;  %v2310_v44 = vmul.f32 1.442695, %v7279_v19  ;;  %v2057_v37 = vpop.xlane.xlu1 %2056 }
 0x2dd   : > { %v4367_v29 = vpop.eup %4366  ;;  %v2787_v63 = vadd.f32 1.0, %v4365_v2  ;;  %4386 = vpow2.f32 %v2302_v21  ;;  %vm2150_vm8 = vcmp.gt.f32.partialorder %v7235_v53, 0.0  ;;  %vm2151_vm9 = vcmp.gt.f32.partialorder %v7239_v20, 0.0 }
 0x2de   : > { %v4369_v34 = vpop.eup %4368  ;;  %4388 = vrcp.f32 %v2786_v5  ;;  %v3684_v33 = vadd.f32 -1.0, %v4367_v29  ;;  %v2250_v39 = vmul.f32 1.442695, %v7291_v41  ;;  %vm2182_vm10 = vcmp.gt.f32.partialorder %v7250_v10, 0.0 }
 0x2df   : > { %v4371_v23 = vpop.eup %4370  ;;  %3008 = vst.msk [vmem:[%s6851_s28 + $0x198] sm:$0xff] %vm2956_vm1, %v4369_v34  ;;  %4390 = vrcp.f32 %v2787_v63  ;;  %v2312_v13 = vmul.f32 1.442695, %v7295_v58  ;;  %v7312_v51 = vadd.f32 %v6676_v3, %v2057_v37  ;;  %vm2183_vm11 = vcmp.gt.f32.partialorder %v7255_v46, 0.0 }
 0x2e0   : > { %v4373_v49 = vpop.eup %4372  ;;  %v2818_v17 = vadd.f32 1.0, %v4371_v23  ;;  %v2405_v24 = vmul.f32 1.6732632, %v3684_v33  ;;  %4392 = vpow2.f32 %v2240_v56  ;;  %vm2152_vm12 = vcmp.gt.f32.partialorder %v7258_v59, 0.0 }
 0x2e1   : > { %v4375_v60 = vpop.eup %4374  ;;  %2977 = vst.msk [vmem:[%s6851_s28 + $0xa0] sm:$0xff] %vm2956_vm1, %v4373_v49  ;;  %4394 = vpow2.f32 %v2242_v15  ;;  %vm2153_vm13 = vcmp.gt.f32.partialorder %v7264_v35, 0.0  ;;  %vm2184_vm14 = vcmp.gt.f32.partialorder %v7273_v11, 0.0  ;;  %vm2185_vm15 = vcmp.gt.f32.partialorder %v7279_v19, 0.0 }
 0x2e2   : > { %v4377_v54 = vpop.eup %4376  ;;  %4396 = vrcp.f32 %v2818_v17  ;;  %v2819_v0 = vadd.f32 1.0, %v4375_v60  ;;  %v2469_v50 = vsel %vm2149_vm5, %v7152_v25, %v2405_v24  ;;  %v7285_v25 = vadd.f32 %v6676_v3, %v1958_v18 }
 0x2e3   : > { %v4379_v38 = vpop.eup %4378  ;;  %2978 = vst.msk [vmem:[%s6851_s28 + $0xa8] sm:$0xff] %vm2956_vm1, %v4377_v54  ;;  %v2533_v9 = vmul.f32 1.050701, %v2469_v50  ;;  %4398 = vpow2.f32 %v2304_v7  ;;  %v2314_v7 = vmul.f32 1.442695, %v7312_v51  ;;  %vm2155_vm2 = vcmp.gt.f32.partialorder %v7291_v41, 0.0 }
 0x2e4   : > { %v4381_v30 = vpop.eup %4380  ;;  %3009 = vst.msk [vmem:[%s6851_s28 + $0x1a0] sm:$0xff] %vm2956_vm1, %v4379_v38  ;;  %4400 = vrcp.f32 %v2819_v0  ;;  %v2248_v55 = vmul.f32 1.442695, %v7285_v25  ;;  %vm2154_vm0 = vcmp.gt.f32.partialorder %v7285_v25, 0.0  ;;  %vm2186_vm3 = vcmp.gt.f32.partialorder %v7295_v58, 0.0 }
 0x2e5   : > { %v4383_v12 = vpop.eup %4382  ;;  %3010 = vst.msk [vmem:[%s6851_s28 + $0x1a8] sm:$0xff] %vm2956_vm1, %v4381_v30  ;;  %v2597_v61 = vsub.f32 0.0, %v2533_v9  ;;  %4402 = vpow2.f32 %v2306_v57  ;;  %vm2187_vm4 = vcmp.gt.f32.partialorder %v7312_v51, 0.0 }
 0x2e6   : > { %v4385_v47 = vpop.eup %4384  ;;  %v2788_v1 = vadd.f32 1.0, %v4383_v12  ;;  %4404 = vpow2.f32 %v2244_v40 }
 0x2e7   : > { %v4387_v26 = vpop.eup %4386  ;;  %v2686_v6 = vmul.f32 1.442695, %v2597_v61  ;;  %v3715_v28 = vadd.f32 -1.0, %v4385_v47  ;;  %4406 = vpow2.f32 %v2246_v27 }
 0x2e8   : > { %v4389_v4 = vpop.eup %4388  ;;  %4408 = vrcp.f32 %v2788_v1  ;;  %v3716_v42 = vadd.f32 -1.0, %v4387_v26 }
 0x2e9   : > { %v4391_v16 = vpop.eup %4390  ;;  %2979 = vst.msk [vmem:[%s6851_s28 + $0xb0] sm:$0xff] %vm2956_vm1, %v4389_v4  ;;  %4410 = vpow2.f32 %v2686_v6  ;;  %v2436_v8 = vmul.f32 1.6732632, %v3715_v28 }
 0x2ea   : > { %v4393_v14 = vpop.eup %4392  ;;  %2980 = vst.msk [vmem:[%s6851_s28 + $0xb8] sm:$0xff] %vm2956_vm1, %v4391_v16  ;;  %v2437_v32 = vmul.f32 1.6732632, %v3716_v42  ;;  %4412 = vpow2.f32 %v2308_v36 }
 0x2eb   : > { %v4395_v31 = vpop.eup %4394  ;;  %v2500_v21 = vsel %vm2180_vm6, %v7224_v52, %v2436_v8  ;;  %v3685_v45 = vadd.f32 -1.0, %v4393_v14  ;;  %4414 = vpow2.f32 %v2310_v44 }
 0x2ec   : > { %v4397_v2 = vpop.eup %4396  ;;  %v2564_v5 = vmul.f32 1.050701, %v2500_v21  ;;  %v2501_v56 = vsel %vm2181_vm7, %v7230_v43, %v2437_v32  ;;  %v3686_v15 = vadd.f32 -1.0, %v4395_v31  ;;  %4416 = vpow2.f32 %v2248_v55 }
 0x2ed   : > { %v4399_v48 = vpop.eup %4398  ;;  %3011 = vst.msk [vmem:[%s6851_s28 + $0x1b0] sm:$0xff] %vm2956_vm1, %v4397_v2  ;;  %v2565_v52 = vmul.f32 1.050701, %v2501_v56  ;;  %v2406_v29 = vmul.f32 1.6732632, %v3685_v45  ;;  %4418 = vpow2.f32 %v2250_v39 }
 0x2ee   : > { %v4401_v3 = vpop.eup %4400  ;;  %v2628_v63 = vsub.f32 0.0, %v2564_v5  ;;  %v2407_v18 = vmul.f32 1.6732632, %v3686_v15  ;;  %v3717_v34 = vadd.f32 -1.0, %v4399_v48  ;;  %4420 = vpow2.f32 %v2312_v13 }
 0x2ef   : > { %v4403_v43 = vpop.eup %4402  ;;  %3012 = vst.msk [vmem:[%s6851_s28 + $0x1b8] sm:$0xff] %vm2956_vm1, %v4401_v3  ;;  %v2629_v33 = vsub.f32 0.0, %v2565_v52  ;;  %v2470_v23 = vsel %vm2150_vm8, %v7235_v53, %v2406_v29 }
 0x2f0   : > { %v4405_v49 = vpop.eup %4404  ;;  %v2748_v17 = vmul.f32 1.442695, %v2628_v63  ;;  %v2534_v24 = vmul.f32 1.050701, %v2470_v23  ;;  %v2471_v60 = vsel %vm2151_vm9, %v7239_v20, %v2407_v18  ;;  %v2438_v57 = vmul.f32 1.6732632, %v3717_v34 }
 0x2f1   : > { %v4407_v40 = vpop.eup %4406  ;;  %v2750_v54 = vmul.f32 1.442695, %v2629_v33  ;;  %v2535_v0 = vmul.f32 1.050701, %v2471_v60  ;;  %v3718_v50 = vadd.f32 -1.0, %v4403_v43  ;;  %v3687_v22 = vadd.f32 -1.0, %v4405_v49 }
 0x2f2   : > { %v4409_v53 = vpop.eup %4408  ;;  %4422 = vpow2.f32 %v2748_v17  ;;  %v2598_v38 = vsub.f32 0.0, %v2534_v24  ;;  %v2502_v9 = vsel %vm2182_vm10, %v7250_v10, %v2438_v57  ;;  %v3688_v27 = vadd.f32 -1.0, %v4407_v40 }
 0x2f3   : > { %v4411_v62 = vpop.eup %4410  ;;  %2981 = vst.msk [vmem:[%s6851_s28 + $0xc0] sm:$0xff] %vm2956_vm1, %v4409_v53  ;;  %4424 = vpow2.f32 %v2750_v54  ;;  %v2599_v20 = vsub.f32 0.0, %v2535_v0  ;;  %v2566_v30 = vmul.f32 1.050701, %v2502_v9  ;;  %v2439_v12 = vmul.f32 1.6732632, %v3718_v50 }
 0x2f4   : > { %v4413_v61 = vpop.eup %4412  ;;  %v2789_v47 = vadd.f32 1.0, %v4411_v62  ;;  %v2688_v1 = vmul.f32 1.442695, %v2598_v38  ;;  %v2408_v36 = vmul.f32 1.6732632, %v3687_v22  ;;  %4426 = vpow2.f32 %v2314_v7 }
 0x2f5   : > { %v4415_v26 = vpop.eup %4414  ;;  %v2690_v6 = vmul.f32 1.442695, %v2599_v20  ;;  %v2630_v28 = vsub.f32 0.0, %v2566_v30  ;;  %v2503_v10 = vsel %vm2183_vm11, %v7255_v46, %v2439_v12  ;;  %v2409_v44 = vmul.f32 1.6732632, %v3688_v27 }
 0x2f6   : > { %v4417_v4 = vpop.eup %4416  ;;  %4428 = vrcp.f32 %v2789_v47  ;;  %v2567_v42 = vmul.f32 1.050701, %v2503_v10  ;;  %v2472_v55 = vsel %vm2152_vm12, %v7258_v59, %v2408_v36  ;;  %v3719_v37 = vadd.f32 -1.0, %v4413_v61 }
 0x2f7   : > { %v4419_v16 = vpop.eup %4418  ;;  %4430 = vpow2.f32 %v2688_v1  ;;  %v2752_v8 = vmul.f32 1.442695, %v2630_v28  ;;  %v2536_v39 = vmul.f32 1.050701, %v2472_v55  ;;  %v2473_v46 = vsel %vm2153_vm13, %v7264_v35, %v2409_v44 }
 0x2f8   : > { %4432 = vpow2.f32 %v2690_v6  ;;  %v2631_v14 = vsub.f32 0.0, %v2567_v42  ;;  %v2537_v32 = vmul.f32 1.050701, %v2473_v46  ;;  %v2440_v13 = vmul.f32 1.6732632, %v3719_v37  ;;  %v4421_v31 = vpop.eup %4420 }
 0x2f9   : > { %4434 = vpow2.f32 %v2752_v8  ;;  %v2600_v21 = vsub.f32 0.0, %v2536_v39  ;;  %v3720_v45 = vadd.f32 -1.0, %v4415_v26  ;;  %v3689_v59 = vadd.f32 -1.0, %v4417_v4 }
 0x2fa   : > { %v2754_v2 = vmul.f32 1.442695, %v2631_v14  ;;  %v2601_v5 = vsub.f32 0.0, %v2537_v32  ;;  %v2504_v56 = vsel %vm2184_vm14, %v7273_v11, %v2440_v13  ;;  %v3690_v15 = vadd.f32 -1.0, %v4419_v16 }
 0x2fb   : > { %v2692_v48 = vmul.f32 1.442695, %v2600_v21  ;;  %v2568_v52 = vmul.f32 1.050701, %v2504_v56  ;;  %v2441_v29 = vmul.f32 1.6732632, %v3720_v45 }
 0x2fc   : > { %v4423_v35 = vpop.eup %4422  ;;  %4436 = vpow2.f32 %v2754_v2  ;;  %v2694_v3 = vmul.f32 1.442695, %v2601_v5  ;;  %v2410_v63 = vmul.f32 1.6732632, %v3689_v59  ;;  %v2411_v18 = vmul.f32 1.6732632, %v3690_v15 }
 0x2fd   : > { %v4425_v34 = vpop.eup %4424  ;;  %v2820_v43 = vadd.f32 1.0, %v4423_v35  ;;  %4438 = vpow2.f32 %v2692_v48  ;;  %v2632_v33 = vsub.f32 0.0, %v2568_v52  ;;  %v2505_v23 = vsel %vm2185_vm15, %v7279_v19, %v2441_v29 }
 0x2fe   : > { %v4427_v7 = vpop.eup %4426  ;;  %v2821_v11 = vadd.f32 1.0, %v4425_v34  ;;  %4440 = vpow2.f32 %v2694_v3  ;;  %v2569_v49 = vmul.f32 1.050701, %v2505_v23  ;;  %v2474_v17 = vsel %vm2154_vm0, %v7285_v25, %v2410_v63 }
 0x2ff   : > { %4442 = vrcp.f32 %v2820_v43  ;;  %v2756_v24 = vmul.f32 1.442695, %v2632_v33  ;;  %v2538_v60 = vmul.f32 1.050701, %v2474_v17  ;;  %v2475_v57 = vsel %vm2155_vm2, %v7291_v41, %v2411_v18 }
 0x300   : > { %v4429_v40 = vpop.eup %4428  ;;  %4444 = vrcp.f32 %v2821_v11  ;;  %v2633_v54 = vsub.f32 0.0, %v2569_v49  ;;  %v2539_v19 = vmul.f32 1.050701, %v2475_v57  ;;  %v3721_v0 = vadd.f32 -1.0, %v4421_v31 }
 0x301   : > { %v4431_v50 = vpop.eup %4430  ;;  %2982 = vst.msk [vmem:[%s6851_s28 + $0xc8] sm:$0xff] %vm2956_vm1, %v4429_v40  ;;  %4446 = vpow2.f32 %v2756_v24  ;;  %v2602_v22 = vsub.f32 0.0, %v2538_v60  ;;  %v3722_v53 = vadd.f32 -1.0, %v4427_v7 }
 0x302   : > { %v4433_v38 = vpop.eup %4432  ;;  %v2790_v25 = vadd.f32 1.0, %v4431_v50  ;;  %v2442_v9 = vmul.f32 1.6732632, %v3721_v0  ;;  %v2758_v62 = vmul.f32 1.442695, %v2633_v54  ;;  %v2603_v20 = vsub.f32 0.0, %v2539_v19 }
 0x303   : > { %v4435_v27 = vpop.eup %4434  ;;  %v2791_v41 = vadd.f32 1.0, %v4433_v38  ;;  %v2443_v30 = vmul.f32 1.6732632, %v3722_v53  ;;  %v2696_v61 = vmul.f32 1.442695, %v2602_v22 }
 0x304   : > { %4448 = vrcp.f32 %v2790_v25  ;;  %v2822_v12 = vadd.f32 1.0, %v4435_v27  ;;  %v2506_v47 = vsel %vm2186_vm3, %v7295_v58, %v2442_v9  ;;  %v2698_v55 = vmul.f32 1.442695, %v2603_v20 }
 0x305   : > { %4450 = vrcp.f32 %v2791_v41  ;;  %v2570_v1 = vmul.f32 1.050701, %v2506_v47  ;;  %v2507_v36 = vsel %vm2187_vm4, %v7312_v51, %v2443_v30 }
 0x306   : > { %v4437_v26 = vpop.eup %4436  ;;  %4452 = vrcp.f32 %v2822_v12  ;;  %v2571_v6 = vmul.f32 1.050701, %v2507_v36 }
 0x307   : > { %v4439_v28 = vpop.eup %4438  ;;  %v2823_v10 = vadd.f32 1.0, %v4437_v26  ;;  %4454 = vpow2.f32 %v2758_v62  ;;  %v2634_v44 = vsub.f32 0.0, %v2570_v1 }
 0x308   : > { %v4441_v4 = vpop.eup %4440  ;;  %v2792_v42 = vadd.f32 1.0, %v4439_v28  ;;  %4456 = vpow2.f32 %v2696_v61  ;;  %v2635_v37 = vsub.f32 0.0, %v2571_v6 }
 0x309   : > { %v4443_v16 = vpop.eup %4442  ;;  %4458 = vrcp.f32 %v2823_v10  ;;  %v2793_v58 = vadd.f32 1.0, %v4441_v4  ;;  %v2760_v8 = vmul.f32 1.442695, %v2634_v44 }
 0x30a   : > { %v4445_v51 = vpop.eup %4444  ;;  %3013 = vst.msk [vmem:[%s6851_s28 + $0x1c0] sm:$0xff] %vm2956_vm1, %v4443_v16  ;;  %4460 = vrcp.f32 %v2792_v42  ;;  %v2762_v46 = vmul.f32 1.442695, %v2635_v37 }
 0x30b   : > { %v4447_v39 = vpop.eup %4446  ;;  %3014 = vst.msk [vmem:[%s6851_s28 + $0x1c8] sm:$0xff] %vm2956_vm1, %v4445_v51  ;;  %4462 = vrcp.f32 %v2793_v58 }
 0x30c   : > { %v2824_v14 = vadd.f32 1.0, %v4447_v39  ;;  %4464 = vpow2.f32 %v2698_v55 }
 0x30d   : > { %4466 = vpow2.f32 %v2760_v8 }
 0x30e   : > { %v4449_v32 = vpop.eup %4448  ;;  %4468 = vrcp.f32 %v2824_v14 }
 0x30f   : > { %v4451_v13 = vpop.eup %4450  ;;  %2983 = vst.msk [vmem:[%s6851_s28 + $0xd0] sm:$0xff] %vm2956_vm1, %v4449_v32  ;;  %4470 = vpow2.f32 %v2762_v46 }
 0x310   : > { %v4453_v31 = vpop.eup %4452  ;;  %2984 = vst.msk [vmem:[%s6851_s28 + $0xd8] sm:$0xff] %vm2956_vm1, %v4451_v13 }
 0x311   : > { %v4455_v21 = vpop.eup %4454  ;;  %3015 = vst.msk [vmem:[%s6851_s28 + $0x1d0] sm:$0xff] %vm2956_vm1, %v4453_v31 }
 0x312   : > { %v4457_v45 = vpop.eup %4456  ;;  %v2825_v59 = vadd.f32 1.0, %v4455_v21 }
 0x313   : > { %v4459_v2 = vpop.eup %4458  ;;  %v2794_v5 = vadd.f32 1.0, %v4457_v45 }
 0x314   : > { %v4461_v56 = vpop.eup %4460  ;;  %3016 = vst.msk [vmem:[%s6851_s28 + $0x1d8] sm:$0xff] %vm2956_vm1, %v4459_v2  ;;  %4472 = vrcp.f32 %v2825_v59 }
 0x315   : > { %v4463_v15 = vpop.eup %4462  ;;  %2985 = vst.msk [vmem:[%s6851_s28 + $0xe0] sm:$0xff] %vm2956_vm1, %v4461_v56  ;;  %4474 = vrcp.f32 %v2794_v5 }
 0x316   : > { %v4465_v48 = vpop.eup %4464  ;;  %2986 = vst.msk [vmem:[%s6851_s28 + $0xe8] sm:$0xff] %vm2956_vm1, %v4463_v15 }
 0x317   : > { %v4467_v52 = vpop.eup %4466  ;;  %v2795_v29 = vadd.f32 1.0, %v4465_v48 }
 0x318   : > { %v4469_v35 = vpop.eup %4468  ;;  %v2826_v3 = vadd.f32 1.0, %v4467_v52 }
 0x319   : > { %v4471_v63 = vpop.eup %4470  ;;  %3017 = vst.msk [vmem:[%s6851_s28 + $0x1e0] sm:$0xff] %vm2956_vm1, %v4469_v35  ;;  %4476 = vrcp.f32 %v2795_v29 }
 0x31a   : > { %4478 = vrcp.f32 %v2826_v3  ;;  %v2827_v18 = vadd.f32 1.0, %v4471_v63 }
 0x31c   : > { %4480 = vrcp.f32 %v2827_v18 }
 0x31e   : > { %v4473_v34 = vpop.eup %4472 }
 0x31f   : > { %v4475_v43 = vpop.eup %4474  ;;  %3018 = vst.msk [vmem:[%s6851_s28 + $0x1e8] sm:$0xff] %vm2956_vm1, %v4473_v34 }
 0x320   : > { %2987 = vst.msk [vmem:[%s6851_s28 + $0xf0] sm:$0xff] %vm2956_vm1, %v4475_v43 }
 0x321   : > { %3027 = sbr.rel (!%p4629_p4) target bundleno = 880 (0x370), region = 44 }
 0x323   : > { %v4477_v33 = vpop.eup %4476 }
 0x324   : > { %v4479_v23 = vpop.eup %4478  ;;  %2988 = vst.msk [vmem:[%s6851_s28 + $0xf8] sm:$0xff] %vm2956_vm1, %v4477_v33 }
 0x325   : > { %3019 = vst.msk [vmem:[%s6851_s28 + $0x1f0] sm:$0xff] %vm2956_vm1, %v4479_v23 }
 0x326   : > { %v4481_v7 = vpop.eup %4480 }
 0x327   : > { %3020 = vst.msk [vmem:[%s6851_s28 + $0x1f8] sm:$0xff] %vm2956_vm1, %v4481_v7 }
 0x328   : > { %s7775_s29 = smov (!%p3030_p8, %s3029_s29), 64 }
 0x329   : > { %s3725_s10 = sshll.u32 %s7775_s29, 7 }
 0x32a   : > { %p3728_p9 = scmp.eq.s32.totalorder %s3725_s10, 0 }
 0x32b   : > { %s7408_s11 = sshrl.u32 (!%p3728_p9), %s7775_s29, 6 }
 0x32c   : > { %3038 = sbr.rel (%p3728_p9) target bundleno = 880 (0x370), region = 48  ;;  %p3729_p10 = scmp.le.s32.totalorder (!%p3728_p9), %s7408_s11, 0 }
 0x333   : > { %3444 = sbr.rel (%p3729_p10) target bundleno = 859 (0x35b), region = 124  ;;  %s7766_s4 = smov (!%p3729_p10), %s7402_s9 }
 0x334   : > { %s7767_s27 = smov (!%p3729_p10), %s6851_s28  ;;  %s7417_s30 = smov (!%p3729_p10), 0  }
 0x335   : > { %s7419_s12 = smov (!%p3729_p10), 0  }
 0x33a LB: >> { %v3226_v11 = vld [vmem:[%s4544_s27] sm:$0xff]  ;;  %v3228_v49 = vld [vmem:[%s4544_s27 + $0x8] sm:$0xff]  ;;  %v3230_v17 = vld [vmem:[%s4544_s27 + $0x10] sm:$0xff]  ;;  %s3354_s13 = sadd.s32 1, %s4548_s30  ;;  %s3220_s12 = sadd.s32 1, %s4552_s12   ;;  %s4552_s12 = sphi %s7419_s12, %s3220_s12   ;;  %s4548_s30 = sphi %s7417_s30, %s7770_s30   ;;  %s4544_s27 = sphi %s7767_s27, %s7769_s27   ;;  %s4540_s4 = sphi %s7766_s4, %s7768_s4  }
 0x33b   : >> { %3227 = vst [vmem:[%s4540_s4] sm:$0xff] %v3226_v11  ;;  %3229 = vst [vmem:[%s4540_s4 + $0x8] sm:$0xff] %v3228_v49  ;;  %v3232_v24 = vld [vmem:[%s4544_s27 + $0x18] sm:$0xff]  ;;  %v3234_v60 = vld [vmem:[%s4544_s27 + $0x20] sm:$0xff]  ;;  %p3355_p11 = scmp.ge.s32.totalorder %s3354_s13, %s7408_s11  ;;  %p3219_p12 = scmp.ge.s32.totalorder %s3220_s12, %s7408_s11 }
 0x33c   : >> { %3231 = vst [vmem:[%s4540_s4 + $0x10] sm:$0xff] %v3230_v17  ;;  %v3236_v57 = vld [vmem:[%s4544_s27 + $0x28] sm:$0xff]  ;;  %3233 = vst [vmem:[%s4540_s4 + $0x18] sm:$0xff] %v3232_v24  ;;  %v3238_v40 = vld [vmem:[%s4544_s27 + $0x30] sm:$0xff] }
 0x33d   : >> { %3235 = vst [vmem:[%s4540_s4 + $0x20] sm:$0xff] %v3234_v60  ;;  %3237 = vst [vmem:[%s4540_s4 + $0x28] sm:$0xff] %v3236_v57  ;;  %v3240_v54 = vld [vmem:[%s4544_s27 + $0x38] sm:$0xff]  ;;  %v3242_v19 = vld [vmem:[%s4544_s27 + $0x40] sm:$0xff]  ;;  %s7777_s13 = smov (%p3355_p11, %s3354_s13), 0 }
 0x33e   : >> { %3239 = vst [vmem:[%s4540_s4 + $0x30] sm:$0xff] %v3238_v40  ;;  %3241 = vst [vmem:[%s4540_s4 + $0x38] sm:$0xff] %v3240_v54  ;;  %v3244_v0 = vld [vmem:[%s4544_s27 + $0x48] sm:$0xff]  ;;  %v3246_v50 = vld [vmem:[%s4544_s27 + $0x50] sm:$0xff]  ;;  %s3730_s14 = sshll.u32 %s7777_s13, 9  ;;  %s7770_s30 = smov %s7777_s13 }
 0x33f   : >> { %3243 = vst [vmem:[%s4540_s4 + $0x40] sm:$0xff] %v3242_v19  ;;  %v3248_v22 = vld [vmem:[%s4544_s27 + $0x58] sm:$0xff]  ;;  %3245 = vst [vmem:[%s4540_s4 + $0x48] sm:$0xff] %v3244_v0  ;;  %v3250_v53 = vld [vmem:[%s4544_s27 + $0x60] sm:$0xff]  ;;  %s7475_s15 = scalar_lea.vmem %s6851_s28, %s3730_s14 [#allocation3]   ;;  %s7478_s16 = scalar_lea.vmem %s7402_s9, %s3730_s14  }
 0x340   : >> { %3247 = vst [vmem:[%s4540_s4 + $0x50] sm:$0xff] %v3246_v50  ;;  %3249 = vst [vmem:[%s4540_s4 + $0x58] sm:$0xff] %v3248_v22  ;;  %v3252_v38 = vld [vmem:[%s4544_s27 + $0x68] sm:$0xff]  ;;  %v3254_v25 = vld [vmem:[%s4544_s27 + $0x70] sm:$0xff] }
 0x341   : >> { %3251 = vst [vmem:[%s4540_s4 + $0x60] sm:$0xff] %v3250_v53  ;;  %3253 = vst [vmem:[%s4540_s4 + $0x68] sm:$0xff] %v3252_v38  ;;  %v3256_v9 = vld [vmem:[%s4544_s27 + $0x78] sm:$0xff]  ;;  %v3258_v27 = vld [vmem:[%s4544_s27 + $0x80] sm:$0xff] }
 0x342   : >> { %3255 = vst [vmem:[%s4540_s4 + $0x70] sm:$0xff] %v3254_v25  ;;  %v3260_v41 = vld [vmem:[%s4544_s27 + $0x88] sm:$0xff]  ;;  %3257 = vst [vmem:[%s4540_s4 + $0x78] sm:$0xff] %v3256_v9  ;;  %v3262_v62 = vld [vmem:[%s4544_s27 + $0x90] sm:$0xff] }
 0x343   : >> { %3259 = vst [vmem:[%s4540_s4 + $0x80] sm:$0xff] %v3258_v27  ;;  %3261 = vst [vmem:[%s4540_s4 + $0x88] sm:$0xff] %v3260_v41  ;;  %v3264_v20 = vld [vmem:[%s4544_s27 + $0x98] sm:$0xff]  ;;  %v3266_v30 = vld [vmem:[%s4544_s27 + $0xa0] sm:$0xff] }
 0x344   : >> { %3263 = vst [vmem:[%s4540_s4 + $0x90] sm:$0xff] %v3262_v62  ;;  %3265 = vst [vmem:[%s4540_s4 + $0x98] sm:$0xff] %v3264_v20  ;;  %v3268_v12 = vld [vmem:[%s4544_s27 + $0xa8] sm:$0xff]  ;;  %v3270_v61 = vld [vmem:[%s4544_s27 + $0xb0] sm:$0xff] }
 0x345   : >> { %3267 = vst [vmem:[%s4540_s4 + $0xa0] sm:$0xff] %v3266_v30  ;;  %v3272_v47 = vld [vmem:[%s4544_s27 + $0xb8] sm:$0xff]  ;;  %3269 = vst [vmem:[%s4540_s4 + $0xa8] sm:$0xff] %v3268_v12  ;;  %v3274_v1 = vld [vmem:[%s4544_s27 + $0xc0] sm:$0xff] }
 0x346   : >> { %3271 = vst [vmem:[%s4540_s4 + $0xb0] sm:$0xff] %v3270_v61  ;;  %3273 = vst [vmem:[%s4540_s4 + $0xb8] sm:$0xff] %v3272_v47  ;;  %v3276_v36 = vld [vmem:[%s4544_s27 + $0xc8] sm:$0xff]  ;;  %v3278_v26 = vld [vmem:[%s4544_s27 + $0xd0] sm:$0xff] }
 0x347   : >> { %3275 = vst [vmem:[%s4540_s4 + $0xc0] sm:$0xff] %v3274_v1  ;;  %3277 = vst [vmem:[%s4540_s4 + $0xc8] sm:$0xff] %v3276_v36  ;;  %v3280_v6 = vld [vmem:[%s4544_s27 + $0xd8] sm:$0xff]  ;;  %v3282_v28 = vld [vmem:[%s4544_s27 + $0xe0] sm:$0xff] }
 0x348   : >> { %3279 = vst [vmem:[%s4540_s4 + $0xd0] sm:$0xff] %v3278_v26  ;;  %v3284_v10 = vld [vmem:[%s4544_s27 + $0xe8] sm:$0xff]  ;;  %3281 = vst [vmem:[%s4540_s4 + $0xd8] sm:$0xff] %v3280_v6  ;;  %v3286_v44 = vld [vmem:[%s4544_s27 + $0xf0] sm:$0xff] }
 0x349   : >> { %3283 = vst [vmem:[%s4540_s4 + $0xe0] sm:$0xff] %v3282_v28  ;;  %3285 = vst [vmem:[%s4540_s4 + $0xe8] sm:$0xff] %v3284_v10  ;;  %v3288_v4 = vld [vmem:[%s4544_s27 + $0xf8] sm:$0xff]  ;;  %v3290_v42 = vld [vmem:[%s4544_s27 + $0x100] sm:$0xff] }
 0x34a   : >> { %3287 = vst [vmem:[%s4540_s4 + $0xf0] sm:$0xff] %v3286_v44  ;;  %3289 = vst [vmem:[%s4540_s4 + $0xf8] sm:$0xff] %v3288_v4  ;;  %v3292_v55 = vld [vmem:[%s4544_s27 + $0x108] sm:$0xff]  ;;  %v3294_v37 = vld [vmem:[%s4544_s27 + $0x110] sm:$0xff] }
 0x34b   : >> { %3291 = vst [vmem:[%s4540_s4 + $0x100] sm:$0xff] %v3290_v42  ;;  %v3296_v16 = vld [vmem:[%s4544_s27 + $0x118] sm:$0xff]  ;;  %3293 = vst [vmem:[%s4540_s4 + $0x108] sm:$0xff] %v3292_v55  ;;  %v3298_v58 = vld [vmem:[%s4544_s27 + $0x120] sm:$0xff] }
 0x34c   : >> { %3295 = vst [vmem:[%s4540_s4 + $0x110] sm:$0xff] %v3294_v37  ;;  %3297 = vst [vmem:[%s4540_s4 + $0x118] sm:$0xff] %v3296_v16  ;;  %v3300_v8 = vld [vmem:[%s4544_s27 + $0x128] sm:$0xff]  ;;  %v3302_v51 = vld [vmem:[%s4544_s27 + $0x130] sm:$0xff] }
 0x34d   : >> { %3299 = vst [vmem:[%s4540_s4 + $0x120] sm:$0xff] %v3298_v58  ;;  %3301 = vst [vmem:[%s4540_s4 + $0x128] sm:$0xff] %v3300_v8  ;;  %v3304_v39 = vld [vmem:[%s4544_s27 + $0x138] sm:$0xff]  ;;  %v3306_v46 = vld [vmem:[%s4544_s27 + $0x140] sm:$0xff] }
 0x34e   : >> { %3303 = vst [vmem:[%s4540_s4 + $0x130] sm:$0xff] %v3302_v51  ;;  %v3308_v14 = vld [vmem:[%s4544_s27 + $0x148] sm:$0xff]  ;;  %3305 = vst [vmem:[%s4540_s4 + $0x138] sm:$0xff] %v3304_v39  ;;  %v3310_v32 = vld [vmem:[%s4544_s27 + $0x150] sm:$0xff] }
 0x34f   : >> { %3307 = vst [vmem:[%s4540_s4 + $0x140] sm:$0xff] %v3306_v46  ;;  %3309 = vst [vmem:[%s4540_s4 + $0x148] sm:$0xff] %v3308_v14  ;;  %v3312_v13 = vld [vmem:[%s4544_s27 + $0x158] sm:$0xff]  ;;  %v3314_v31 = vld [vmem:[%s4544_s27 + $0x160] sm:$0xff] }
 0x350   : >> { %3311 = vst [vmem:[%s4540_s4 + $0x150] sm:$0xff] %v3310_v32  ;;  %3313 = vst [vmem:[%s4540_s4 + $0x158] sm:$0xff] %v3312_v13  ;;  %v3316_v21 = vld [vmem:[%s4544_s27 + $0x168] sm:$0xff]  ;;  %v3318_v45 = vld [vmem:[%s4544_s27 + $0x170] sm:$0xff] }
 0x351   : >> { %3315 = vst [vmem:[%s4540_s4 + $0x160] sm:$0xff] %v3314_v31  ;;  %v3320_v59 = vld [vmem:[%s4544_s27 + $0x178] sm:$0xff]  ;;  %3317 = vst [vmem:[%s4540_s4 + $0x168] sm:$0xff] %v3316_v21  ;;  %v3322_v2 = vld [vmem:[%s4544_s27 + $0x180] sm:$0xff] }
 0x352   : >> { %3319 = vst [vmem:[%s4540_s4 + $0x170] sm:$0xff] %v3318_v45  ;;  %3321 = vst [vmem:[%s4540_s4 + $0x178] sm:$0xff] %v3320_v59  ;;  %v3324_v5 = vld [vmem:[%s4544_s27 + $0x188] sm:$0xff]  ;;  %v3326_v56 = vld [vmem:[%s4544_s27 + $0x190] sm:$0xff] }
 0x353   : >> { %3323 = vst [vmem:[%s4540_s4 + $0x180] sm:$0xff] %v3322_v2  ;;  %3325 = vst [vmem:[%s4540_s4 + $0x188] sm:$0xff] %v3324_v5  ;;  %v3328_v15 = vld [vmem:[%s4544_s27 + $0x198] sm:$0xff]  ;;  %v3330_v48 = vld [vmem:[%s4544_s27 + $0x1a0] sm:$0xff] }
 0x354   : >> { %3327 = vst [vmem:[%s4540_s4 + $0x190] sm:$0xff] %v3326_v56  ;;  %v3332_v52 = vld [vmem:[%s4544_s27 + $0x1a8] sm:$0xff]  ;;  %3329 = vst [vmem:[%s4540_s4 + $0x198] sm:$0xff] %v3328_v15  ;;  %v3334_v29 = vld [vmem:[%s4544_s27 + $0x1b0] sm:$0xff]  ;;  %3222 = sbr.rel (!%p3219_p12) target bundleno = 826 (0x33a), region = 130 }
 0x355   : >> { %3331 = vst [vmem:[%s4540_s4 + $0x1a0] sm:$0xff] %v3330_v48  ;;  %3333 = vst [vmem:[%s4540_s4 + $0x1a8] sm:$0xff] %v3332_v52  ;;  %v3336_v35 = vld [vmem:[%s4544_s27 + $0x1b8] sm:$0xff]  ;;  %v3338_v3 = vld [vmem:[%s4544_s27 + $0x1c0] sm:$0xff] }
 0x356   : >> { %3335 = vst [vmem:[%s4540_s4 + $0x1b0] sm:$0xff] %v3334_v29  ;;  %3337 = vst [vmem:[%s4540_s4 + $0x1b8] sm:$0xff] %v3336_v35  ;;  %v3340_v63 = vld [vmem:[%s4544_s27 + $0x1c8] sm:$0xff]  ;;  %v3342_v18 = vld [vmem:[%s4544_s27 + $0x1d0] sm:$0xff] }
 0x357   : >> { %3339 = vst [vmem:[%s4540_s4 + $0x1c0] sm:$0xff] %v3338_v3  ;;  %v3344_v34 = vld [vmem:[%s4544_s27 + $0x1d8] sm:$0xff]  ;;  %3341 = vst [vmem:[%s4540_s4 + $0x1c8] sm:$0xff] %v3340_v63  ;;  %v3346_v43 = vld [vmem:[%s4544_s27 + $0x1e0] sm:$0xff] }
 0x358   : >> { %3343 = vst [vmem:[%s4540_s4 + $0x1d0] sm:$0xff] %v3342_v18  ;;  %3345 = vst [vmem:[%s4540_s4 + $0x1d8] sm:$0xff] %v3344_v34  ;;  %v3348_v33 = vld [vmem:[%s4544_s27 + $0x1e8] sm:$0xff]  ;;  %v3350_v23 = vld [vmem:[%s4544_s27 + $0x1f0] sm:$0xff] }
 0x359   : >> { %3347 = vst [vmem:[%s4540_s4 + $0x1e0] sm:$0xff] %v3346_v43  ;;  %3349 = vst [vmem:[%s4540_s4 + $0x1e8] sm:$0xff] %v3348_v33  ;;  %v3352_v7 = vld [vmem:[%s4544_s27 + $0x1f8] sm:$0xff]  ;;  %s7769_s27 = smov %s7475_s15 }
 0x35a   : >> { %3351 = vst [vmem:[%s4540_s4 + $0x1f0] sm:$0xff] %v3350_v23  ;;  %3353 = vst [vmem:[%s4540_s4 + $0x1f8] sm:$0xff] %v3352_v7  ;;  %s7768_s4 = smov %s7478_s16 }
 0x35b PF: > { %s7583_s17 = sand.u32 63, %s7775_s29   ;;  %s3741_s18 = sshll.u32 %s7408_s11, 9 }
 0x35c   : > { %s3365_s19 = scalar_lea.vmem %s6851_s28, %s3741_s18 [#allocation3]   ;;  %s3367_s22 = scalar_lea.vmem %s7402_s9, %s3741_s18  }
 0x35d   : > { %p3735_p13 = scmp.le.s32.totalorder %s7583_s17, 0 }
 0x35e   : > { %s4554_s24 = smov (!%p3735_p13), %s3367_s22   ;;  %s4558_s25 = smov (!%p3735_p13), %s3365_s19  }
 0x35f   : > { %3458 = sbr.rel (%p3735_p13) target bundleno = 880 (0x370), region = 135  ;;  %s4562_s20 = smov (!%p3735_p13), 0  }
 0x360   : > { %s4566_s6 = smov (!%p3735_p13), 0  }
 0x366 LB: >> { %v3377_v11 = vld [vmem:[%s4560_s25] sm:$0xff]  ;;  %s3379_s29 = sadd.s32 1, %s4564_s20  ;;  %s3371_s6 = sadd.s32 1, %s4568_s6   ;;  %s4568_s6 = sphi %s4566_s6, %s3371_s6   ;;  %s4564_s20 = sphi %s4562_s20, %s4563_s20   ;;  %s4560_s25 = sphi %s4558_s25, %s3384_s25   ;;  %s4556_s24 = sphi %s4554_s24, %s3385_s24  }
 0x367   : >> { %3378 = vst [vmem:[%s4556_s24] sm:$0xff] %v3377_v11  ;;  %p3380_p0 = scmp.ge.s32.totalorder %s3379_s29, %s7583_s17  ;;  %p3370_p1 = scmp.ge.s32.totalorder %s3371_s6, %s7583_s17 }
 0x369   : >> { %s7779_s29 = smov (%p3380_p0, %s3379_s29), 0  ;;  %3373 = sbr.rel (!%p3370_p1) target bundleno = 870 (0x366), region = 141 }
 0x36a   : >> { %s3736_s28 = sshll.u32 %s7779_s29, 3  ;;  %s4563_s20 = smov %s7779_s29  }
 0x36b   : >> { %s3384_s25 = scalar_lea.vmem %s3365_s19, %s3736_s28 [#allocation3]   ;;  %s3385_s24 = scalar_lea.vmem %s3367_s22, %s3736_s28  }
 0x370 PF: > { %p13_p2 = scmp.ge.s32.totalorder %s4619_s23, 4   ;;  %s7771_s20 = smov %s4532_s21 }
 0x371   : > { %s7772_s21 = smov %s4627_s26  ;;  %s7773_s22 = smov %s4619_s23 }
 0x372   :  { %15 = sbr.rel (!%p13_p2) target bundleno = 4 (0x4), region = 152 }

</bundles_post_ra>
